<compile_context>
chip_gen: v5e
topology: v5e:2x2
jax: 0.10.0
libtpu: 0.0.40
codegen_flags: <defaults>
</compile_context>

<pallas_src>
import jax
import jax.numpy as jnp
from jax import lax
from jax.experimental import pallas as pl
from jax.experimental.pallas import tpu as pltpu


# ----------------------------- fused bidirectional LSTM encoder kernel -----------------------------

def bidi_lstm_encoder_kernel(x_ref, wih_ref, whh_ref, b_ref, wfc_ref, bfc_ref,
                             out_ref, hid_ref, gx_scr):
    S, B, He2 = out_ref.shape          # He2 = 2 * enc_hid_dim (fused lane width)
    He = He2 // 2
    G = gx_scr.shape[-1]               # packed gate width = 8 * He

    # ---- hoisted input projection (bias folded in), off the recurrence chain ----
    # (S*B, E) @ (E, 8He) -> f32, one matmul for the whole sequence.
    gx_scr[...] = (jnp.dot(x_ref[...], wih_ref[...],
                           preferred_element_type=jnp.float32) + b_ref[...])

    whh = whh_ref[...]                 # (2He, 8He) block-diagonal, bf16, resident

    # lanes [0:He] of every 2He-wide gate group belong to the forward direction
    lane = lax.broadcasted_iota(jnp.int32, (B, G), 1)
    fwd_mask = (lane % He2) < He

    def step(lt, carry):
        h, c = carry                                            # (B, 2He) f32 vregs
        rlt = S - 1 - lt

        # single fused recurrent matmul for both directions (K = 2He = 128)
        gh = jnp.dot(h.astype(whh.dtype), whh,
                     preferred_element_type=jnp.float32)        # (B, 8He)
        gx_f = gx_scr[pl.ds(lt * B, B), :]                      # x-proj @ time lt
        gx_b = gx_scr[pl.ds(rlt * B, B), :]                     # x-proj @ time S-1-lt
        gates = gh + jnp.where(fwd_mask, gx_f, gx_b)

        sig = jax.nn.sigmoid(gates[:, :3 * He2])                # contiguous i|f|o
        i = sig[:, 0:He2]
        f = sig[:, He2:2 * He2]
        o = sig[:, 2 * He2:3 * He2]
        g = jnp.tanh(gates[:, 3 * He2:])

        c_new = f * c + i * g
        h_new = o * jnp.tanh(c_new)

        out_ref[lt, :, :He] = h_new[:, :He]                     # forward output at t
        out_ref[rlt, :, He:] = h_new[:, He:]                    # backward output at S-1-t
        return (h_new, c_new)

    init = (jnp.zeros((B, He2), jnp.float32),
            jnp.zeros((B, He2), jnp.float32))
    h_fin, _ = lax.fori_loop(0, S, step, init, unroll=True)

    # ---- hidden = tanh(cat(h_fwd_final, h_bwd_final) @ W_fc + b_fc) ----
    hid_ref[...] = jnp.tanh(
        jnp.dot(h_fin.astype(wfc_ref.dtype), wfc_ref[...],
                preferred_element_type=jnp.float32) + bfc_ref[...])


def encoder_pallas(embedded, kp):
    """embedded: (S, B, E) bf16. Returns (outputs (S,B,2He) f32, hidden (B,Hd) f32)."""
    S, B, E = embedded.shape
    He2, G = kp['W_hh'].shape          # (2He, 8He)
    Hd = kp['b_fc'].shape[-1]

    def full(shape):
        return pl.BlockSpec(shape, lambda i: (0,) * len(shape))

    out, hidden = pl.pallas_call(
        bidi_lstm_encoder_kernel,
        grid=(1,),
        out_shape=(
            jax.ShapeDtypeStruct((S, B, He2), jnp.float32),   # lane-dense cat(fwd, bwd)
            jax.ShapeDtypeStruct((B, Hd), jnp.float32),       # fc(tanh) hidden
        ),
        in_specs=[
            full((S * B, E)),                                 # embedded, flattened rows
            full((E, G)), full((He2, G)), full((1, G)),       # packed LSTM weights/bias
            full((He2, Hd)), full((1, Hd)),                   # fc weights/bias
        ],
        out_specs=(full((S, B, He2)), full((B, Hd))),
        scratch_shapes=[pltpu.VMEM((S * B, G), jnp.float32)], # hoisted x-projection
        compiler_params=pltpu.CompilerParams(
            dimension_semantics=("arbitrary",)),
    )(embedded.reshape(S * B, E),
      kp['W_ih'], kp['W_hh'], kp['b'], kp['W_fc'], kp['b_fc'])
    return out, hidden


def encoder_forward(kp, src):
    """Matches Encoder.forward: returns (outputs (S,B,2He), hidden (B,Hd))."""
    # Embedding lookup + eval-mode dropout stay in XLA.
    embedded = kp['W_emb'][src].astype(jnp.bfloat16)          # (S, B, E)
    return encoder_pallas(embedded, kp)


# ----------------------------- parameter setup & packing -----------------------------

def init_params(key, *, V, E, He, Hd):
    # Per-direction weights in right-multiply layout, PyTorch gate order [i, f, g, o]
    # along the last axis. b_f/b_b stand for torch's (bias_ih + bias_hh) summed.
    names = [
        ('W_emb', (V, E)),
        ('W_ih_f', (E, 4 * He)), ('W_hh_f', (He, 4 * He)), ('b_f', (1, 4 * He)),
        ('W_ih_b', (E, 4 * He)), ('W_hh_b', (He, 4 * He)), ('b_b', (1, 4 * He)),
        ('W_fc', (2 * He, Hd)), ('b_fc', (1, Hd)),
    ]
    keys = jax.random.split(key, len(names))
    return {n: 0.1 * jax.random.normal(k, s, dtype=jnp.float32)
            for k, (n, s) in zip(keys, names)}


def pack_encoder_params(p, He):
    """Pack per-direction weights into the fused kernel layout.

    Packed gate columns are gate-type-major, direction-minor:
      [ i_f i_b | f_f f_b | o_f o_b | g_f g_b ], each sub-block He wide,
    so the fused (B, 2He)=[h_f|h_b] state maps onto full 128-lane gate vregs.
    """
    def gate(w, n):                        # n in "ifgo" (torch order)
        k = "ifgo".index(n)
        return w[..., k * He:(k + 1) * He]

    def interleave(wf, wb):                # (..., 4He)x2 -> (..., 8He)
        return jnp.concatenate(
            [gate(wf, 'i'), gate(wb, 'i'), gate(wf, 'f'), gate(wb, 'f'),
             gate(wf, 'o'), gate(wb, 'o'), gate(wf, 'g'), gate(wb, 'g')], axis=-1)

    zf = jnp.zeros_like(p['W_hh_f'])
    return {
        'W_emb': p['W_emb'],
        'W_ih': interleave(p['W_ih_f'], p['W_ih_b']).astype(jnp.bfloat16),    # (E, 8He)
        'W_hh': jnp.concatenate(                                              # (2He, 8He) block-diag
            [interleave(p['W_hh_f'], zf), interleave(zf, p['W_hh_b'])],
            axis=0).astype(jnp.bfloat16),
        'b': interleave(p['b_f'], p['b_b']).astype(jnp.float32),              # (1, 8He)
        'W_fc': p['W_fc'].astype(jnp.bfloat16),                               # (2He, Hd)
        'b_fc': p['b_fc'].astype(jnp.float32),                                # (1, Hd)
    }


if __name__ == "__main__":
    V = 32          # vocab size
    E = 64          # emb_dim
    He = 64         # enc_hid_dim
    Hd = 64         # dec_hid_dim
    S = 16          # src length
    B = 8           # batch (fills the 8-sublane vreg dim)

    key = jax.random.PRNGKey(0)
    k_param, k_src = jax.random.split(key)

    params = pack_encoder_params(init_params(k_param, V=V, E=E, He=He, Hd=Hd), He)
    src = jax.random.randint(k_src, (S, B), 0, V, dtype=jnp.int32)

    fwd = jax.jit(encoder_forward)
    outputs, hidden = jax.block_until_ready(fwd(params, src))

    assert outputs.shape == (S, B, 2 * He), outputs.shape
    assert hidden.shape == (B, Hd), hidden.shape
    assert bool(jnp.all(jnp.isfinite(outputs)))
    assert bool(jnp.all(jnp.isfinite(hidden)))
    print("KERNEL_OK")
</pallas_src>

<mosaic_0001>
module attributes {stable_mosaic.version = 11 : i64} {
  func.func @bidi_lstm_encoder_kernel(%arg0: i32, %arg1: memref<128x64xbf16, #tpu.memory_space<vmem>>, %arg2: memref<64x512xbf16, #tpu.memory_space<vmem>>, %arg3: memref<128x512xbf16, #tpu.memory_space<vmem>>, %arg4: memref<1x512xf32, #tpu.memory_space<vmem>>, %arg5: memref<128x64xbf16, #tpu.memory_space<vmem>>, %arg6: memref<1x64xf32, #tpu.memory_space<vmem>>, %arg7: memref<16x8x128xf32, #tpu.memory_space<vmem>>, %arg8: memref<8x64xf32, #tpu.memory_space<vmem>>, %arg9: memref<128x512xf32, #tpu.memory_space<vmem>>) attributes {dimension_semantics = [#tpu.dimension_semantics<arbitrary>], iteration_bounds = array<i64: 1>, scalar_prefetch = 0 : i64, scratch_operands = 1 : i64, tpu.core_type = #tpu.core_type<tc>, window_params = [{pipeline_mode = #tpu.pipeline_mode<synchronous>, transform_indices = @transform_0, window_bounds = array<i64: 128, 64>}, {pipeline_mode = #tpu.pipeline_mode<synchronous>, transform_indices = @transform_1, window_bounds = array<i64: 64, 512>}, {pipeline_mode = #tpu.pipeline_mode<synchronous>, transform_indices = @transform_2, window_bounds = array<i64: 128, 512>}, {pipeline_mode = #tpu.pipeline_mode<synchronous>, transform_indices = @transform_3, window_bounds = array<i64: 1, 512>}, {pipeline_mode = #tpu.pipeline_mode<synchronous>, transform_indices = @transform_4, window_bounds = array<i64: 128, 64>}, {pipeline_mode = #tpu.pipeline_mode<synchronous>, transform_indices = @transform_5, window_bounds = array<i64: 1, 64>}, {pipeline_mode = #tpu.pipeline_mode<synchronous>, transform_indices = @transform_6, window_bounds = array<i64: 16, 8, 128>}, {pipeline_mode = #tpu.pipeline_mode<synchronous>, transform_indices = @transform_7, window_bounds = array<i64: 8, 64>}]} {
    %c0 = arith.constant 0 : index
    %c0_0 = arith.constant 0 : index
    %0 = vector.load %arg1[%c0, %c0_0] : memref<128x64xbf16, #tpu.memory_space<vmem>>, vector<128x64xbf16>
    %c0_1 = arith.constant 0 : index
    %c0_2 = arith.constant 0 : index
    %1 = vector.load %arg2[%c0_1, %c0_2] : memref<64x512xbf16, #tpu.memory_space<vmem>>, vector<64x512xbf16>
    %cst = arith.constant dense<0.000000e+00> : vector<128x512xf32>
    %2 = tpu.matmul %0, %1, %cst {dimension_numbers = #tpu.dot_dimension_numbers<[1], [0], [0], [1], [0, 0, 1, 1], [], []>} : vector<128x64xbf16>, vector<64x512xbf16>, vector<128x512xf32> -> vector<128x512xf32>
    %c0_3 = arith.constant 0 : index
    %c0_4 = arith.constant 0 : index
    %3 = vector.load %arg4[%c0_3, %c0_4] : memref<1x512xf32, #tpu.memory_space<vmem>>, vector<1x512xf32>
    %4 = vector.broadcast %3 : vector<1x512xf32> to vector<128x512xf32>
    %5 = arith.addf %2, %4 : vector<128x512xf32>
    %c0_5 = arith.constant 0 : index
    %c0_6 = arith.constant 0 : index
    %6 = vector.load %arg9[%c0_5, %c0_6] : memref<128x512xf32, #tpu.memory_space<vmem>>, vector<128x512xf32>
    tpu.vector_store %arg9[%c0_5, %c0_6], %5 {strides = array<i32>} : memref<128x512xf32, #tpu.memory_space<vmem>>, vector<128x512xf32>,
    %c0_7 = arith.constant 0 : index
    %c0_8 = arith.constant 0 : index
    %7 = vector.load %arg3[%c0_7, %c0_8] : memref<128x512xbf16, #tpu.memory_space<vmem>>, vector<128x512xbf16>
    %8 = tpu.iota {dimensions = array<i32: 1>} : vector<8x512xi32>
    %c128_i32 = arith.constant 128 : i32
    %c0_i32 = arith.constant 0 : i32
    %9 = arith.cmpi eq, %c128_i32, %c0_i32 : i32
    %c1_i32 = arith.constant 1 : i32
    %10 = arith.select %9, %c1_i32, %c128_i32 : i32
    %11 = vector.broadcast %10 : i32 to vector<8x512xi32>
    %12 = arith.remsi %8, %11 : vector<8x512xi32>
    %c0_i32_9 = arith.constant 0 : i32
    %13 = vector.broadcast %c0_i32_9 : i32 to vector<8x512xi32>
    %14 = arith.cmpi ne, %12, %13 : vector<8x512xi32>
    %c0_i32_10 = arith.constant 0 : i32
    %15 = vector.broadcast %c0_i32_10 : i32 to vector<8x512xi32>
    %16 = arith.cmpi slt, %12, %15 : vector<8x512xi32>
    %c0_i32_11 = arith.constant 0 : i32
    %17 = arith.cmpi slt, %10, %c0_i32_11 : i32
    %18 = vector.broadcast %17 : i1 to vector<8x512xi1>
    %19 = vector.broadcast %18 : vector<8x512xi1> to vector<8x512xi1>
    %20 = arith.xori %16, %19 : vector<8x512xi1>
    %21 = arith.andi %20, %14 : vector<8x512xi1>
    %22 = vector.broadcast %10 : i32 to vector<8x512xi32>
    %23 = arith.addi %12, %22 : vector<8x512xi32>
    %24 = arith.select %21, %23, %12 : vector<8x512xi1>, vector<8x512xi32>
    %c64_i32 = arith.constant 64 : i32
    %25 = vector.broadcast %c64_i32 : i32 to vector<8x512xi32>
    %26 = arith.cmpi slt, %24, %25 : vector<8x512xi32>
    %cst_12 = arith.constant 0.000000e+00 : f32
    %27 = vector.broadcast %cst_12 : f32 to vector<8x128xf32>
    %cst_13 = arith.constant 0.000000e+00 : f32
    %28 = vector.broadcast %cst_13 : f32 to vector<8x128xf32>
    %c0_i32_14 = arith.constant 0 : i32
    %c15_i32 = arith.constant 15 : i32
    %29 = arith.subi %c15_i32, %c0_i32_14 : i32
    %30 = arith.truncf %27 : vector<8x128xf32> to vector<8x128xbf16>
    %cst_15 = arith.constant dense<0.000000e+00> : vector<8x512xf32>
    %31 = tpu.matmul %30, %7, %cst_15 {dimension_numbers = #tpu.dot_dimension_numbers<[1], [0], [0], [1], [0, 0, 1, 1], [], []>} : vector<8x128xbf16>, vector<128x512xbf16>, vector<8x512xf32> -> vector<8x512xf32>
    %c8_i32 = arith.constant 8 : i32
    %32 = arith.muli %c0_i32_14, %c8_i32 : i32
    %33 = arith.index_cast %32 : i32 to index
    %c0_16 = arith.constant 0 : index
    %34 = vector.load %arg9[%33, %c0_16] : memref<128x512xf32, #tpu.memory_space<vmem>>, vector<8x512xf32>
    %c8_i32_17 = arith.constant 8 : i32
    %35 = arith.muli %29, %c8_i32_17 : i32
    %36 = arith.index_cast %35 : i32 to index
    %c0_18 = arith.constant 0 : index
    %37 = vector.load %arg9[%36, %c0_18] : memref<128x512xf32, #tpu.memory_space<vmem>>, vector<8x512xf32>
    %38 = arith.select %26, %34, %37 : vector<8x512xi1>, vector<8x512xf32>
    %39 = arith.addf %31, %38 : vector<8x512xf32>
    %40 = vector.extract_strided_slice %39 {offsets = [0, 0], sizes = [8, 384], strides = [1, 1]} : vector<8x512xf32> to vector<8x384xf32>
    %41 = arith.negf %40 : vector<8x384xf32>
    %42 = math.exp %41 : vector<8x384xf32>
    %cst_19 = arith.constant 1.000000e+00 : f32
    %43 = vector.broadcast %cst_19 : f32 to vector<8x384xf32>
    %44 = arith.addf %43, %42 : vector<8x384xf32>
    %45 = arith.divf %43, %44 : vector<8x384xf32>
    %46 = vector.extract_strided_slice %45 {offsets = [0, 0], sizes = [8, 128], strides = [1, 1]} : vector<8x384xf32> to vector<8x128xf32>
    %47 = vector.extract_strided_slice %45 {offsets = [0, 128], sizes = [8, 128], strides = [1, 1]} : vector<8x384xf32> to vector<8x128xf32>
    %48 = vector.extract_strided_slice %45 {offsets = [0, 256], sizes = [8, 128], strides = [1, 1]} : vector<8x384xf32> to vector<8x128xf32>
    %49 = vector.extract_strided_slice %39 {offsets = [0, 384], sizes = [8, 128], strides = [1, 1]} : vector<8x512xf32> to vector<8x128xf32>
    %50 = math.tanh %49 : vector<8x128xf32>
    %51 = arith.mulf %47, %28 : vector<8x128xf32>
    %52 = arith.mulf %46, %50 : vector<8x128xf32>
    %53 = arith.addf %51, %52 : vector<8x128xf32>
    %54 = math.tanh %53 : vector<8x128xf32>
    %55 = arith.mulf %48, %54 : vector<8x128xf32>
    %56 = vector.extract_strided_slice %55 {offsets = [0, 0], sizes = [8, 64], strides = [1, 1]} : vector<8x128xf32> to vector<8x64xf32>
    %57 = arith.index_cast %c0_i32_14 : i32 to index
    %c0_20 = arith.constant 0 : index
    %c0_21 = arith.constant 0 : index
    %58 = vector.load %arg7[%57, %c0_20, %c0_21] : memref<16x8x128xf32, #tpu.memory_space<vmem>>, vector<1x8x64xf32>
    %59 = vector.shape_cast %58 : vector<1x8x64xf32> to vector<8x64xf32>
    %60 = vector.shape_cast %56 : vector<8x64xf32> to vector<1x8x64xf32>
    tpu.vector_store %arg7[%57, %c0_20, %c0_21], %60 {strides = array<i32>} : memref<16x8x128xf32, #tpu.memory_space<vmem>>, vector<1x8x64xf32>,
    %61 = vector.extract_strided_slice %55 {offsets = [0, 64], sizes = [8, 64], strides = [1, 1]} : vector<8x128xf32> to vector<8x64xf32>
    %62 = arith.index_cast %29 : i32 to index
    %c0_22 = arith.constant 0 : index
    %c64 = arith.constant 64 : index
    %63 = vector.load %arg7[%62, %c0_22, %c64] : memref<16x8x128xf32, #tpu.memory_space<vmem>>, vector<1x8x64xf32>
    %64 = vector.shape_cast %63 : vector<1x8x64xf32> to vector<8x64xf32>
    %65 = vector.shape_cast %61 : vector<8x64xf32> to vector<1x8x64xf32>
    tpu.vector_store %arg7[%62, %c0_22, %c64], %65 {strides = array<i32>} : memref<16x8x128xf32, #tpu.memory_space<vmem>>, vector<1x8x64xf32>,
    %c1_i32_23 = arith.constant 1 : i32
    %c15_i32_24 = arith.constant 15 : i32
    %66 = arith.subi %c15_i32_24, %c1_i32_23 : i32
    %67 = arith.truncf %55 : vector<8x128xf32> to vector<8x128xbf16>
    %cst_25 = arith.constant dense<0.000000e+00> : vector<8x512xf32>
    %68 = tpu.matmul %67, %7, %cst_25 {dimension_numbers = #tpu.dot_dimension_numbers<[1], [0], [0], [1], [0, 0, 1, 1], [], []>} : vector<8x128xbf16>, vector<128x512xbf16>, vector<8x512xf32> -> vector<8x512xf32>
    %c8_i32_26 = arith.constant 8 : i32
    %69 = arith.muli %c1_i32_23, %c8_i32_26 : i32
    %70 = arith.index_cast %69 : i32 to index
    %c0_27 = arith.constant 0 : index
    %71 = vector.load %arg9[%70, %c0_27] : memref<128x512xf32, #tpu.memory_space<vmem>>, vector<8x512xf32>
    %c8_i32_28 = arith.constant 8 : i32
    %72 = arith.muli %66, %c8_i32_28 : i32
    %73 = arith.index_cast %72 : i32 to index
    %c0_29 = arith.constant 0 : index
    %74 = vector.load %arg9[%73, %c0_29] : memref<128x512xf32, #tpu.memory_space<vmem>>, vector<8x512xf32>
    %75 = arith.select %26, %71, %74 : vector<8x512xi1>, vector<8x512xf32>
    %76 = arith.addf %68, %75 : vector<8x512xf32>
    %77 = vector.extract_strided_slice %76 {offsets = [0, 0], sizes = [8, 384], strides = [1, 1]} : vector<8x512xf32> to vector<8x384xf32>
    %78 = arith.negf %77 : vector<8x384xf32>
    %79 = math.exp %78 : vector<8x384xf32>
    %cst_30 = arith.constant 1.000000e+00 : f32
    %80 = vector.broadcast %cst_30 : f32 to vector<8x384xf32>
    %81 = arith.addf %80, %79 : vector<8x384xf32>
    %82 = arith.divf %80, %81 : vector<8x384xf32>
    %83 = vector.extract_strided_slice %82 {offsets = [0, 0], sizes = [8, 128], strides = [1, 1]} : vector<8x384xf32> to vector<8x128xf32>
    %84 = vector.extract_strided_slice %82 {offsets = [0, 128], sizes = [8, 128], strides = [1, 1]} : vector<8x384xf32> to vector<8x128xf32>
    %85 = vector.extract_strided_slice %82 {offsets = [0, 256], sizes = [8, 128], strides = [1, 1]} : vector<8x384xf32> to vector<8x128xf32>
    %86 = vector.extract_strided_slice %76 {offsets = [0, 384], sizes = [8, 128], strides = [1, 1]} : vector<8x512xf32> to vector<8x128xf32>
    %87 = math.tanh %86 : vector<8x128xf32>
    %88 = arith.mulf %84, %53 : vector<8x128xf32>
    %89 = arith.mulf %83, %87 : vector<8x128xf32>
    %90 = arith.addf %88, %89 : vector<8x128xf32>
    %91 = math.tanh %90 : vector<8x128xf32>
    %92 = arith.mulf %85, %91 : vector<8x128xf32>
    %93 = vector.extract_strided_slice %92 {offsets = [0, 0], sizes = [8, 64], strides = [1, 1]} : vector<8x128xf32> to vector<8x64xf32>
    %94 = arith.index_cast %c1_i32_23 : i32 to index
    %c0_31 = arith.constant 0 : index
    %c0_32 = arith.constant 0 : index
    %95 = vector.load %arg7[%94, %c0_31, %c0_32] : memref<16x8x128xf32, #tpu.memory_space<vmem>>, vector<1x8x64xf32>
    %96 = vector.shape_cast %95 : vector<1x8x64xf32> to vector<8x64xf32>
    %97 = vector.shape_cast %93 : vector<8x64xf32> to vector<1x8x64xf32>
    tpu.vector_store %arg7[%94, %c0_31, %c0_32], %97 {strides = array<i32>} : memref<16x8x128xf32, #tpu.memory_space<vmem>>, vector<1x8x64xf32>,
    %98 = vector.extract_strided_slice %92 {offsets = [0, 64], sizes = [8, 64], strides = [1, 1]} : vector<8x128xf32> to vector<8x64xf32>
    %99 = arith.index_cast %66 : i32 to index
    %c0_33 = arith.constant 0 : index
    %c64_34 = arith.constant 64 : index
    %100 = vector.load %arg7[%99, %c0_33, %c64_34] : memref<16x8x128xf32, #tpu.memory_space<vmem>>, vector<1x8x64xf32>
    %101 = vector.shape_cast %100 : vector<1x8x64xf32> to vector<8x64xf32>
    %102 = vector.shape_cast %98 : vector<8x64xf32> to vector<1x8x64xf32>
    tpu.vector_store %arg7[%99, %c0_33, %c64_34], %102 {strides = array<i32>} : memref<16x8x128xf32, #tpu.memory_space<vmem>>, vector<1x8x64xf32>,
    %c2_i32 = arith.constant 2 : i32
    %c15_i32_35 = arith.constant 15 : i32
    %103 = arith.subi %c15_i32_35, %c2_i32 : i32
    %104 = arith.truncf %92 : vector<8x128xf32> to vector<8x128xbf16>
    %cst_36 = arith.constant dense<0.000000e+00> : vector<8x512xf32>
    %105 = tpu.matmul %104, %7, %cst_36 {dimension_numbers = #tpu.dot_dimension_numbers<[1], [0], [0], [1], [0, 0, 1, 1], [], []>} : vector<8x128xbf16>, vector<128x512xbf16>, vector<8x512xf32> -> vector<8x512xf32>
    %c8_i32_37 = arith.constant 8 : i32
    %106 = arith.muli %c2_i32, %c8_i32_37 : i32
    %107 = arith.index_cast %106 : i32 to index
    %c0_38 = arith.constant 0 : index
    %108 = vector.load %arg9[%107, %c0_38] : memref<128x512xf32, #tpu.memory_space<vmem>>, vector<8x512xf32>
    %c8_i32_39 = arith.constant 8 : i32
    %109 = arith.muli %103, %c8_i32_39 : i32
    %110 = arith.index_cast %109 : i32 to index
    %c0_40 = arith.constant 0 : index
    %111 = vector.load %arg9[%110, %c0_40] : memref<128x512xf32, #tpu.memory_space<vmem>>, vector<8x512xf32>
    %112 = arith.select %26, %108, %111 : vector<8x512xi1>, vector<8x512xf32>
    %113 = arith.addf %105, %112 : vector<8x512xf32>
    %114 = vector.extract_strided_slice %113 {offsets = [0, 0], sizes = [8, 384], strides = [1, 1]} : vector<8x512xf32> to vector<8x384xf32>
    %115 = arith.negf %114 : vector<8x384xf32>
    %116 = math.exp %115 : vector<8x384xf32>
    %cst_41 = arith.constant 1.000000e+00 : f32
    %117 = vector.broadcast %cst_41 : f32 to vector<8x384xf32>
    %118 = arith.addf %117, %116 : vector<8x384xf32>
    %119 = arith.divf %117, %118 : vector<8x384xf32>
    %120 = vector.extract_strided_slice %119 {offsets = [0, 0], sizes = [8, 128], strides = [1, 1]} : vector<8x384xf32> to vector<8x128xf32>
    %121 = vector.extract_strided_slice %119 {offsets = [0, 128], sizes = [8, 128], strides = [1, 1]} : vector<8x384xf32> to vector<8x128xf32>
    %122 = vector.extract_strided_slice %119 {offsets = [0, 256], sizes = [8, 128], strides = [1, 1]} : vector<8x384xf32> to vector<8x128xf32>
    %123 = vector.extract_strided_slice %113 {offsets = [0, 384], sizes = [8, 128], strides = [1, 1]} : vector<8x512xf32> to vector<8x128xf32>
    %124 = math.tanh %123 : vector<8x128xf32>
    %125 = arith.mulf %121, %90 : vector<8x128xf32>
    %126 = arith.mulf %120, %124 : vector<8x128xf32>
    %127 = arith.addf %125, %126 : vector<8x128xf32>
    %128 = math.tanh %127 : vector<8x128xf32>
    %129 = arith.mulf %122, %128 : vector<8x128xf32>
    %130 = vector.extract_strided_slice %129 {offsets = [0, 0], sizes = [8, 64], strides = [1, 1]} : vector<8x128xf32> to vector<8x64xf32>
    %131 = arith.index_cast %c2_i32 : i32 to index
    %c0_42 = arith.constant 0 : index
    %c0_43 = arith.constant 0 : index
    %132 = vector.load %arg7[%131, %c0_42, %c0_43] : memref<16x8x128xf32, #tpu.memory_space<vmem>>, vector<1x8x64xf32>
    %133 = vector.shape_cast %132 : vector<1x8x64xf32> to vector<8x64xf32>
    %134 = vector.shape_cast %130 : vector<8x64xf32> to vector<1x8x64xf32>
    tpu.vector_store %arg7[%131, %c0_42, %c0_43], %134 {strides = array<i32>} : memref<16x8x128xf32, #tpu.memory_space<vmem>>, vector<1x8x64xf32>,
    %135 = vector.extract_strided_slice %129 {offsets = [0, 64], sizes = [8, 64], strides = [1, 1]} : vector<8x128xf32> to vector<8x64xf32>
    %136 = arith.index_cast %103 : i32 to index
    %c0_44 = arith.constant 0 : index
    %c64_45 = arith.constant 64 : index
    %137 = vector.load %arg7[%136, %c0_44, %c64_45] : memref<16x8x128xf32, #tpu.memory_space<vmem>>, vector<1x8x64xf32>
    %138 = vector.shape_cast %137 : vector<1x8x64xf32> to vector<8x64xf32>
    %139 = vector.shape_cast %135 : vector<8x64xf32> to vector<1x8x64xf32>
    tpu.vector_store %arg7[%136, %c0_44, %c64_45], %139 {strides = array<i32>} : memref<16x8x128xf32, #tpu.memory_space<vmem>>, vector<1x8x64xf32>,
    %c3_i32 = arith.constant 3 : i32
    %c15_i32_46 = arith.constant 15 : i32
    %140 = arith.subi %c15_i32_46, %c3_i32 : i32
    %141 = arith.truncf %129 : vector<8x128xf32> to vector<8x128xbf16>
    %cst_47 = arith.constant dense<0.000000e+00> : vector<8x512xf32>
    %142 = tpu.matmul %141, %7, %cst_47 {dimension_numbers = #tpu.dot_dimension_numbers<[1], [0], [0], [1], [0, 0, 1, 1], [], []>} : vector<8x128xbf16>, vector<128x512xbf16>, vector<8x512xf32> -> vector<8x512xf32>
    %c8_i32_48 = arith.constant 8 : i32
    %143 = arith.muli %c3_i32, %c8_i32_48 : i32
    %144 = arith.index_cast %143 : i32 to index
    %c0_49 = arith.constant 0 : index
    %145 = vector.load %arg9[%144, %c0_49] : memref<128x512xf32, #tpu.memory_space<vmem>>, vector<8x512xf32>
    %c8_i32_50 = arith.constant 8 : i32
    %146 = arith.muli %140, %c8_i32_50 : i32
    %147 = arith.index_cast %146 : i32 to index
    %c0_51 = arith.constant 0 : index
    %148 = vector.load %arg9[%147, %c0_51] : memref<128x512xf32, #tpu.memory_space<vmem>>, vector<8x512xf32>
    %149 = arith.select %26, %145, %148 : vector<8x512xi1>, vector<8x512xf32>
    %150 = arith.addf %142, %149 : vector<8x512xf32>
    %151 = vector.extract_strided_slice %150 {offsets = [0, 0], sizes = [8, 384], strides = [1, 1]} : vector<8x512xf32> to vector<8x384xf32>
    %152 = arith.negf %151 : vector<8x384xf32>
    %153 = math.exp %152 : vector<8x384xf32>
    %cst_52 = arith.constant 1.000000e+00 : f32
    %154 = vector.broadcast %cst_52 : f32 to vector<8x384xf32>
    %155 = arith.addf %154, %153 : vector<8x384xf32>
    %156 = arith.divf %154, %155 : vector<8x384xf32>
    %157 = vector.extract_strided_slice %156 {offsets = [0, 0], sizes = [8, 128], strides = [1, 1]} : vector<8x384xf32> to vector<8x128xf32>
    %158 = vector.extract_strided_slice %156 {offsets = [0, 128], sizes = [8, 128], strides = [1, 1]} : vector<8x384xf32> to vector<8x128xf32>
    %159 = vector.extract_strided_slice %156 {offsets = [0, 256], sizes = [8, 128], strides = [1, 1]} : vector<8x384xf32> to vector<8x128xf32>
    %160 = vector.extract_strided_slice %150 {offsets = [0, 384], sizes = [8, 128], strides = [1, 1]} : vector<8x512xf32> to vector<8x128xf32>
    %161 = math.tanh %160 : vector<8x128xf32>
    %162 = arith.mulf %158, %127 : vector<8x128xf32>
    %163 = arith.mulf %157, %161 : vector<8x128xf32>
    %164 = arith.addf %162, %163 : vector<8x128xf32>
    %165 = math.tanh %164 : vector<8x128xf32>
    %166 = arith.mulf %159, %165 : vector<8x128xf32>
    %167 = vector.extract_strided_slice %166 {offsets = [0, 0], sizes = [8, 64], strides = [1, 1]} : vector<8x128xf32> to vector<8x64xf32>
    %168 = arith.index_cast %c3_i32 : i32 to index
    %c0_53 = arith.constant 0 : index
    %c0_54 = arith.constant 0 : index
    %169 = vector.load %arg7[%168, %c0_53, %c0_54] : memref<16x8x128xf32, #tpu.memory_space<vmem>>, vector<1x8x64xf32>
    %170 = vector.shape_cast %169 : vector<1x8x64xf32> to vector<8x64xf32>
    %171 = vector.shape_cast %167 : vector<8x64xf32> to vector<1x8x64xf32>
    tpu.vector_store %arg7[%168, %c0_53, %c0_54], %171 {strides = array<i32>} : memref<16x8x128xf32, #tpu.memory_space<vmem>>, vector<1x8x64xf32>,
    %172 = vector.extract_strided_slice %166 {offsets = [0, 64], sizes = [8, 64], strides = [1, 1]} : vector<8x128xf32> to vector<8x64xf32>
    %173 = arith.index_cast %140 : i32 to index
    %c0_55 = arith.constant 0 : index
    %c64_56 = arith.constant 64 : index
    %174 = vector.load %arg7[%173, %c0_55, %c64_56] : memref<16x8x128xf32, #tpu.memory_space<vmem>>, vector<1x8x64xf32>
    %175 = vector.shape_cast %174 : vector<1x8x64xf32> to vector<8x64xf32>
    %176 = vector.shape_cast %172 : vector<8x64xf32> to vector<1x8x64xf32>
    tpu.vector_store %arg7[%173, %c0_55, %c64_56], %176 {strides = array<i32>} : memref<16x8x128xf32, #tpu.memory_space<vmem>>, vector<1x8x64xf32>,
    %c4_i32 = arith.constant 4 : i32
    %c15_i32_57 = arith.constant 15 : i32
    %177 = arith.subi %c15_i32_57, %c4_i32 : i32
    %178 = arith.truncf %166 : vector<8x128xf32> to vector<8x128xbf16>
    %cst_58 = arith.constant dense<0.000000e+00> : vector<8x512xf32>
    %179 = tpu.matmul %178, %7, %cst_58 {dimension_numbers = #tpu.dot_dimension_numbers<[1], [0], [0], [1], [0, 0, 1, 1], [], []>} : vector<8x128xbf16>, vector<128x512xbf16>, vector<8x512xf32> -> vector<8x512xf32>
    %c8_i32_59 = arith.constant 8 : i32
    %180 = arith.muli %c4_i32, %c8_i32_59 : i32
    %181 = arith.index_cast %180 : i32 to index
    %c0_60 = arith.constant 0 : index
    %182 = vector.load %arg9[%181, %c0_60] : memref<128x512xf32, #tpu.memory_space<vmem>>, vector<8x512xf32>
    %c8_i32_61 = arith.constant 8 : i32
    %183 = arith.muli %177, %c8_i32_61 : i32
    %184 = arith.index_cast %183 : i32 to index
    %c0_62 = arith.constant 0 : index
    %185 = vector.load %arg9[%184, %c0_62] : memref<128x512xf32, #tpu.memory_space<vmem>>, vector<8x512xf32>
    %186 = arith.select %26, %182, %185 : vector<8x512xi1>, vector<8x512xf32>
    %187 = arith.addf %179, %186 : vector<8x512xf32>
    %188 = vector.extract_strided_slice %187 {offsets = [0, 0], sizes = [8, 384], strides = [1, 1]} : vector<8x512xf32> to vector<8x384xf32>
    %189 = arith.negf %188 : vector<8x384xf32>
    %190 = math.exp %189 : vector<8x384xf32>
    %cst_63 = arith.constant 1.000000e+00 : f32
    %191 = vector.broadcast %cst_63 : f32 to vector<8x384xf32>
    %192 = arith.addf %191, %190 : vector<8x384xf32>
    %193 = arith.divf %191, %192 : vector<8x384xf32>
    %194 = vector.extract_strided_slice %193 {offsets = [0, 0], sizes = [8, 128], strides = [1, 1]} : vector<8x384xf32> to vector<8x128xf32>
    %195 = vector.extract_strided_slice %193 {offsets = [0, 128], sizes = [8, 128], strides = [1, 1]} : vector<8x384xf32> to vector<8x128xf32>
    %196 = vector.extract_strided_slice %193 {offsets = [0, 256], sizes = [8, 128], strides = [1, 1]} : vector<8x384xf32> to vector<8x128xf32>
    %197 = vector.extract_strided_slice %187 {offsets = [0, 384], sizes = [8, 128], strides = [1, 1]} : vector<8x512xf32> to vector<8x128xf32>
    %198 = math.tanh %197 : vector<8x128xf32>
    %199 = arith.mulf %195, %164 : vector<8x128xf32>
    %200 = arith.mulf %194, %198 : vector<8x128xf32>
    %201 = arith.addf %199, %200 : vector<8x128xf32>
    %202 = math.tanh %201 : vector<8x128xf32>
    %203 = arith.mulf %196, %202 : vector<8x128xf32>
    %204 = vector.extract_strided_slice %203 {offsets = [0, 0], sizes = [8, 64], strides = [1, 1]} : vector<8x128xf32> to vector<8x64xf32>
    %205 = arith.index_cast %c4_i32 : i32 to index
    %c0_64 = arith.constant 0 : index
    %c0_65 = arith.constant 0 : index
    %206 = vector.load %arg7[%205, %c0_64, %c0_65] : memref<16x8x128xf32, #tpu.memory_space<vmem>>, vector<1x8x64xf32>
    %207 = vector.shape_cast %206 : vector<1x8x64xf32> to vector<8x64xf32>
    %208 = vector.shape_cast %204 : vector<8x64xf32> to vector<1x8x64xf32>
    tpu.vector_store %arg7[%205, %c0_64, %c0_65], %208 {strides = array<i32>} : memref<16x8x128xf32, #tpu.memory_space<vmem>>, vector<1x8x64xf32>,
    %209 = vector.extract_strided_slice %203 {offsets = [0, 64], sizes = [8, 64], strides = [1, 1]} : vector<8x128xf32> to vector<8x64xf32>
    %210 = arith.index_cast %177 : i32 to index
    %c0_66 = arith.constant 0 : index
    %c64_67 = arith.constant 64 : index
    %211 = vector.load %arg7[%210, %c0_66, %c64_67] : memref<16x8x128xf32, #tpu.memory_space<vmem>>, vector<1x8x64xf32>
    %212 = vector.shape_cast %211 : vector<1x8x64xf32> to vector<8x64xf32>
    %213 = vector.shape_cast %209 : vector<8x64xf32> to vector<1x8x64xf32>
    tpu.vector_store %arg7[%210, %c0_66, %c64_67], %213 {strides = array<i32>} : memref<16x8x128xf32, #tpu.memory_space<vmem>>, vector<1x8x64xf32>,
    %c5_i32 = arith.constant 5 : i32
    %c15_i32_68 = arith.constant 15 : i32
    %214 = arith.subi %c15_i32_68, %c5_i32 : i32
    %215 = arith.truncf %203 : vector<8x128xf32> to vector<8x128xbf16>
    %cst_69 = arith.constant dense<0.000000e+00> : vector<8x512xf32>
    %216 = tpu.matmul %215, %7, %cst_69 {dimension_numbers = #tpu.dot_dimension_numbers<[1], [0], [0], [1], [0, 0, 1, 1], [], []>} : vector<8x128xbf16>, vector<128x512xbf16>, vector<8x512xf32> -> vector<8x512xf32>
    %c8_i32_70 = arith.constant 8 : i32
    %217 = arith.muli %c5_i32, %c8_i32_70 : i32
    %218 = arith.index_cast %217 : i32 to index
    %c0_71 = arith.constant 0 : index
    %219 = vector.load %arg9[%218, %c0_71] : memref<128x512xf32, #tpu.memory_space<vmem>>, vector<8x512xf32>
    %c8_i32_72 = arith.constant 8 : i32
    %220 = arith.muli %214, %c8_i32_72 : i32
    %221 = arith.index_cast %220 : i32 to index
    %c0_73 = arith.constant 0 : index
    %222 = vector.load %arg9[%221, %c0_73] : memref<128x512xf32, #tpu.memory_space<vmem>>, vector<8x512xf32>
    %223 = arith.select %26, %219, %222 : vector<8x512xi1>, vector<8x512xf32>
    %224 = arith.addf %216, %223 : vector<8x512xf32>
    %225 = vector.extract_strided_slice %224 {offsets = [0, 0], sizes = [8, 384], strides = [1, 1]} : vector<8x512xf32> to vector<8x384xf32>
    %226 = arith.negf %225 : vector<8x384xf32>
    %227 = math.exp %226 : vector<8x384xf32>
    %cst_74 = arith.constant 1.000000e+00 : f32
    %228 = vector.broadcast %cst_74 : f32 to vector<8x384xf32>
    %229 = arith.addf %228, %227 : vector<8x384xf32>
    %230 = arith.divf %228, %229 : vector<8x384xf32>
    %231 = vector.extract_strided_slice %230 {offsets = [0, 0], sizes = [8, 128], strides = [1, 1]} : vector<8x384xf32> to vector<8x128xf32>
    %232 = vector.extract_strided_slice %230 {offsets = [0, 128], sizes = [8, 128], strides = [1, 1]} : vector<8x384xf32> to vector<8x128xf32>
    %233 = vector.extract_strided_slice %230 {offsets = [0, 256], sizes = [8, 128], strides = [1, 1]} : vector<8x384xf32> to vector<8x128xf32>
    %234 = vector.extract_strided_slice %224 {offsets = [0, 384], sizes = [8, 128], strides = [1, 1]} : vector<8x512xf32> to vector<8x128xf32>
    %235 = math.tanh %234 : vector<8x128xf32>
    %236 = arith.mulf %232, %201 : vector<8x128xf32>
    %237 = arith.mulf %231, %235 : vector<8x128xf32>
    %238 = arith.addf %236, %237 : vector<8x128xf32>
    %239 = math.tanh %238 : vector<8x128xf32>
    %240 = arith.mulf %233, %239 : vector<8x128xf32>
    %241 = vector.extract_strided_slice %240 {offsets = [0, 0], sizes = [8, 64], strides = [1, 1]} : vector<8x128xf32> to vector<8x64xf32>
    %242 = arith.index_cast %c5_i32 : i32 to index
    %c0_75 = arith.constant 0 : index
    %c0_76 = arith.constant 0 : index
    %243 = vector.load %arg7[%242, %c0_75, %c0_76] : memref<16x8x128xf32, #tpu.memory_space<vmem>>, vector<1x8x64xf32>
    %244 = vector.shape_cast %243 : vector<1x8x64xf32> to vector<8x64xf32>
    %245 = vector.shape_cast %241 : vector<8x64xf32> to vector<1x8x64xf32>
    tpu.vector_store %arg7[%242, %c0_75, %c0_76], %245 {strides = array<i32>} : memref<16x8x128xf32, #tpu.memory_space<vmem>>, vector<1x8x64xf32>,
    %246 = vector.extract_strided_slice %240 {offsets = [0, 64], sizes = [8, 64], strides = [1, 1]} : vector<8x128xf32> to vector<8x64xf32>
    %247 = arith.index_cast %214 : i32 to index
    %c0_77 = arith.constant 0 : index
    %c64_78 = arith.constant 64 : index
    %248 = vector.load %arg7[%247, %c0_77, %c64_78] : memref<16x8x128xf32, #tpu.memory_space<vmem>>, vector<1x8x64xf32>
    %249 = vector.shape_cast %248 : vector<1x8x64xf32> to vector<8x64xf32>
    %250 = vector.shape_cast %246 : vector<8x64xf32> to vector<1x8x64xf32>
    tpu.vector_store %arg7[%247, %c0_77, %c64_78], %250 {strides = array<i32>} : memref<16x8x128xf32, #tpu.memory_space<vmem>>, vector<1x8x64xf32>,
    %c6_i32 = arith.constant 6 : i32
    %c15_i32_79 = arith.constant 15 : i32
    %251 = arith.subi %c15_i32_79, %c6_i32 : i32
    %252 = arith.truncf %240 : vector<8x128xf32> to vector<8x128xbf16>
    %cst_80 = arith.constant dense<0.000000e+00> : vector<8x512xf32>
    %253 = tpu.matmul %252, %7, %cst_80 {dimension_numbers = #tpu.dot_dimension_numbers<[1], [0], [0], [1], [0, 0, 1, 1], [], []>} : vector<8x128xbf16>, vector<128x512xbf16>, vector<8x512xf32> -> vector<8x512xf32>
    %c8_i32_81 = arith.constant 8 : i32
    %254 = arith.muli %c6_i32, %c8_i32_81 : i32
    %255 = arith.index_cast %254 : i32 to index
    %c0_82 = arith.constant 0 : index
    %256 = vector.load %arg9[%255, %c0_82] : memref<128x512xf32, #tpu.memory_space<vmem>>, vector<8x512xf32>
    %c8_i32_83 = arith.constant 8 : i32
    %257 = arith.muli %251, %c8_i32_83 : i32
    %258 = arith.index_cast %257 : i32 to index
    %c0_84 = arith.constant 0 : index
    %259 = vector.load %arg9[%258, %c0_84] : memref<128x512xf32, #tpu.memory_space<vmem>>, vector<8x512xf32>
    %260 = arith.select %26, %256, %259 : vector<8x512xi1>, vector<8x512xf32>
    %261 = arith.addf %253, %260 : vector<8x512xf32>
    %262 = vector.extract_strided_slice %261 {offsets = [0, 0], sizes = [8, 384], strides = [1, 1]} : vector<8x512xf32> to vector<8x384xf32>
    %263 = arith.negf %262 : vector<8x384xf32>
    %264 = math.exp %263 : vector<8x384xf32>
    %cst_85 = arith.constant 1.000000e+00 : f32
    %265 = vector.broadcast %cst_85 : f32 to vector<8x384xf32>
    %266 = arith.addf %265, %264 : vector<8x384xf32>
    %267 = arith.divf %265, %266 : vector<8x384xf32>
    %268 = vector.extract_strided_slice %267 {offsets = [0, 0], sizes = [8, 128], strides = [1, 1]} : vector<8x384xf32> to vector<8x128xf32>
    %269 = vector.extract_strided_slice %267 {offsets = [0, 128], sizes = [8, 128], strides = [1, 1]} : vector<8x384xf32> to vector<8x128xf32>
    %270 = vector.extract_strided_slice %267 {offsets = [0, 256], sizes = [8, 128], strides = [1, 1]} : vector<8x384xf32> to vector<8x128xf32>
    %271 = vector.extract_strided_slice %261 {offsets = [0, 384], sizes = [8, 128], strides = [1, 1]} : vector<8x512xf32> to vector<8x128xf32>
    %272 = math.tanh %271 : vector<8x128xf32>
    %273 = arith.mulf %269, %238 : vector<8x128xf32>
    %274 = arith.mulf %268, %272 : vector<8x128xf32>
    %275 = arith.addf %273, %274 : vector<8x128xf32>
    %276 = math.tanh %275 : vector<8x128xf32>
    %277 = arith.mulf %270, %276 : vector<8x128xf32>
    %278 = vector.extract_strided_slice %277 {offsets = [0, 0], sizes = [8, 64], strides = [1, 1]} : vector<8x128xf32> to vector<8x64xf32>
    %279 = arith.index_cast %c6_i32 : i32 to index
    %c0_86 = arith.constant 0 : index
    %c0_87 = arith.constant 0 : index
    %280 = vector.load %arg7[%279, %c0_86, %c0_87] : memref<16x8x128xf32, #tpu.memory_space<vmem>>, vector<1x8x64xf32>
    %281 = vector.shape_cast %280 : vector<1x8x64xf32> to vector<8x64xf32>
    %282 = vector.shape_cast %278 : vector<8x64xf32> to vector<1x8x64xf32>
    tpu.vector_store %arg7[%279, %c0_86, %c0_87], %282 {strides = array<i32>} : memref<16x8x128xf32, #tpu.memory_space<vmem>>, vector<1x8x64xf32>,
    %283 = vector.extract_strided_slice %277 {offsets = [0, 64], sizes = [8, 64], strides = [1, 1]} : vector<8x128xf32> to vector<8x64xf32>
    %284 = arith.index_cast %251 : i32 to index
    %c0_88 = arith.constant 0 : index
    %c64_89 = arith.constant 64 : index
    %285 = vector.load %arg7[%284, %c0_88, %c64_89] : memref<16x8x128xf32, #tpu.memory_space<vmem>>, vector<1x8x64xf32>
    %286 = vector.shape_cast %285 : vector<1x8x64xf32> to vector<8x64xf32>
    %287 = vector.shape_cast %283 : vector<8x64xf32> to vector<1x8x64xf32>
    tpu.vector_store %arg7[%284, %c0_88, %c64_89], %287 {strides = array<i32>} : memref<16x8x128xf32, #tpu.memory_space<vmem>>, vector<1x8x64xf32>,
    %c7_i32 = arith.constant 7 : i32
    %c15_i32_90 = arith.constant 15 : i32
    %288 = arith.subi %c15_i32_90, %c7_i32 : i32
    %289 = arith.truncf %277 : vector<8x128xf32> to vector<8x128xbf16>
    %cst_91 = arith.constant dense<0.000000e+00> : vector<8x512xf32>
    %290 = tpu.matmul %289, %7, %cst_91 {dimension_numbers = #tpu.dot_dimension_numbers<[1], [0], [0], [1], [0, 0, 1, 1], [], []>} : vector<8x128xbf16>, vector<128x512xbf16>, vector<8x512xf32> -> vector<8x512xf32>
    %c8_i32_92 = arith.constant 8 : i32
    %291 = arith.muli %c7_i32, %c8_i32_92 : i32
    %292 = arith.index_cast %291 : i32 to index
    %c0_93 = arith.constant 0 : index
    %293 = vector.load %arg9[%292, %c0_93] : memref<128x512xf32, #tpu.memory_space<vmem>>, vector<8x512xf32>
    %c8_i32_94 = arith.constant 8 : i32
    %294 = arith.muli %288, %c8_i32_94 : i32
    %295 = arith.index_cast %294 : i32 to index
    %c0_95 = arith.constant 0 : index
    %296 = vector.load %arg9[%295, %c0_95] : memref<128x512xf32, #tpu.memory_space<vmem>>, vector<8x512xf32>
    %297 = arith.select %26, %293, %296 : vector<8x512xi1>, vector<8x512xf32>
    %298 = arith.addf %290, %297 : vector<8x512xf32>
    %299 = vector.extract_strided_slice %298 {offsets = [0, 0], sizes = [8, 384], strides = [1, 1]} : vector<8x512xf32> to vector<8x384xf32>
    %300 = arith.negf %299 : vector<8x384xf32>
    %301 = math.exp %300 : vector<8x384xf32>
    %cst_96 = arith.constant 1.000000e+00 : f32
    %302 = vector.broadcast %cst_96 : f32 to vector<8x384xf32>
    %303 = arith.addf %302, %301 : vector<8x384xf32>
    %304 = arith.divf %302, %303 : vector<8x384xf32>
    %305 = vector.extract_strided_slice %304 {offsets = [0, 0], sizes = [8, 128], strides = [1, 1]} : vector<8x384xf32> to vector<8x128xf32>
    %306 = vector.extract_strided_slice %304 {offsets = [0, 128], sizes = [8, 128], strides = [1, 1]} : vector<8x384xf32> to vector<8x128xf32>
    %307 = vector.extract_strided_slice %304 {offsets = [0, 256], sizes = [8, 128], strides = [1, 1]} : vector<8x384xf32> to vector<8x128xf32>
    %308 = vector.extract_strided_slice %298 {offsets = [0, 384], sizes = [8, 128], strides = [1, 1]} : vector<8x512xf32> to vector<8x128xf32>
    %309 = math.tanh %308 : vector<8x128xf32>
    %310 = arith.mulf %306, %275 : vector<8x128xf32>
    %311 = arith.mulf %305, %309 : vector<8x128xf32>
    %312 = arith.addf %310, %311 : vector<8x128xf32>
    %313 = math.tanh %312 : vector<8x128xf32>
    %314 = arith.mulf %307, %313 : vector<8x128xf32>
    %315 = vector.extract_strided_slice %314 {offsets = [0, 0], sizes = [8, 64], strides = [1, 1]} : vector<8x128xf32> to vector<8x64xf32>
    %316 = arith.index_cast %c7_i32 : i32 to index
    %c0_97 = arith.constant 0 : index
    %c0_98 = arith.constant 0 : index
    %317 = vector.load %arg7[%316, %c0_97, %c0_98] : memref<16x8x128xf32, #tpu.memory_space<vmem>>, vector<1x8x64xf32>
    %318 = vector.shape_cast %317 : vector<1x8x64xf32> to vector<8x64xf32>
    %319 = vector.shape_cast %315 : vector<8x64xf32> to vector<1x8x64xf32>
    tpu.vector_store %arg7[%316, %c0_97, %c0_98], %319 {strides = array<i32>} : memref<16x8x128xf32, #tpu.memory_space<vmem>>, vector<1x8x64xf32>,
    %320 = vector.extract_strided_slice %314 {offsets = [0, 64], sizes = [8, 64], strides = [1, 1]} : vector<8x128xf32> to vector<8x64xf32>
    %321 = arith.index_cast %288 : i32 to index
    %c0_99 = arith.constant 0 : index
    %c64_100 = arith.constant 64 : index
    %322 = vector.load %arg7[%321, %c0_99, %c64_100] : memref<16x8x128xf32, #tpu.memory_space<vmem>>, vector<1x8x64xf32>
    %323 = vector.shape_cast %322 : vector<1x8x64xf32> to vector<8x64xf32>
    %324 = vector.shape_cast %320 : vector<8x64xf32> to vector<1x8x64xf32>
    tpu.vector_store %arg7[%321, %c0_99, %c64_100], %324 {strides = array<i32>} : memref<16x8x128xf32, #tpu.memory_space<vmem>>, vector<1x8x64xf32>,
    %c8_i32_101 = arith.constant 8 : i32
    %c15_i32_102 = arith.constant 15 : i32
    %325 = arith.subi %c15_i32_102, %c8_i32_101 : i32
    %326 = arith.truncf %314 : vector<8x128xf32> to vector<8x128xbf16>
    %cst_103 = arith.constant dense<0.000000e+00> : vector<8x512xf32>
    %327 = tpu.matmul %326, %7, %cst_103 {dimension_numbers = #tpu.dot_dimension_numbers<[1], [0], [0], [1], [0, 0, 1, 1], [], []>} : vector<8x128xbf16>, vector<128x512xbf16>, vector<8x512xf32> -> vector<8x512xf32>
    %c8_i32_104 = arith.constant 8 : i32
    %328 = arith.muli %c8_i32_101, %c8_i32_104 : i32
    %329 = arith.index_cast %328 : i32 to index
    %c0_105 = arith.constant 0 : index
    %330 = vector.load %arg9[%329, %c0_105] : memref<128x512xf32, #tpu.memory_space<vmem>>, vector<8x512xf32>
    %c8_i32_106 = arith.constant 8 : i32
    %331 = arith.muli %325, %c8_i32_106 : i32
    %332 = arith.index_cast %331 : i32 to index
    %c0_107 = arith.constant 0 : index
    %333 = vector.load %arg9[%332, %c0_107] : memref<128x512xf32, #tpu.memory_space<vmem>>, vector<8x512xf32>
    %334 = arith.select %26, %330, %333 : vector<8x512xi1>, vector<8x512xf32>
    %335 = arith.addf %327, %334 : vector<8x512xf32>
    %336 = vector.extract_strided_slice %335 {offsets = [0, 0], sizes = [8, 384], strides = [1, 1]} : vector<8x512xf32> to vector<8x384xf32>
    %337 = arith.negf %336 : vector<8x384xf32>
    %338 = math.exp %337 : vector<8x384xf32>
    %cst_108 = arith.constant 1.000000e+00 : f32
    %339 = vector.broadcast %cst_108 : f32 to vector<8x384xf32>
    %340 = arith.addf %339, %338 : vector<8x384xf32>
    %341 = arith.divf %339, %340 : vector<8x384xf32>
    %342 = vector.extract_strided_slice %341 {offsets = [0, 0], sizes = [8, 128], strides = [1, 1]} : vector<8x384xf32> to vector<8x128xf32>
    %343 = vector.extract_strided_slice %341 {offsets = [0, 128], sizes = [8, 128], strides = [1, 1]} : vector<8x384xf32> to vector<8x128xf32>
    %344 = vector.extract_strided_slice %341 {offsets = [0, 256], sizes = [8, 128], strides = [1, 1]} : vector<8x384xf32> to vector<8x128xf32>
    %345 = vector.extract_strided_slice %335 {offsets = [0, 384], sizes = [8, 128], strides = [1, 1]} : vector<8x512xf32> to vector<8x128xf32>
    %346 = math.tanh %345 : vector<8x128xf32>
    %347 = arith.mulf %343, %312 : vector<8x128xf32>
    %348 = arith.mulf %342, %346 : vector<8x128xf32>
    %349 = arith.addf %347, %348 : vector<8x128xf32>
    %350 = math.tanh %349 : vector<8x128xf32>
    %351 = arith.mulf %344, %350 : vector<8x128xf32>
    %352 = vector.extract_strided_slice %351 {offsets = [0, 0], sizes = [8, 64], strides = [1, 1]} : vector<8x128xf32> to vector<8x64xf32>
    %353 = arith.index_cast %c8_i32_101 : i32 to index
    %c0_109 = arith.constant 0 : index
    %c0_110 = arith.constant 0 : index
    %354 = vector.load %arg7[%353, %c0_109, %c0_110] : memref<16x8x128xf32, #tpu.memory_space<vmem>>, vector<1x8x64xf32>
    %355 = vector.shape_cast %354 : vector<1x8x64xf32> to vector<8x64xf32>
    %356 = vector.shape_cast %352 : vector<8x64xf32> to vector<1x8x64xf32>
    tpu.vector_store %arg7[%353, %c0_109, %c0_110], %356 {strides = array<i32>} : memref<16x8x128xf32, #tpu.memory_space<vmem>>, vector<1x8x64xf32>,
    %357 = vector.extract_strided_slice %351 {offsets = [0, 64], sizes = [8, 64], strides = [1, 1]} : vector<8x128xf32> to vector<8x64xf32>
    %358 = arith.index_cast %325 : i32 to index
    %c0_111 = arith.constant 0 : index
    %c64_112 = arith.constant 64 : index
    %359 = vector.load %arg7[%358, %c0_111, %c64_112] : memref<16x8x128xf32, #tpu.memory_space<vmem>>, vector<1x8x64xf32>
    %360 = vector.shape_cast %359 : vector<1x8x64xf32> to vector<8x64xf32>
    %361 = vector.shape_cast %357 : vector<8x64xf32> to vector<1x8x64xf32>
    tpu.vector_store %arg7[%358, %c0_111, %c64_112], %361 {strides = array<i32>} : memref<16x8x128xf32, #tpu.memory_space<vmem>>, vector<1x8x64xf32>,
    %c9_i32 = arith.constant 9 : i32
    %c15_i32_113 = arith.constant 15 : i32
    %362 = arith.subi %c15_i32_113, %c9_i32 : i32
    %363 = arith.truncf %351 : vector<8x128xf32> to vector<8x128xbf16>
    %cst_114 = arith.constant dense<0.000000e+00> : vector<8x512xf32>
    %364 = tpu.matmul %363, %7, %cst_114 {dimension_numbers = #tpu.dot_dimension_numbers<[1], [0], [0], [1], [0, 0, 1, 1], [], []>} : vector<8x128xbf16>, vector<128x512xbf16>, vector<8x512xf32> -> vector<8x512xf32>
    %c8_i32_115 = arith.constant 8 : i32
    %365 = arith.muli %c9_i32, %c8_i32_115 : i32
    %366 = arith.index_cast %365 : i32 to index
    %c0_116 = arith.constant 0 : index
    %367 = vector.load %arg9[%366, %c0_116] : memref<128x512xf32, #tpu.memory_space<vmem>>, vector<8x512xf32>
    %c8_i32_117 = arith.constant 8 : i32
    %368 = arith.muli %362, %c8_i32_117 : i32
    %369 = arith.index_cast %368 : i32 to index
    %c0_118 = arith.constant 0 : index
    %370 = vector.load %arg9[%369, %c0_118] : memref<128x512xf32, #tpu.memory_space<vmem>>, vector<8x512xf32>
    %371 = arith.select %26, %367, %370 : vector<8x512xi1>, vector<8x512xf32>
    %372 = arith.addf %364, %371 : vector<8x512xf32>
    %373 = vector.extract_strided_slice %372 {offsets = [0, 0], sizes = [8, 384], strides = [1, 1]} : vector<8x512xf32> to vector<8x384xf32>
    %374 = arith.negf %373 : vector<8x384xf32>
    %375 = math.exp %374 : vector<8x384xf32>
    %cst_119 = arith.constant 1.000000e+00 : f32
    %376 = vector.broadcast %cst_119 : f32 to vector<8x384xf32>
    %377 = arith.addf %376, %375 : vector<8x384xf32>
    %378 = arith.divf %376, %377 : vector<8x384xf32>
    %379 = vector.extract_strided_slice %378 {offsets = [0, 0], sizes = [8, 128], strides = [1, 1]} : vector<8x384xf32> to vector<8x128xf32>
    %380 = vector.extract_strided_slice %378 {offsets = [0, 128], sizes = [8, 128], strides = [1, 1]} : vector<8x384xf32> to vector<8x128xf32>
    %381 = vector.extract_strided_slice %378 {offsets = [0, 256], sizes = [8, 128], strides = [1, 1]} : vector<8x384xf32> to vector<8x128xf32>
    %382 = vector.extract_strided_slice %372 {offsets = [0, 384], sizes = [8, 128], strides = [1, 1]} : vector<8x512xf32> to vector<8x128xf32>
    %383 = math.tanh %382 : vector<8x128xf32>
    %384 = arith.mulf %380, %349 : vector<8x128xf32>
    %385 = arith.mulf %379, %383 : vector<8x128xf32>
    %386 = arith.addf %384, %385 : vector<8x128xf32>
    %387 = math.tanh %386 : vector<8x128xf32>
    %388 = arith.mulf %381, %387 : vector<8x128xf32>
    %389 = vector.extract_strided_slice %388 {offsets = [0, 0], sizes = [8, 64], strides = [1, 1]} : vector<8x128xf32> to vector<8x64xf32>
    %390 = arith.index_cast %c9_i32 : i32 to index
    %c0_120 = arith.constant 0 : index
    %c0_121 = arith.constant 0 : index
    %391 = vector.load %arg7[%390, %c0_120, %c0_121] : memref<16x8x128xf32, #tpu.memory_space<vmem>>, vector<1x8x64xf32>
    %392 = vector.shape_cast %391 : vector<1x8x64xf32> to vector<8x64xf32>
    %393 = vector.shape_cast %389 : vector<8x64xf32> to vector<1x8x64xf32>
    tpu.vector_store %arg7[%390, %c0_120, %c0_121], %393 {strides = array<i32>} : memref<16x8x128xf32, #tpu.memory_space<vmem>>, vector<1x8x64xf32>,
    %394 = vector.extract_strided_slice %388 {offsets = [0, 64], sizes = [8, 64], strides = [1, 1]} : vector<8x128xf32> to vector<8x64xf32>
    %395 = arith.index_cast %362 : i32 to index
    %c0_122 = arith.constant 0 : index
    %c64_123 = arith.constant 64 : index
    %396 = vector.load %arg7[%395, %c0_122, %c64_123] : memref<16x8x128xf32, #tpu.memory_space<vmem>>, vector<1x8x64xf32>
    %397 = vector.shape_cast %396 : vector<1x8x64xf32> to vector<8x64xf32>
    %398 = vector.shape_cast %394 : vector<8x64xf32> to vector<1x8x64xf32>
    tpu.vector_store %arg7[%395, %c0_122, %c64_123], %398 {strides = array<i32>} : memref<16x8x128xf32, #tpu.memory_space<vmem>>, vector<1x8x64xf32>,
    %c10_i32 = arith.constant 10 : i32
    %c15_i32_124 = arith.constant 15 : i32
    %399 = arith.subi %c15_i32_124, %c10_i32 : i32
    %400 = arith.truncf %388 : vector<8x128xf32> to vector<8x128xbf16>
    %cst_125 = arith.constant dense<0.000000e+00> : vector<8x512xf32>
    %401 = tpu.matmul %400, %7, %cst_125 {dimension_numbers = #tpu.dot_dimension_numbers<[1], [0], [0], [1], [0, 0, 1, 1], [], []>} : vector<8x128xbf16>, vector<128x512xbf16>, vector<8x512xf32> -> vector<8x512xf32>
    %c8_i32_126 = arith.constant 8 : i32
    %402 = arith.muli %c10_i32, %c8_i32_126 : i32
    %403 = arith.index_cast %402 : i32 to index
    %c0_127 = arith.constant 0 : index
    %404 = vector.load %arg9[%403, %c0_127] : memref<128x512xf32, #tpu.memory_space<vmem>>, vector<8x512xf32>
    %c8_i32_128 = arith.constant 8 : i32
    %405 = arith.muli %399, %c8_i32_128 : i32
    %406 = arith.index_cast %405 : i32 to index
    %c0_129 = arith.constant 0 : index
    %407 = vector.load %arg9[%406, %c0_129] : memref<128x512xf32, #tpu.memory_space<vmem>>, vector<8x512xf32>
    %408 = arith.select %26, %404, %407 : vector<8x512xi1>, vector<8x512xf32>
    %409 = arith.addf %401, %408 : vector<8x512xf32>
    %410 = vector.extract_strided_slice %409 {offsets = [0, 0], sizes = [8, 384], strides = [1, 1]} : vector<8x512xf32> to vector<8x384xf32>
    %411 = arith.negf %410 : vector<8x384xf32>
    %412 = math.exp %411 : vector<8x384xf32>
    %cst_130 = arith.constant 1.000000e+00 : f32
    %413 = vector.broadcast %cst_130 : f32 to vector<8x384xf32>
    %414 = arith.addf %413, %412 : vector<8x384xf32>
    %415 = arith.divf %413, %414 : vector<8x384xf32>
    %416 = vector.extract_strided_slice %415 {offsets = [0, 0], sizes = [8, 128], strides = [1, 1]} : vector<8x384xf32> to vector<8x128xf32>
    %417 = vector.extract_strided_slice %415 {offsets = [0, 128], sizes = [8, 128], strides = [1, 1]} : vector<8x384xf32> to vector<8x128xf32>
    %418 = vector.extract_strided_slice %415 {offsets = [0, 256], sizes = [8, 128], strides = [1, 1]} : vector<8x384xf32> to vector<8x128xf32>
    %419 = vector.extract_strided_slice %409 {offsets = [0, 384], sizes = [8, 128], strides = [1, 1]} : vector<8x512xf32> to vector<8x128xf32>
    %420 = math.tanh %419 : vector<8x128xf32>
    %421 = arith.mulf %417, %386 : vector<8x128xf32>
    %422 = arith.mulf %416, %420 : vector<8x128xf32>
    %423 = arith.addf %421, %422 : vector<8x128xf32>
    %424 = math.tanh %423 : vector<8x128xf32>
    %425 = arith.mulf %418, %424 : vector<8x128xf32>
    %426 = vector.extract_strided_slice %425 {offsets = [0, 0], sizes = [8, 64], strides = [1, 1]} : vector<8x128xf32> to vector<8x64xf32>
    %427 = arith.index_cast %c10_i32 : i32 to index
    %c0_131 = arith.constant 0 : index
    %c0_132 = arith.constant 0 : index
    %428 = vector.load %arg7[%427, %c0_131, %c0_132] : memref<16x8x128xf32, #tpu.memory_space<vmem>>, vector<1x8x64xf32>
    %429 = vector.shape_cast %428 : vector<1x8x64xf32> to vector<8x64xf32>
    %430 = vector.shape_cast %426 : vector<8x64xf32> to vector<1x8x64xf32>
    tpu.vector_store %arg7[%427, %c0_131, %c0_132], %430 {strides = array<i32>} : memref<16x8x128xf32, #tpu.memory_space<vmem>>, vector<1x8x64xf32>,
    %431 = vector.extract_strided_slice %425 {offsets = [0, 64], sizes = [8, 64], strides = [1, 1]} : vector<8x128xf32> to vector<8x64xf32>
    %432 = arith.index_cast %399 : i32 to index
    %c0_133 = arith.constant 0 : index
    %c64_134 = arith.constant 64 : index
    %433 = vector.load %arg7[%432, %c0_133, %c64_134] : memref<16x8x128xf32, #tpu.memory_space<vmem>>, vector<1x8x64xf32>
    %434 = vector.shape_cast %433 : vector<1x8x64xf32> to vector<8x64xf32>
    %435 = vector.shape_cast %431 : vector<8x64xf32> to vector<1x8x64xf32>
    tpu.vector_store %arg7[%432, %c0_133, %c64_134], %435 {strides = array<i32>} : memref<16x8x128xf32, #tpu.memory_space<vmem>>, vector<1x8x64xf32>,
    %c11_i32 = arith.constant 11 : i32
    %c15_i32_135 = arith.constant 15 : i32
    %436 = arith.subi %c15_i32_135, %c11_i32 : i32
    %437 = arith.truncf %425 : vector<8x128xf32> to vector<8x128xbf16>
    %cst_136 = arith.constant dense<0.000000e+00> : vector<8x512xf32>
    %438 = tpu.matmul %437, %7, %cst_136 {dimension_numbers = #tpu.dot_dimension_numbers<[1], [0], [0], [1], [0, 0, 1, 1], [], []>} : vector<8x128xbf16>, vector<128x512xbf16>, vector<8x512xf32> -> vector<8x512xf32>
    %c8_i32_137 = arith.constant 8 : i32
    %439 = arith.muli %c11_i32, %c8_i32_137 : i32
    %440 = arith.index_cast %439 : i32 to index
    %c0_138 = arith.constant 0 : index
    %441 = vector.load %arg9[%440, %c0_138] : memref<128x512xf32, #tpu.memory_space<vmem>>, vector<8x512xf32>
    %c8_i32_139 = arith.constant 8 : i32
    %442 = arith.muli %436, %c8_i32_139 : i32
    %443 = arith.index_cast %442 : i32 to index
    %c0_140 = arith.constant 0 : index
    %444 = vector.load %arg9[%443, %c0_140] : memref<128x512xf32, #tpu.memory_space<vmem>>, vector<8x512xf32>
    %445 = arith.select %26, %441, %444 : vector<8x512xi1>, vector<8x512xf32>
    %446 = arith.addf %438, %445 : vector<8x512xf32>
    %447 = vector.extract_strided_slice %446 {offsets = [0, 0], sizes = [8, 384], strides = [1, 1]} : vector<8x512xf32> to vector<8x384xf32>
    %448 = arith.negf %447 : vector<8x384xf32>
    %449 = math.exp %448 : vector<8x384xf32>
    %cst_141 = arith.constant 1.000000e+00 : f32
    %450 = vector.broadcast %cst_141 : f32 to vector<8x384xf32>
    %451 = arith.addf %450, %449 : vector<8x384xf32>
    %452 = arith.divf %450, %451 : vector<8x384xf32>
    %453 = vector.extract_strided_slice %452 {offsets = [0, 0], sizes = [8, 128], strides = [1, 1]} : vector<8x384xf32> to vector<8x128xf32>
    %454 = vector.extract_strided_slice %452 {offsets = [0, 128], sizes = [8, 128], strides = [1, 1]} : vector<8x384xf32> to vector<8x128xf32>
    %455 = vector.extract_strided_slice %452 {offsets = [0, 256], sizes = [8, 128], strides = [1, 1]} : vector<8x384xf32> to vector<8x128xf32>
    %456 = vector.extract_strided_slice %446 {offsets = [0, 384], sizes = [8, 128], strides = [1, 1]} : vector<8x512xf32> to vector<8x128xf32>
    %457 = math.tanh %456 : vector<8x128xf32>
    %458 = arith.mulf %454, %423 : vector<8x128xf32>
    %459 = arith.mulf %453, %457 : vector<8x128xf32>
    %460 = arith.addf %458, %459 : vector<8x128xf32>
    %461 = math.tanh %460 : vector<8x128xf32>
    %462 = arith.mulf %455, %461 : vector<8x128xf32>
    %463 = vector.extract_strided_slice %462 {offsets = [0, 0], sizes = [8, 64], strides = [1, 1]} : vector<8x128xf32> to vector<8x64xf32>
    %464 = arith.index_cast %c11_i32 : i32 to index
    %c0_142 = arith.constant 0 : index
    %c0_143 = arith.constant 0 : index
    %465 = vector.load %arg7[%464, %c0_142, %c0_143] : memref<16x8x128xf32, #tpu.memory_space<vmem>>, vector<1x8x64xf32>
    %466 = vector.shape_cast %465 : vector<1x8x64xf32> to vector<8x64xf32>
    %467 = vector.shape_cast %463 : vector<8x64xf32> to vector<1x8x64xf32>
    tpu.vector_store %arg7[%464, %c0_142, %c0_143], %467 {strides = array<i32>} : memref<16x8x128xf32, #tpu.memory_space<vmem>>, vector<1x8x64xf32>,
    %468 = vector.extract_strided_slice %462 {offsets = [0, 64], sizes = [8, 64], strides = [1, 1]} : vector<8x128xf32> to vector<8x64xf32>
    %469 = arith.index_cast %436 : i32 to index
    %c0_144 = arith.constant 0 : index
    %c64_145 = arith.constant 64 : index
    %470 = vector.load %arg7[%469, %c0_144, %c64_145] : memref<16x8x128xf32, #tpu.memory_space<vmem>>, vector<1x8x64xf32>
    %471 = vector.shape_cast %470 : vector<1x8x64xf32> to vector<8x64xf32>
    %472 = vector.shape_cast %468 : vector<8x64xf32> to vector<1x8x64xf32>
    tpu.vector_store %arg7[%469, %c0_144, %c64_145], %472 {strides = array<i32>} : memref<16x8x128xf32, #tpu.memory_space<vmem>>, vector<1x8x64xf32>,
    %c12_i32 = arith.constant 12 : i32
    %c15_i32_146 = arith.constant 15 : i32
    %473 = arith.subi %c15_i32_146, %c12_i32 : i32
    %474 = arith.truncf %462 : vector<8x128xf32> to vector<8x128xbf16>
    %cst_147 = arith.constant dense<0.000000e+00> : vector<8x512xf32>
    %475 = tpu.matmul %474, %7, %cst_147 {dimension_numbers = #tpu.dot_dimension_numbers<[1], [0], [0], [1], [0, 0, 1, 1], [], []>} : vector<8x128xbf16>, vector<128x512xbf16>, vector<8x512xf32> -> vector<8x512xf32>
    %c8_i32_148 = arith.constant 8 : i32
    %476 = arith.muli %c12_i32, %c8_i32_148 : i32
    %477 = arith.index_cast %476 : i32 to index
    %c0_149 = arith.constant 0 : index
    %478 = vector.load %arg9[%477, %c0_149] : memref<128x512xf32, #tpu.memory_space<vmem>>, vector<8x512xf32>
    %c8_i32_150 = arith.constant 8 : i32
    %479 = arith.muli %473, %c8_i32_150 : i32
    %480 = arith.index_cast %479 : i32 to index
    %c0_151 = arith.constant 0 : index
    %481 = vector.load %arg9[%480, %c0_151] : memref<128x512xf32, #tpu.memory_space<vmem>>, vector<8x512xf32>
    %482 = arith.select %26, %478, %481 : vector<8x512xi1>, vector<8x512xf32>
    %483 = arith.addf %475, %482 : vector<8x512xf32>
    %484 = vector.extract_strided_slice %483 {offsets = [0, 0], sizes = [8, 384], strides = [1, 1]} : vector<8x512xf32> to vector<8x384xf32>
    %485 = arith.negf %484 : vector<8x384xf32>
    %486 = math.exp %485 : vector<8x384xf32>
    %cst_152 = arith.constant 1.000000e+00 : f32
    %487 = vector.broadcast %cst_152 : f32 to vector<8x384xf32>
    %488 = arith.addf %487, %486 : vector<8x384xf32>
    %489 = arith.divf %487, %488 : vector<8x384xf32>
    %490 = vector.extract_strided_slice %489 {offsets = [0, 0], sizes = [8, 128], strides = [1, 1]} : vector<8x384xf32> to vector<8x128xf32>
    %491 = vector.extract_strided_slice %489 {offsets = [0, 128], sizes = [8, 128], strides = [1, 1]} : vector<8x384xf32> to vector<8x128xf32>
    %492 = vector.extract_strided_slice %489 {offsets = [0, 256], sizes = [8, 128], strides = [1, 1]} : vector<8x384xf32> to vector<8x128xf32>
    %493 = vector.extract_strided_slice %483 {offsets = [0, 384], sizes = [8, 128], strides = [1, 1]} : vector<8x512xf32> to vector<8x128xf32>
    %494 = math.tanh %493 : vector<8x128xf32>
    %495 = arith.mulf %491, %460 : vector<8x128xf32>
    %496 = arith.mulf %490, %494 : vector<8x128xf32>
    %497 = arith.addf %495, %496 : vector<8x128xf32>
    %498 = math.tanh %497 : vector<8x128xf32>
    %499 = arith.mulf %492, %498 : vector<8x128xf32>
    %500 = vector.extract_strided_slice %499 {offsets = [0, 0], sizes = [8, 64], strides = [1, 1]} : vector<8x128xf32> to vector<8x64xf32>
    %501 = arith.index_cast %c12_i32 : i32 to index
    %c0_153 = arith.constant 0 : index
    %c0_154 = arith.constant 0 : index
    %502 = vector.load %arg7[%501, %c0_153, %c0_154] : memref<16x8x128xf32, #tpu.memory_space<vmem>>, vector<1x8x64xf32>
    %503 = vector.shape_cast %502 : vector<1x8x64xf32> to vector<8x64xf32>
    %504 = vector.shape_cast %500 : vector<8x64xf32> to vector<1x8x64xf32>
    tpu.vector_store %arg7[%501, %c0_153, %c0_154], %504 {strides = array<i32>} : memref<16x8x128xf32, #tpu.memory_space<vmem>>, vector<1x8x64xf32>,
    %505 = vector.extract_strided_slice %499 {offsets = [0, 64], sizes = [8, 64], strides = [1, 1]} : vector<8x128xf32> to vector<8x64xf32>
    %506 = arith.index_cast %473 : i32 to index
    %c0_155 = arith.constant 0 : index
    %c64_156 = arith.constant 64 : index
    %507 = vector.load %arg7[%506, %c0_155, %c64_156] : memref<16x8x128xf32, #tpu.memory_space<vmem>>, vector<1x8x64xf32>
    %508 = vector.shape_cast %507 : vector<1x8x64xf32> to vector<8x64xf32>
    %509 = vector.shape_cast %505 : vector<8x64xf32> to vector<1x8x64xf32>
    tpu.vector_store %arg7[%506, %c0_155, %c64_156], %509 {strides = array<i32>} : memref<16x8x128xf32, #tpu.memory_space<vmem>>, vector<1x8x64xf32>,
    %c13_i32 = arith.constant 13 : i32
    %c15_i32_157 = arith.constant 15 : i32
    %510 = arith.subi %c15_i32_157, %c13_i32 : i32
    %511 = arith.truncf %499 : vector<8x128xf32> to vector<8x128xbf16>
    %cst_158 = arith.constant dense<0.000000e+00> : vector<8x512xf32>
    %512 = tpu.matmul %511, %7, %cst_158 {dimension_numbers = #tpu.dot_dimension_numbers<[1], [0], [0], [1], [0, 0, 1, 1], [], []>} : vector<8x128xbf16>, vector<128x512xbf16>, vector<8x512xf32> -> vector<8x512xf32>
    %c8_i32_159 = arith.constant 8 : i32
    %513 = arith.muli %c13_i32, %c8_i32_159 : i32
    %514 = arith.index_cast %513 : i32 to index
    %c0_160 = arith.constant 0 : index
    %515 = vector.load %arg9[%514, %c0_160] : memref<128x512xf32, #tpu.memory_space<vmem>>, vector<8x512xf32>
    %c8_i32_161 = arith.constant 8 : i32
    %516 = arith.muli %510, %c8_i32_161 : i32
    %517 = arith.index_cast %516 : i32 to index
    %c0_162 = arith.constant 0 : index
    %518 = vector.load %arg9[%517, %c0_162] : memref<128x512xf32, #tpu.memory_space<vmem>>, vector<8x512xf32>
    %519 = arith.select %26, %515, %518 : vector<8x512xi1>, vector<8x512xf32>
    %520 = arith.addf %512, %519 : vector<8x512xf32>
    %521 = vector.extract_strided_slice %520 {offsets = [0, 0], sizes = [8, 384], strides = [1, 1]} : vector<8x512xf32> to vector<8x384xf32>
    %522 = arith.negf %521 : vector<8x384xf32>
    %523 = math.exp %522 : vector<8x384xf32>
    %cst_163 = arith.constant 1.000000e+00 : f32
    %524 = vector.broadcast %cst_163 : f32 to vector<8x384xf32>
    %525 = arith.addf %524, %523 : vector<8x384xf32>
    %526 = arith.divf %524, %525 : vector<8x384xf32>
    %527 = vector.extract_strided_slice %526 {offsets = [0, 0], sizes = [8, 128], strides = [1, 1]} : vector<8x384xf32> to vector<8x128xf32>
    %528 = vector.extract_strided_slice %526 {offsets = [0, 128], sizes = [8, 128], strides = [1, 1]} : vector<8x384xf32> to vector<8x128xf32>
    %529 = vector.extract_strided_slice %526 {offsets = [0, 256], sizes = [8, 128], strides = [1, 1]} : vector<8x384xf32> to vector<8x128xf32>
    %530 = vector.extract_strided_slice %520 {offsets = [0, 384], sizes = [8, 128], strides = [1, 1]} : vector<8x512xf32> to vector<8x128xf32>
    %531 = math.tanh %530 : vector<8x128xf32>
    %532 = arith.mulf %528, %497 : vector<8x128xf32>
    %533 = arith.mulf %527, %531 : vector<8x128xf32>
    %534 = arith.addf %532, %533 : vector<8x128xf32>
    %535 = math.tanh %534 : vector<8x128xf32>
    %536 = arith.mulf %529, %535 : vector<8x128xf32>
    %537 = vector.extract_strided_slice %536 {offsets = [0, 0], sizes = [8, 64], strides = [1, 1]} : vector<8x128xf32> to vector<8x64xf32>
    %538 = arith.index_cast %c13_i32 : i32 to index
    %c0_164 = arith.constant 0 : index
    %c0_165 = arith.constant 0 : index
    %539 = vector.load %arg7[%538, %c0_164, %c0_165] : memref<16x8x128xf32, #tpu.memory_space<vmem>>, vector<1x8x64xf32>
    %540 = vector.shape_cast %539 : vector<1x8x64xf32> to vector<8x64xf32>
    %541 = vector.shape_cast %537 : vector<8x64xf32> to vector<1x8x64xf32>
    tpu.vector_store %arg7[%538, %c0_164, %c0_165], %541 {strides = array<i32>} : memref<16x8x128xf32, #tpu.memory_space<vmem>>, vector<1x8x64xf32>,
    %542 = vector.extract_strided_slice %536 {offsets = [0, 64], sizes = [8, 64], strides = [1, 1]} : vector<8x128xf32> to vector<8x64xf32>
    %543 = arith.index_cast %510 : i32 to index
    %c0_166 = arith.constant 0 : index
    %c64_167 = arith.constant 64 : index
    %544 = vector.load %arg7[%543, %c0_166, %c64_167] : memref<16x8x128xf32, #tpu.memory_space<vmem>>, vector<1x8x64xf32>
    %545 = vector.shape_cast %544 : vector<1x8x64xf32> to vector<8x64xf32>
    %546 = vector.shape_cast %542 : vector<8x64xf32> to vector<1x8x64xf32>
    tpu.vector_store %arg7[%543, %c0_166, %c64_167], %546 {strides = array<i32>} : memref<16x8x128xf32, #tpu.memory_space<vmem>>, vector<1x8x64xf32>,
    %c14_i32 = arith.constant 14 : i32
    %c15_i32_168 = arith.constant 15 : i32
    %547 = arith.subi %c15_i32_168, %c14_i32 : i32
    %548 = arith.truncf %536 : vector<8x128xf32> to vector<8x128xbf16>
    %cst_169 = arith.constant dense<0.000000e+00> : vector<8x512xf32>
    %549 = tpu.matmul %548, %7, %cst_169 {dimension_numbers = #tpu.dot_dimension_numbers<[1], [0], [0], [1], [0, 0, 1, 1], [], []>} : vector<8x128xbf16>, vector<128x512xbf16>, vector<8x512xf32> -> vector<8x512xf32>
    %c8_i32_170 = arith.constant 8 : i32
    %550 = arith.muli %c14_i32, %c8_i32_170 : i32
    %551 = arith.index_cast %550 : i32 to index
    %c0_171 = arith.constant 0 : index
    %552 = vector.load %arg9[%551, %c0_171] : memref<128x512xf32, #tpu.memory_space<vmem>>, vector<8x512xf32>
    %c8_i32_172 = arith.constant 8 : i32
    %553 = arith.muli %547, %c8_i32_172 : i32
    %554 = arith.index_cast %553 : i32 to index
    %c0_173 = arith.constant 0 : index
    %555 = vector.load %arg9[%554, %c0_173] : memref<128x512xf32, #tpu.memory_space<vmem>>, vector<8x512xf32>
    %556 = arith.select %26, %552, %555 : vector<8x512xi1>, vector<8x512xf32>
    %557 = arith.addf %549, %556 : vector<8x512xf32>
    %558 = vector.extract_strided_slice %557 {offsets = [0, 0], sizes = [8, 384], strides = [1, 1]} : vector<8x512xf32> to vector<8x384xf32>
    %559 = arith.negf %558 : vector<8x384xf32>
    %560 = math.exp %559 : vector<8x384xf32>
    %cst_174 = arith.constant 1.000000e+00 : f32
    %561 = vector.broadcast %cst_174 : f32 to vector<8x384xf32>
    %562 = arith.addf %561, %560 : vector<8x384xf32>
    %563 = arith.divf %561, %562 : vector<8x384xf32>
    %564 = vector.extract_strided_slice %563 {offsets = [0, 0], sizes = [8, 128], strides = [1, 1]} : vector<8x384xf32> to vector<8x128xf32>
    %565 = vector.extract_strided_slice %563 {offsets = [0, 128], sizes = [8, 128], strides = [1, 1]} : vector<8x384xf32> to vector<8x128xf32>
    %566 = vector.extract_strided_slice %563 {offsets = [0, 256], sizes = [8, 128], strides = [1, 1]} : vector<8x384xf32> to vector<8x128xf32>
    %567 = vector.extract_strided_slice %557 {offsets = [0, 384], sizes = [8, 128], strides = [1, 1]} : vector<8x512xf32> to vector<8x128xf32>
    %568 = math.tanh %567 : vector<8x128xf32>
    %569 = arith.mulf %565, %534 : vector<8x128xf32>
    %570 = arith.mulf %564, %568 : vector<8x128xf32>
    %571 = arith.addf %569, %570 : vector<8x128xf32>
    %572 = math.tanh %571 : vector<8x128xf32>
    %573 = arith.mulf %566, %572 : vector<8x128xf32>
    %574 = vector.extract_strided_slice %573 {offsets = [0, 0], sizes = [8, 64], strides = [1, 1]} : vector<8x128xf32> to vector<8x64xf32>
    %575 = arith.index_cast %c14_i32 : i32 to index
    %c0_175 = arith.constant 0 : index
    %c0_176 = arith.constant 0 : index
    %576 = vector.load %arg7[%575, %c0_175, %c0_176] : memref<16x8x128xf32, #tpu.memory_space<vmem>>, vector<1x8x64xf32>
    %577 = vector.shape_cast %576 : vector<1x8x64xf32> to vector<8x64xf32>
    %578 = vector.shape_cast %574 : vector<8x64xf32> to vector<1x8x64xf32>
    tpu.vector_store %arg7[%575, %c0_175, %c0_176], %578 {strides = array<i32>} : memref<16x8x128xf32, #tpu.memory_space<vmem>>, vector<1x8x64xf32>,
    %579 = vector.extract_strided_slice %573 {offsets = [0, 64], sizes = [8, 64], strides = [1, 1]} : vector<8x128xf32> to vector<8x64xf32>
    %580 = arith.index_cast %547 : i32 to index
    %c0_177 = arith.constant 0 : index
    %c64_178 = arith.constant 64 : index
    %581 = vector.load %arg7[%580, %c0_177, %c64_178] : memref<16x8x128xf32, #tpu.memory_space<vmem>>, vector<1x8x64xf32>
    %582 = vector.shape_cast %581 : vector<1x8x64xf32> to vector<8x64xf32>
    %583 = vector.shape_cast %579 : vector<8x64xf32> to vector<1x8x64xf32>
    tpu.vector_store %arg7[%580, %c0_177, %c64_178], %583 {strides = array<i32>} : memref<16x8x128xf32, #tpu.memory_space<vmem>>, vector<1x8x64xf32>,
    %c15_i32_179 = arith.constant 15 : i32
    %c15_i32_180 = arith.constant 15 : i32
    %584 = arith.subi %c15_i32_180, %c15_i32_179 : i32
    %585 = arith.truncf %573 : vector<8x128xf32> to vector<8x128xbf16>
    %cst_181 = arith.constant dense<0.000000e+00> : vector<8x512xf32>
    %586 = tpu.matmul %585, %7, %cst_181 {dimension_numbers = #tpu.dot_dimension_numbers<[1], [0], [0], [1], [0, 0, 1, 1], [], []>} : vector<8x128xbf16>, vector<128x512xbf16>, vector<8x512xf32> -> vector<8x512xf32>
    %c8_i32_182 = arith.constant 8 : i32
    %587 = arith.muli %c15_i32_179, %c8_i32_182 : i32
    %588 = arith.index_cast %587 : i32 to index
    %c0_183 = arith.constant 0 : index
    %589 = vector.load %arg9[%588, %c0_183] : memref<128x512xf32, #tpu.memory_space<vmem>>, vector<8x512xf32>
    %c8_i32_184 = arith.constant 8 : i32
    %590 = arith.muli %584, %c8_i32_184 : i32
    %591 = arith.index_cast %590 : i32 to index
    %c0_185 = arith.constant 0 : index
    %592 = vector.load %arg9[%591, %c0_185] : memref<128x512xf32, #tpu.memory_space<vmem>>, vector<8x512xf32>
    %593 = arith.select %26, %589, %592 : vector<8x512xi1>, vector<8x512xf32>
    %594 = arith.addf %586, %593 : vector<8x512xf32>
    %595 = vector.extract_strided_slice %594 {offsets = [0, 0], sizes = [8, 384], strides = [1, 1]} : vector<8x512xf32> to vector<8x384xf32>
    %596 = arith.negf %595 : vector<8x384xf32>
    %597 = math.exp %596 : vector<8x384xf32>
    %cst_186 = arith.constant 1.000000e+00 : f32
    %598 = vector.broadcast %cst_186 : f32 to vector<8x384xf32>
    %599 = arith.addf %598, %597 : vector<8x384xf32>
    %600 = arith.divf %598, %599 : vector<8x384xf32>
    %601 = vector.extract_strided_slice %600 {offsets = [0, 0], sizes = [8, 128], strides = [1, 1]} : vector<8x384xf32> to vector<8x128xf32>
    %602 = vector.extract_strided_slice %600 {offsets = [0, 128], sizes = [8, 128], strides = [1, 1]} : vector<8x384xf32> to vector<8x128xf32>
    %603 = vector.extract_strided_slice %600 {offsets = [0, 256], sizes = [8, 128], strides = [1, 1]} : vector<8x384xf32> to vector<8x128xf32>
    %604 = vector.extract_strided_slice %594 {offsets = [0, 384], sizes = [8, 128], strides = [1, 1]} : vector<8x512xf32> to vector<8x128xf32>
    %605 = math.tanh %604 : vector<8x128xf32>
    %606 = arith.mulf %602, %571 : vector<8x128xf32>
    %607 = arith.mulf %601, %605 : vector<8x128xf32>
    %608 = arith.addf %606, %607 : vector<8x128xf32>
    %609 = math.tanh %608 : vector<8x128xf32>
    %610 = arith.mulf %603, %609 : vector<8x128xf32>
    %611 = vector.extract_strided_slice %610 {offsets = [0, 0], sizes = [8, 64], strides = [1, 1]} : vector<8x128xf32> to vector<8x64xf32>
    %612 = arith.index_cast %c15_i32_179 : i32 to index
    %c0_187 = arith.constant 0 : index
    %c0_188 = arith.constant 0 : index
    %613 = vector.load %arg7[%612, %c0_187, %c0_188] : memref<16x8x128xf32, #tpu.memory_space<vmem>>, vector<1x8x64xf32>
    %614 = vector.shape_cast %613 : vector<1x8x64xf32> to vector<8x64xf32>
    %615 = vector.shape_cast %611 : vector<8x64xf32> to vector<1x8x64xf32>
    tpu.vector_store %arg7[%612, %c0_187, %c0_188], %615 {strides = array<i32>} : memref<16x8x128xf32, #tpu.memory_space<vmem>>, vector<1x8x64xf32>,
    %616 = vector.extract_strided_slice %610 {offsets = [0, 64], sizes = [8, 64], strides = [1, 1]} : vector<8x128xf32> to vector<8x64xf32>
    %617 = arith.index_cast %584 : i32 to index
    %c0_189 = arith.constant 0 : index
    %c64_190 = arith.constant 64 : index
    %618 = vector.load %arg7[%617, %c0_189, %c64_190] : memref<16x8x128xf32, #tpu.memory_space<vmem>>, vector<1x8x64xf32>
    %619 = vector.shape_cast %618 : vector<1x8x64xf32> to vector<8x64xf32>
    %620 = vector.shape_cast %616 : vector<8x64xf32> to vector<1x8x64xf32>
    tpu.vector_store %arg7[%617, %c0_189, %c64_190], %620 {strides = array<i32>} : memref<16x8x128xf32, #tpu.memory_space<vmem>>, vector<1x8x64xf32>,
    %c16_i32 = arith.constant 16 : i32
    %621 = arith.truncf %610 : vector<8x128xf32> to vector<8x128xbf16>
    %c0_191 = arith.constant 0 : index
    %c0_192 = arith.constant 0 : index
    %622 = vector.load %arg5[%c0_191, %c0_192] : memref<128x64xbf16, #tpu.memory_space<vmem>>, vector<128x64xbf16>
    %cst_193 = arith.constant dense<0.000000e+00> : vector<8x64xf32>
    %623 = tpu.matmul %621, %622, %cst_193 {dimension_numbers = #tpu.dot_dimension_numbers<[1], [0], [0], [1], [0, 0, 1, 1], [], []>} : vector<8x128xbf16>, vector<128x64xbf16>, vector<8x64xf32> -> vector<8x64xf32>
    %c0_194 = arith.constant 0 : index
    %c0_195 = arith.constant 0 : index
    %624 = vector.load %arg6[%c0_194, %c0_195] : memref<1x64xf32, #tpu.memory_space<vmem>>, vector<1x64xf32>
    %625 = vector.broadcast %624 : vector<1x64xf32> to vector<8x64xf32>
    %626 = arith.addf %623, %625 : vector<8x64xf32>
    %627 = math.tanh %626 : vector<8x64xf32>
    %c0_196 = arith.constant 0 : index
    %c0_197 = arith.constant 0 : index
    %628 = vector.load %arg8[%c0_196, %c0_197] : memref<8x64xf32, #tpu.memory_space<vmem>>, vector<8x64xf32>
    tpu.vector_store %arg8[%c0_196, %c0_197], %627 {strides = array<i32>} : memref<8x64xf32, #tpu.memory_space<vmem>>, vector<8x64xf32>,
    return
  }
  func.func @transform_0(%arg0: i32) -> (i32, i32) {
    %c0_i32 = arith.constant 0 : i32
    %c0_i32_0 = arith.constant 0 : i32
    %c0_i32_1 = arith.constant 0 : i32
    return %c0_i32, %c0_i32_0 : i32, i32
  }
  func.func @transform_1(%arg0: i32) -> (i32, i32) {
    %c0_i32 = arith.constant 0 : i32
    %c0_i32_0 = arith.constant 0 : i32
    %c0_i32_1 = arith.constant 0 : i32
    return %c0_i32, %c0_i32_0 : i32, i32
  }
  func.func @transform_2(%arg0: i32) -> (i32, i32) {
    %c0_i32 = arith.constant 0 : i32
    %c0_i32_0 = arith.constant 0 : i32
    %c0_i32_1 = arith.constant 0 : i32
    return %c0_i32, %c0_i32_0 : i32, i32
  }
  func.func @transform_3(%arg0: i32) -> (i32, i32) {
    %c0_i32 = arith.constant 0 : i32
    %c0_i32_0 = arith.constant 0 : i32
    %c0_i32_1 = arith.constant 0 : i32
    return %c0_i32, %c0_i32_0 : i32, i32
  }
  func.func @transform_4(%arg0: i32) -> (i32, i32) {
    %c0_i32 = arith.constant 0 : i32
    %c0_i32_0 = arith.constant 0 : i32
    %c0_i32_1 = arith.constant 0 : i32
    return %c0_i32, %c0_i32_0 : i32, i32
  }
  func.func @transform_5(%arg0: i32) -> (i32, i32) {
    %c0_i32 = arith.constant 0 : i32
    %c0_i32_0 = arith.constant 0 : i32
    %c0_i32_1 = arith.constant 0 : i32
    return %c0_i32, %c0_i32_0 : i32, i32
  }
  func.func @transform_6(%arg0: i32) -> (i32, i32, i32) {
    %c0_i32 = arith.constant 0 : i32
    %c0_i32_0 = arith.constant 0 : i32
    %c0_i32_1 = arith.constant 0 : i32
    %c0_i32_2 = arith.constant 0 : i32
    return %c0_i32, %c0_i32_0, %c0_i32_1 : i32, i32, i32
  }
  func.func @transform_7(%arg0: i32) -> (i32, i32) {
    %c0_i32 = arith.constant 0 : i32
    %c0_i32_0 = arith.constant 0 : i32
    %c0_i32_1 = arith.constant 0 : i32
    return %c0_i32, %c0_i32_0 : i32, i32
  }
}

</mosaic_0001>

<bundles_post_ra>
// kernel: encoder_forward.1
= control target key start
LH: loop header
LB: loop body
LE: loop exit
PB: predicated region body
PF: predicated region fallthrough
CT: control target
= control target key end

     0   :  { %13 = vsyncpa [#allocation4], 0  ;;  %s5549_s0 = inlined_call_operand.vmem [shape: bf16[128,64], index: 0, kind: input, shape index: {}]   ;;  %s5550_s1 = inlined_call_operand.vmem [shape: bf16[64,512], index: 1, kind: input, shape index: {}]   ;;  %s5551_s2 = inlined_call_operand.vmem [shape: bf16[128,512], index: 2, kind: input, shape index: {}]   ;;  %s5552_s3 = inlined_call_operand.vmem [shape: f32[1,512], index: 3, kind: input, shape index: {}]   ;;  %s5553_s4 = inlined_call_operand.vmem [shape: bf16[128,64], index: 4, kind: input, shape index: {}]   ;;  %s5554_s5 = inlined_call_operand.vmem [shape: f32[1,64], index: 5, kind: input, shape index: {}]   ;;  %s5555_s6 = inlined_call_operand.hbm [shape: f32[16,8,128], index: 6, kind: output, shape index: {0}]   ;;  %s5556_s7 = inlined_call_operand.hbm [shape: f32[8,64], index: 7, kind: output, shape index: {1}]  }
   0x1   :  { %v3019_v0 = vld [vmem:[%s5550_s1 + $0x60] sm:$0xf]  ;;  %v3295_v1 = vld [vmem:[%s5550_s1 + $0x6c] sm:$0xf0]  ;;  %v3027_v2 = vld [vmem:[%s5550_s1 + $0x68] sm:$0xf] }
   0x2   :  { %v3020_v3 = vor.u32 %v3295_v1, %v3019_v0  ;;  %v3296_v4 = vld [vmem:[%s5550_s1 + $0x74] sm:$0xf0]  ;;  %v3294_v5 = vld [vmem:[%s5550_s1 + $0x6c] sm:$0xf]  ;;  %v3029_v6 = vld [vmem:[%s5550_s1 + $0x78] sm:$0xf0] }
   0x3   :  { %v3028_v7 = vor.u32 %v3296_v4, %v3027_v2  ;;  %v3032_v8 = vor.u32 %v3294_v5, %v3029_v6  ;;  %v3003_v9 = vld [vmem:[%s5550_s1 + $0x40] sm:$0xf]  ;;  %v3291_v10 = vld [vmem:[%s5550_s1 + $0x4c] sm:$0xf0]  ;;  %v3011_v11 = vld [vmem:[%s5550_s1 + $0x48] sm:$0xf] }
   0x4   :  { %219 = vmatpush.bf16.msra.mxu0 %v3020_v3  ;;  %3337 = vmatpush.bf16.msra.mxu1 %v3020_v3  ;;  %v3004_v12 = vor.u32 %v3291_v10, %v3003_v9  ;;  %v3292_v13 = vld [vmem:[%s5550_s1 + $0x54] sm:$0xf0]  ;;  %v3290_v14 = vld [vmem:[%s5550_s1 + $0x4c] sm:$0xf]  ;;  %v3013_v15 = vld [vmem:[%s5550_s1 + $0x58] sm:$0xf0] }
   0x5   :  { %317 = vmatpush.bf16.msra.mxu2 %v3028_v7  ;;  %366 = vmatpush.bf16.msra.mxu3 %v3032_v8  ;;  %v3012_v16 = vor.u32 %v3292_v13, %v3011_v11  ;;  %v3016_v17 = vor.u32 %v3290_v14, %v3013_v15  ;;  %v2987_v18 = vld [vmem:[%s5550_s1 + $0x20] sm:$0xf]  ;;  %v3287_v19 = vld [vmem:[%s5550_s1 + $0x2c] sm:$0xf0]  ;;  %v2995_v20 = vld [vmem:[%s5550_s1 + $0x28] sm:$0xf] }
   0x6   :  { %v3288_v21 = vld [vmem:[%s5550_s1 + $0x34] sm:$0xf0]  ;;  %v3286_v22 = vld [vmem:[%s5550_s1 + $0x2c] sm:$0xf]  ;;  %v2997_v23 = vld [vmem:[%s5550_s1 + $0x38] sm:$0xf0]  ;;  %v2988_v24 = vor.u32 %v3287_v19, %v2987_v18 }
   0x7   :  { %v2996_v25 = vor.u32 %v3288_v21, %v2995_v20  ;;  %v3000_v26 = vor.u32 %v3286_v22, %v2997_v23  ;;  %v2971_v27 = vld [vmem:[%s5550_s1] sm:$0xf]  ;;  %v3283_v28 = vld [vmem:[%s5550_s1 + $0xc] sm:$0xf0]  ;;  %v2979_v29 = vld [vmem:[%s5550_s1 + $0x8] sm:$0xf] }
   0x8   :  { %220 = vmatpush.bf16.msra.mxu0 %v3004_v12  ;;  %3338 = vmatpush.bf16.msra.mxu1 %v3004_v12  ;;  %v3284_v30 = vld [vmem:[%s5550_s1 + $0x14] sm:$0xf0]  ;;  %v3282_v31 = vld [vmem:[%s5550_s1 + $0xc] sm:$0xf]  ;;  %v2981_v32 = vld [vmem:[%s5550_s1 + $0x18] sm:$0xf0]  ;;  %v2972_v35 = vor.u32 %v3283_v28, %v2971_v27 }
   0x9   :  { %318 = vmatpush.bf16.msra.mxu2 %v3012_v16  ;;  %367 = vmatpush.bf16.msra.mxu3 %v3016_v17  ;;  %v3293_v33 = vld [vmem:[%s5550_s1 + $0x64] sm:$0xf]  ;;  %v3021_v34 = vld [vmem:[%s5550_s1 + $0x70] sm:$0xf0]  ;;  %v2980_v36 = vor.u32 %v3284_v30, %v2979_v29  ;;  %v2984_v37 = vor.u32 %v3282_v31, %v2981_v32  ;;  %v3786_v39 = vld [vmem:[%s5549_s0 + $0x38] sm:$0xff] }
   0xa   :  { %v3273_v38 = vld [vmem:[%s5549_s0] sm:$0xff]  ;;  %v3187_v40 = vld [vmem:[%s5551_s2 + $0xe8] sm:$0xf]  ;;  %v3328_v41 = vld [vmem:[%s5551_s2 + $0xf4] sm:$0xf0]  ;;  %v3024_v42 = vor.u32 %v3293_v33, %v3021_v34 }
   0xb   :  { %v3289_v43 = vld [vmem:[%s5550_s1 + $0x44] sm:$0xf]  ;;  %v3797_v44 = vor.u32 %v3328_v41, %v3187_v40  ;;  %v3326_v45 = vld [vmem:[%s5551_s2 + $0xec] sm:$0xf]  ;;  %v3189_v46 = vld [vmem:[%s5551_s2 + $0xf8] sm:$0xf0] }
   0xc   :  { %221 = vmatpush.bf16.msra.mxu0 %v2988_v24  ;;  %3339 = vmatpush.bf16.msra.mxu1 %v2988_v24  ;;  %v3005_v47 = vld [vmem:[%s5550_s1 + $0x50] sm:$0xf0] }
   0xd   :  { %319 = vmatpush.bf16.msra.mxu2 %v2996_v25  ;;  %368 = vmatpush.bf16.msra.mxu3 %v3000_v26 }
   0xe   :  { %14 = vsyncpa [#allocation6], 0  ;;  %vm190_vm0 = vcmask 523264   ;;  %v3808_v48 = vor.u32 %v3326_v45, %v3189_v46  ;;  %v3008_v49 = vor.u32 %v3289_v43, %v3005_v47  ;;  %v3285_v50 = vld [vmem:[%s5550_s1 + $0x24] sm:$0xf]  ;;  %v3274_v9 = vld [vmem:[%s5549_s0 + $0x8] sm:$0xff] }
   0xf   :  { %v2989_v51 = vld [vmem:[%s5550_s1 + $0x30] sm:$0xf0]  ;;  %v3179_v52 = vld [vmem:[%s5551_s2 + $0xe0] sm:$0xf]  ;;  %v3327_v53 = vld [vmem:[%s5551_s2 + $0xec] sm:$0xf0] }
  0x10   :  { %222 = vmatpush.bf16.msra.mxu0 %v2972_v35  ;;  %3340 = vmatpush.bf16.msra.mxu1 %v2972_v35  ;;  %v3829_v54 = vor.u32 %v3327_v53, %v3179_v52  ;;  %v3171_v55 = vld [vmem:[%s5551_s2 + $0xc8] sm:$0xf]  ;;  %v3324_v56 = vld [vmem:[%s5551_s2 + $0xd4] sm:$0xf0]  ;;  %v2992_v57 = vor.u32 %v3285_v50, %v2989_v51  ;;  %v3163_v59 = vld [vmem:[%s5551_s2 + $0xc0] sm:$0xf] }
  0x11   :  { %320 = vmatpush.bf16.msra.mxu2 %v2980_v36  ;;  %369 = vmatpush.bf16.msra.mxu3 %v2984_v37  ;;  %v3837_v58 = vor.u32 %v3324_v56, %v3171_v55  ;;  %v3323_v60 = vld [vmem:[%s5551_s2 + $0xcc] sm:$0xf0]  ;;  %v3322_v61 = vld [vmem:[%s5551_s2 + $0xcc] sm:$0xf]  ;;  %v3281_v62 = vld [vmem:[%s5550_s1 + $0x4] sm:$0xf] }
  0x12   :  { %v2973_v63 = vld [vmem:[%s5550_s1 + $0x10] sm:$0xf0]  ;;  %v3855_v0 = vor.u32 %v3323_v60, %v3163_v59  ;;  %v3173_v1 = vld [vmem:[%s5551_s2 + $0xd8] sm:$0xf0]  ;;  %v3325_v2 = vld [vmem:[%s5551_s2 + $0xe4] sm:$0xf] }
  0x13   :  { %3033 = vmatmul.msk.bf16.vlgmr.msra.gmra.mxu0 %vm190_vm0, %v3273_v38  ;;  %3040 = vmatmul.msk.bf16.vlgmr.msra.gmra.mxu1 %vm190_vm0, %v3786_v39  ;;  %v3181_v3 = vld [vmem:[%s5551_s2 + $0xf0] sm:$0xf0]  ;;  %v3867_v4 = vor.u32 %v3322_v61, %v3173_v1  ;;  %v2976_v5 = vor.u32 %v3281_v62, %v2973_v63  ;;  %v3321_v7 = vld [vmem:[%s5551_s2 + $0xc4] sm:$0xf]  ;;  %v3155_v13 = vld [vmem:[%s5551_s2 + $0xa8] sm:$0xf] }
  0x14   :  { %268 = vmatpush.bf16.msrb.mxu1 %v3024_v42  ;;  %3049 = vmatmul.msk.bf16.vlgmr.msra.gmra.mxu2 %vm190_vm0, %v3273_v38  ;;  %v3870_v6 = vor.u32 %v3325_v2, %v3181_v3  ;;  %v3165_v8 = vld [vmem:[%s5551_s2 + $0xd0] sm:$0xf0]  ;;  %v3317_v11 = vld [vmem:[%s5551_s2 + $0xa4] sm:$0xf]  ;;  %v3320_v15 = vld [vmem:[%s5551_s2 + $0xb4] sm:$0xf0] }
  0x15   :  { %762 = vmatpush.bf16.msrb.mxu2 %v3797_v44  ;;  %3057 = vmatmul.msk.bf16.vlgmr.msra.gmra.mxu3 %vm190_vm0, %v3273_v38  ;;  %v3883_v10 = vor.u32 %v3321_v7, %v3165_v8  ;;  %v3149_v12 = vld [vmem:[%s5551_s2 + $0xb0] sm:$0xf0]  ;;  %v3147_v16 = vld [vmem:[%s5551_s2 + $0xa0] sm:$0xf]  ;;  %v3319_v17 = vld [vmem:[%s5551_s2 + $0xac] sm:$0xf0]  ;;  %v3910_v18 = vor.u32 %v3320_v15, %v3155_v13 }
  0x16   :  { %775 = vmatpush.bf16.msrb.mxu3 %v3808_v48  ;;  %736 = vmatpush.bf16.msrb.mxu0 %v3829_v54  ;;  %v3899_v14 = vor.u32 %v3317_v11, %v3149_v12  ;;  %v3912_v19 = vor.u32 %v3319_v17, %v3147_v16  ;;  %v3318_v20 = vld [vmem:[%s5551_s2 + $0xac] sm:$0xf]  ;;  %v3157_v21 = vld [vmem:[%s5551_s2 + $0xb8] sm:$0xf0]  ;;  %v3275_v23 = vld [vmem:[%s5549_s0 + $0x10] sm:$0xff]  ;;  %s2909_s14 = sshll.u32 %s5555_s6, 4  ;;  %s2910_s14 = int_to_ptr.hbm [resolvable:$true] %s2909_s14 }
  0x17   :  { %v3920_v22 = vor.u32 %v3318_v20, %v3157_v21  ;;  %v3313_v24 = vld [vmem:[%s5551_s2 + $0x84] sm:$0xf]  ;;  %v3133_v25 = vld [vmem:[%s5551_s2 + $0x90] sm:$0xf0]  ;;  %v3139_v26 = vld [vmem:[%s5551_s2 + $0x88] sm:$0xf] }
  0x18   :  { %269 = vmatpush.bf16.msrb.mxu1 %v3008_v49  ;;  %v3942_v27 = vor.u32 %v3313_v24, %v3133_v25  ;;  %v3316_v28 = vld [vmem:[%s5551_s2 + $0x94] sm:$0xf0]  ;;  %v3131_v29 = vld [vmem:[%s5551_s2 + $0x80] sm:$0xf]  ;;  %v3315_v30 = vld [vmem:[%s5551_s2 + $0x8c] sm:$0xf0] }
  0x19   :  { %763 = vmatpush.bf16.msrb.mxu2 %v3837_v58  ;;  %v3953_v31 = vor.u32 %v3316_v28, %v3139_v26  ;;  %v3955_v32 = vor.u32 %v3315_v30, %v3131_v29  ;;  %v3314_v33 = vld [vmem:[%s5551_s2 + $0x8c] sm:$0xf]  ;;  %v3141_v34 = vld [vmem:[%s5551_s2 + $0x98] sm:$0xf0]  ;;  %v3309_v37 = vld [vmem:[%s5551_s2 + $0x64] sm:$0xf] }
  0x1a   :  { %776 = vmatpush.bf16.msrb.mxu3 %v3867_v4  ;;  %737 = vmatpush.bf16.msrb.mxu0 %v3855_v0  ;;  %v3964_v35 = vor.u32 %v3314_v33, %v3141_v34  ;;  %v3276_v36 = vld [vmem:[%s5549_s0 + $0x18] sm:$0xff]  ;;  %v3123_v40 = vld [vmem:[%s5551_s2 + $0x68] sm:$0xf]  ;;  %v3115_v43 = vld [vmem:[%s5551_s2 + $0x60] sm:$0xf]  ;;  %s3659_s15 = smov 128  }
  0x1b   :  { %v3312_v42 = vld [vmem:[%s5551_s2 + $0x74] sm:$0xf0]  ;;  %v3311_v45 = vld [vmem:[%s5551_s2 + $0x6c] sm:$0xf0]  ;;  %v3310_v49 = vld [vmem:[%s5551_s2 + $0x6c] sm:$0xf] }
  0x1c   :  { %270 = vmatpush.bf16.msrb.mxu1 %v2992_v57  ;;  %5690 = vst [vmem:[#allocation9_spill] sm:$0xff] %v3964_v35  ;;  %v3996_v46 = vor.u32 %v3312_v42, %v3123_v40  ;;  %v3998_v47 = vor.u32 %v3311_v45, %v3115_v43  ;;  %v3125_v50 = vld [vmem:[%s5551_s2 + $0x78] sm:$0xf0]  ;;  %v3277_v52 = vld [vmem:[%s5549_s0 + $0x20] sm:$0xff]  ;;  %v3101_v55 = vld [vmem:[%s5551_s2 + $0x50] sm:$0xf0] }
  0x1d   :  { %764 = vmatpush.bf16.msrb.mxu2 %v3910_v18  ;;  %v4007_v51 = vor.u32 %v3310_v49, %v3125_v50  ;;  %v3305_v53 = vld [vmem:[%s5551_s2 + $0x44] sm:$0xf]  ;;  %v3099_v56 = vld [vmem:[%s5551_s2 + $0x40] sm:$0xf]  ;;  %v3307_v59 = vld [vmem:[%s5551_s2 + $0x4c] sm:$0xf0]  ;;  %v507_v50 = vlaneseq }
  0x1e   :  { %738 = vmatpush.bf16.msrb.mxu0 %v3912_v19  ;;  %777 = vmatpush.bf16.msrb.mxu3 %v3920_v22  ;;  %5692 = vst [vmem:[#allocation11_spill] sm:$0xff] %v3996_v46  ;;  %v4028_v57 = vor.u32 %v3305_v53, %v3101_v55  ;;  %v3107_v60 = vld [vmem:[%s5551_s2 + $0x48] sm:$0xf]  ;;  %v3308_v61 = vld [vmem:[%s5551_s2 + $0x54] sm:$0xf0]  ;;  %v4039_v62 = vor.u32 %v3307_v59, %v3099_v56  ;;  %v3279_v33 = vld [vmem:[%s5549_s0 + $0x30] sm:$0xff] }
  0x1f   :  { %5693 = vst [vmem:[#allocation12_spill] sm:$0xff] %v3998_v47  ;;  %v4041_v63 = vor.u32 %v3308_v61, %v3107_v60  ;;  %v3083_v1 = vld [vmem:[%s5551_s2 + $0x20] sm:$0xf]  ;;  %v3303_v2 = vld [vmem:[%s5551_s2 + $0x2c] sm:$0xf0]  ;;  %v3278_v13 = vld [vmem:[%s5549_s0 + $0x28] sm:$0xff] }
  0x20   :  { %271 = vmatpush.bf16.msrb.mxu1 %v2976_v5  ;;  %5694 = vst [vmem:[#allocation13_spill] sm:$0xff] %v4007_v51  ;;  %v3306_v3 = vld [vmem:[%s5551_s2 + $0x4c] sm:$0xf]  ;;  %v3109_v5 = vld [vmem:[%s5551_s2 + $0x58] sm:$0xf0]  ;;  %v4058_v7 = vor.u32 %v3303_v2, %v3083_v1  ;;  %v3657_v43 = vmov 0  }
  0x21   :  { %765 = vmatpush.bf16.msrb.mxu2 %v3953_v31  ;;  %5695 = vst [vmem:[#allocation14_spill] sm:$0xff] %v4028_v57  ;;  %v4060_v8 = vor.u32 %v3306_v3, %v3109_v5  ;;  %v3299_v11 = vld [vmem:[%s5551_s2 + $0xc] sm:$0xf0]  ;;  %v3301_v15 = vld [vmem:[%s5551_s2 + $0x24] sm:$0xf]  ;;  %v4188_v53 = vand.u32 127, %v507_v50 }
  0x22   :  { %739 = vmatpush.bf16.msrb.mxu0 %v3955_v32  ;;  %778 = vmatpush.bf16.msrb.mxu3 %v3964_v35  ;;  %5696 = vst [vmem:[#allocation15_spill] sm:$0xff] %v4039_v62  ;;  %v3085_v16 = vld [vmem:[%s5551_s2 + $0x30] sm:$0xf0]  ;;  %v3091_v17 = vld [vmem:[%s5551_s2 + $0x28] sm:$0xf]  ;;  %s3660_s0 = smov 8  }
  0x23   :  { %3034 = vmatmul.msk.bf16.gmra.mxu0 %vm190_vm0, %v3274_v9  ;;  %3041 = vmatmul.msk.bf16.vlgmr.msrb.gmra.mxu1 %vm190_vm0, %v3273_v38  ;;  %v3117_v38 = vld [vmem:[%s5551_s2 + $0x70] sm:$0xf0]  ;;  %5697 = vst [vmem:[#allocation16_spill] sm:$0xff] %v4041_v63  ;;  %v4090_v20 = vor.u32 %v3301_v15, %v3085_v16  ;;  %v3304_v21 = vld [vmem:[%s5551_s2 + $0x34] sm:$0xf0]  ;;  %vm560_vm1 = vcmp.lt.s32.totalorder %v4188_v53, 64 }
  0x24   :  { %749 = vmatpush.bf16.msra.mxu1 %v3870_v6  ;;  %3050 = vmatmul.msk.bf16.gmra.mxu2 %vm190_vm0, %v3274_v9  ;;  %v3985_v41 = vor.u32 %v3309_v37, %v3117_v38  ;;  %5698 = vst [vmem:[#allocation17_spill] sm:$0xff] %v4058_v7  ;;  %v3093_v24 = vld [vmem:[%s5551_s2 + $0x38] sm:$0xf0]  ;;  %v4102_v25 = vor.u32 %v3304_v21, %v3091_v17  ;;  %v3075_v28 = vld [vmem:[%s5551_s2 + $0x8] sm:$0xf]  ;;  %s3661_s18 = smov [#allocation5]  }
  0x25   :  { %3058 = vmatmul.msk.bf16.gmra.mxu3 %vm190_vm0, %v3274_v9  ;;  %766 = vmatpush.bf16.msrb.mxu2 %v3996_v46  ;;  %5699 = vst [vmem:[#allocation18_spill] sm:$0xff] %v4060_v8  ;;  %v3300_v29 = vld [vmem:[%s5551_s2 + $0x14] sm:$0xf0]  ;;  %v3298_v30 = vld [vmem:[%s5551_s2 + $0xc] sm:$0xf]  ;;  %s2923_s20 = sshll.u32 %s5556_s7, 4  ;;  %s2924_s20 = int_to_ptr.hbm [resolvable:$true] %s2923_s20 }
  0x26   :  { %5691 = vst [vmem:[#allocation10_spill] sm:$0xff] %v3985_v41  ;;  %740 = vmatpush.bf16.msrb.mxu0 %v3998_v47  ;;  %779 = vmatpush.bf16.msrb.mxu3 %v4007_v51  ;;  %v4123_v34 = vor.u32 %v3300_v29, %v3075_v28  ;;  %v3297_v38 = vld [vmem:[%s5551_s2 + $0x4] sm:$0xf]  ;;  %v3069_v40 = vld [vmem:[%s5551_s2 + $0x10] sm:$0xf0] }
  0x27   :  { %5701 = vst [vmem:[#allocation20_spill] sm:$0xff] %v4090_v20  ;;  %v4144_v42 = vor.u32 %v3297_v38, %v3069_v40 }
  0x28   :  { %750 = vmatpush.bf16.msra.mxu1 %v3883_v10  ;;  %5702 = vst [vmem:[#allocation21_spill] sm:$0xff] %v4102_v25 }
  0x29   :  { %767 = vmatpush.bf16.msrb.mxu2 %v4041_v63  ;;  %5704 = vst [vmem:[#allocation23_spill] sm:$0xff] %v4123_v34 }
  0x2a   :  { %741 = vmatpush.bf16.msrb.mxu0 %v4039_v62  ;;  %780 = vmatpush.bf16.msrb.mxu3 %v4060_v8  ;;  %5706 = vst [vmem:[#allocation25_spill] sm:$0xff] %v4144_v42 }
  0x2c   :  { %751 = vmatpush.bf16.msra.mxu1 %v3899_v14 }
  0x2d   :  { %768 = vmatpush.bf16.msrb.mxu2 %v4102_v25 }
  0x2e   :  { %742 = vmatpush.bf16.msrb.mxu0 %v4058_v7 }
  0x30   :  { %752 = vmatpush.bf16.msra.mxu1 %v3942_v27 }
  0x31   :  { %769 = vmatpush.bf16.msrb.mxu2 %v4123_v34 }
  0x33   :  { %3035 = vmatmul.msk.bf16.gmra.mxu0 %vm190_vm0, %v3275_v23  ;;  %3042 = vmatmul.msk.bf16.gmra.mxu1 %vm190_vm0, %v3274_v9  ;;  %v3067_v9 = vld [vmem:[%s5551_s2] sm:$0xf] }
  0x34   :  { %3051 = vmatmul.msk.bf16.gmra.mxu2 %vm190_vm0, %v3275_v23  ;;  %753 = vmatpush.bf16.msra.mxu1 %v3985_v41  ;;  %v4070_v12 = vor.u32 %v3299_v11, %v3067_v9 }
  0x35   :  { %3059 = vmatmul.msk.bf16.gmra.mxu3 %vm190_vm0, %v3275_v23  ;;  %894 = vmatpush.bf16.msra.mxu2 %v3797_v44 }
  0x36   :  { %5700 = vst [vmem:[#allocation19_spill] sm:$0xff] %v4070_v12  ;;  %743 = vmatpush.bf16.msrb.mxu0 %v4070_v12 }
  0x38   :  { %754 = vmatpush.bf16.msra.mxu1 %v4028_v57 }
  0x39   :  { %895 = vmatpush.bf16.msra.mxu2 %v3837_v58 }
  0x3a   :  { %868 = vmatpush.bf16.msra.mxu0 %v3829_v54 }
  0x3c   :  { %755 = vmatpush.bf16.msra.mxu1 %v4090_v20 }
  0x3d   :  { %896 = vmatpush.bf16.msra.mxu2 %v3910_v18 }
  0x3e   :  { %869 = vmatpush.bf16.msra.mxu0 %v3855_v0 }
  0x40   :  { %756 = vmatpush.bf16.msra.mxu1 %v4144_v42 }
  0x41   :  { %897 = vmatpush.bf16.msra.mxu2 %v3953_v31 }
  0x42   :  { %870 = vmatpush.bf16.msra.mxu0 %v3912_v19 }
  0x43   :  { %3036 = vmatmul.msk.bf16.gmra.mxu0 %vm190_vm0, %v3276_v36  ;;  %3043 = vmatmul.msk.bf16.gmra.mxu1 %vm190_vm0, %v3275_v23  ;;  %v3302_v23 = vld [vmem:[%s5551_s2 + $0x2c] sm:$0xf] }
  0x44   :  { %3052 = vmatmul.msk.bf16.gmra.mxu2 %vm190_vm0, %v3276_v36  ;;  %v4104_v26 = vor.u32 %v3302_v23, %v3093_v24  ;;  %881 = vmatpush.bf16.msrb.mxu1 %v3870_v6 }
  0x45   :  { %3060 = vmatmul.msk.bf16.gmra.mxu3 %vm190_vm0, %v3276_v36  ;;  %898 = vmatpush.bf16.msra.mxu2 %v3996_v46 }
  0x46   :  { %5703 = vst [vmem:[#allocation22_spill] sm:$0xff] %v4104_v26  ;;  %781 = vmatpush.bf16.msrb.mxu3 %v4104_v26  ;;  %871 = vmatpush.bf16.msra.mxu0 %v3955_v32 }
  0x48   :  { %882 = vmatpush.bf16.msrb.mxu1 %v3883_v10 }
  0x49   :  { %899 = vmatpush.bf16.msra.mxu2 %v4041_v63 }
  0x4a   :  { %872 = vmatpush.bf16.msra.mxu0 %v3998_v47 }
  0x4c   :  { %883 = vmatpush.bf16.msrb.mxu1 %v3899_v14 }
  0x4d   :  { %900 = vmatpush.bf16.msra.mxu2 %v4102_v25 }
  0x4e   :  { %873 = vmatpush.bf16.msra.mxu0 %v4039_v62 }
  0x50   :  { %884 = vmatpush.bf16.msrb.mxu1 %v3942_v27 }
  0x51   :  { %901 = vmatpush.bf16.msra.mxu2 %v4123_v34 }
  0x52   :  { %874 = vmatpush.bf16.msra.mxu0 %v4058_v7 }
  0x53   :  { %3037 = vmatmul.msk.bf16.gmra.mxu0 %vm190_vm0, %v3277_v52  ;;  %3044 = vmatmul.msk.bf16.gmra.mxu1 %vm190_vm0, %v3276_v36  ;;  %v3077_v36 = vld [vmem:[%s5551_s2 + $0x18] sm:$0xf0]  ;;  %s2921_s2 = sshll.u32 %s3661_s18, 4  ;;  %s2922_s2 = int_to_ptr.vmem [resolvable:$true] %s2921_s2 }
  0x54   :  { %3053 = vmatmul.msk.bf16.gmra.mxu2 %vm190_vm0, %v3277_v52  ;;  %v4128_v37 = vor.u32 %v3298_v30, %v3077_v36  ;;  %885 = vmatpush.bf16.msrb.mxu1 %v3985_v41 }
  0x55   :  { %3061 = vmatmul.msk.bf16.gmra.mxu3 %vm190_vm0, %v3277_v52 }
  0x56   :  { %5705 = vst [vmem:[#allocation24_spill] sm:$0xff] %v4128_v37  ;;  %782 = vmatpush.bf16.msrb.mxu3 %v4128_v37  ;;  %875 = vmatpush.bf16.msra.mxu0 %v4070_v12 }
  0x58   :  { %886 = vmatpush.bf16.msrb.mxu1 %v4028_v57 }
  0x5a   :  { %907 = vmatpush.bf16.msra.mxu3 %v3808_v48 }
  0x5c   :  { %887 = vmatpush.bf16.msrb.mxu1 %v4090_v20 }
  0x5e   :  { %908 = vmatpush.bf16.msra.mxu3 %v3867_v4 }
  0x60   :  { %888 = vmatpush.bf16.msrb.mxu1 %v4144_v42 }
  0x62   :  { %909 = vmatpush.bf16.msra.mxu3 %v3920_v22 }
  0x63   :  { %3038 = vmatmul.msk.bf16.gmra.mxu0 %vm190_vm0, %v3278_v13  ;;  %3045 = vmatmul.msk.bf16.gmra.mxu1 %vm190_vm0, %v3277_v52  ;;  %v4183_v52 = vld [vmem:[%s5552_s3] sm:$0xf] }
  0x64   :  { %3054 = vmatmul.msk.bf16.gmra.mxu2 %vm190_vm0, %v3278_v13  ;;  %v4191_v55 = vperm.slane %v4183_v52, 0 }
  0x65   :  { %3062 = vmatmul.msk.bf16.gmra.mxu3 %vm190_vm0, %v3278_v13 }
  0x66   :  { %910 = vmatpush.bf16.msra.mxu3 %v3964_v35 }
  0x6a   :  { %911 = vmatpush.bf16.msra.mxu3 %v4007_v51 }
  0x6e   :  { %912 = vmatpush.bf16.msra.mxu3 %v4060_v8 }
  0x72   :  { %913 = vmatpush.bf16.msra.mxu3 %v4104_v26 }
  0x73   :  { %3039 = vmatmul.msk.bf16.gmra.mxu0 %vm190_vm0, %v3279_v33  ;;  %3046 = vmatmul.msk.bf16.gmra.mxu1 %vm190_vm0, %v3278_v13 }
  0x74   :  { %3055 = vmatmul.msk.bf16.gmra.mxu2 %vm190_vm0, %v3279_v33 }
  0x75   :  { %3063 = vmatmul.msk.bf16.gmra.mxu3 %vm190_vm0, %v3279_v33 }
  0x76   :  { %914 = vmatpush.bf16.msra.mxu3 %v4128_v37 }
  0x83   :  { %3047 = vmatmul.msk.bf16.gmra.mxu1 %vm190_vm0, %v3279_v33  ;;  %744 = vmatmul.bf16.vlgmr.msrb.gmra.mxu0 %v3657_v43 }
  0x84   :  { %3056 = vmatmul.msk.bf16.gmra.mxu2 %vm190_vm0, %v3786_v39  ;;  %1000 = vmatpush.bf16.msrb.mxu0 %v3829_v54 }
  0x85   :  { %3064 = vmatmul.msk.bf16.gmra.mxu3 %vm190_vm0, %v3786_v39 }
  0x88   :  { %1001 = vmatpush.bf16.msrb.mxu0 %v3855_v0 }
  0x8c   :  { %1002 = vmatpush.bf16.msrb.mxu0 %v3912_v19 }
  0x90   :  { %v224_v45 = vpop.f32.mrf.mxu0  ;;  %v259_v49 = vpop.f32.mrf.mxu1  ;;  %1003 = vmatpush.bf16.msrb.mxu0 %v3955_v32 }
  0x91   :  { %v4198_v56 = vadd.f32 %v224_v45, %v4191_v55  ;;  %v4206_v1 = vadd.f32 %v259_v49, %v4191_v55 }
  0x93   :  { %3048 = vmatmul.msk.bf16.gmra.mxu1 %vm190_vm0, %v3786_v39  ;;  %5707 = vst [vmem:[#allocation26_spill] sm:$0xff] %v4206_v1 }
  0x94   :  { %770 = vmatmul.bf16.vlgmr.msrb.gmra.mxu2 %v3657_v43  ;;  %1004 = vmatpush.bf16.msrb.mxu0 %v3998_v47 }
  0x95   :  { %783 = vmatmul.bf16.vlgmr.msrb.gmra.mxu3 %v3657_v43  ;;  %1026 = vmatpush.bf16.msrb.mxu2 %v3797_v44 }
  0x96   :  { %1039 = vmatpush.bf16.msrb.mxu3 %v3808_v48 }
  0x97   :  { %v4200_v59 = vpop.f32.mrf.mxu2 }
  0x98   :  { %v4202_v39 = vpop.f32.mrf.mxu3  ;;  %v226_v60 = vpop.f32.mrf.mxu0  ;;  %1005 = vmatpush.bf16.msrb.mxu0 %v4039_v62 }
  0x99   :  { %v261_v61 = vpop.f32.mrf.mxu1  ;;  %v4209_v2 = vadd.f32 %v226_v60, %v4191_v55  ;;  %1027 = vmatpush.bf16.msrb.mxu2 %v3837_v58 }
  0x9a   :  { %v4212_v3 = vadd.f32 %v261_v61, %v4191_v55  ;;  %1040 = vmatpush.bf16.msrb.mxu3 %v3867_v4 }
  0x9b   :  { %5708 = vst [vmem:[#allocation27_spill] sm:$0xff] %v4209_v2  ;;  %v4221_v5 = vsel %vm560_vm1, %v4206_v1, %v4209_v2 }
  0x9c   :  { %5709 = vst [vmem:[#allocation28_spill] sm:$0xff] %v4221_v5  ;;  %v4227_v9 = vsel %vm560_vm1, %v4212_v3, %v4198_v56  ;;  %1006 = vmatpush.bf16.msrb.mxu0 %v4058_v7 }
  0x9d   :  { %5710 = vst [vmem:[#allocation29_spill] sm:$0xff] %v4227_v9  ;;  %1028 = vmatpush.bf16.msrb.mxu2 %v3910_v18 }
  0x9e   :  { %1041 = vmatpush.bf16.msrb.mxu3 %v3920_v22 }
  0x9f   :  { %v4232_v11 = vpop.f32.mrf.mxu2 }
  0xa0   :  { %v4234_v13 = vpop.f32.mrf.mxu3  ;;  %v4236_v15 = vpop.f32.mrf.mxu0  ;;  %1007 = vmatpush.bf16.msrb.mxu0 %v4070_v12  ;;  %v510_v12 = vadd.s32 256, %v4188_v53 }
  0xa1   :  { %v4238_v16 = vpop.f32.mrf.mxu1  ;;  %1029 = vmatpush.bf16.msrb.mxu2 %v3953_v31 }
  0xa2   :  { %1042 = vmatpush.bf16.msrb.mxu3 %v3964_v35 }
  0xa3   :  { %757 = vmatmul.bf16.vlgmr.msra.gmra.mxu1 %v3657_v43 }
  0xa4   :  { %1013 = vmatpush.bf16.msra.mxu1 %v3870_v6 }
  0xa5   :  { %1030 = vmatpush.bf16.msrb.mxu2 %v3996_v46 }
  0xa6   :  { %1043 = vmatpush.bf16.msrb.mxu3 %v4007_v51 }
  0xa7   :  { %v4246_v17 = vpop.f32.mrf.mxu2 }
  0xa8   :  { %v4248_v21 = vpop.f32.mrf.mxu3  ;;  %v4250_v23 = vpop.f32.mrf.mxu0  ;;  %1014 = vmatpush.bf16.msra.mxu1 %v3883_v10 }
  0xa9   :  { %v4252_v24 = vpop.f32.mrf.mxu1  ;;  %1031 = vmatpush.bf16.msrb.mxu2 %v4041_v63 }
  0xaa   :  { %1044 = vmatpush.bf16.msrb.mxu3 %v4060_v8 }
  0xac   :  { %1015 = vmatpush.bf16.msra.mxu1 %v3899_v14 }
  0xad   :  { %1032 = vmatpush.bf16.msrb.mxu2 %v4102_v25 }
  0xae   :  { %1045 = vmatpush.bf16.msrb.mxu3 %v4104_v26  ;;  %v511_v26 = vadd.s32 384, %v4188_v53 }
  0xaf   :  { %v4260_v28 = vpop.f32.mrf.mxu2 }
  0xb0   :  { %v4262_v29 = vpop.f32.mrf.mxu3  ;;  %v4264_v30 = vpop.f32.mrf.mxu0  ;;  %1016 = vmatpush.bf16.msra.mxu1 %v3942_v27  ;;  %v537_v8 = vand.u32 127, %v511_v26 }
  0xb1   :  { %v4266_v33 = vpop.f32.mrf.mxu1  ;;  %1033 = vmatpush.bf16.msrb.mxu2 %v4123_v34 }
  0xb2   :  { %1046 = vmatpush.bf16.msrb.mxu3 %v4128_v37  ;;  %vm4322_vm3 = vcmp.lt.s32.totalorder %v537_v8, 64 }
  0xb4   :  { %1017 = vmatpush.bf16.msra.mxu1 %v3985_v41 }
  0xb7   :  { %v4272_v36 = vpop.f32.mrf.mxu2 }
  0xb8   :  { %v4274_v38 = vpop.f32.mrf.mxu3  ;;  %v236_v40 = vpop.f32.mrf.mxu0  ;;  %1018 = vmatpush.bf16.msra.mxu1 %v4028_v57  ;;  %v4307_v57 = vperm.slane %v4183_v52, 3 }
  0xb9   :  { %v4276_v43 = vpop.f32.mrf.mxu1 }
  0xbc   :  { %1019 = vmatpush.bf16.msra.mxu1 %v4090_v20 }
  0xbf   :  { %v4280_v45 = vpop.f32.mrf.mxu2 }
  0xc0   :  { %v4282_v49 = vpop.f32.mrf.mxu3  ;;  %v239_v50 = vpop.f32.mrf.mxu0  ;;  %1020 = vmatpush.bf16.msra.mxu1 %v4144_v42  ;;  %v530_v42 = vand.u32 127, %v510_v12 }
  0xc1   :  { %v4284_v60 = vpop.f32.mrf.mxu1  ;;  %v4316_v12 = vadd.f32 %v239_v50, %v4191_v55  ;;  %v509_v50 = vadd.s32 128, %v4188_v53 }
  0xc2   :  { %vm4318_vm2 = vcmp.lt.s32.totalorder %v530_v42, 64  ;;  %v4362_v42 = vperm.slane %v4183_v52, 1 }
  0xc3   :  { %5716 = vst [vmem:[#allocation35_spill] sm:$0xff] %v4316_v12  ;;  %v523_v8 = vand.u32 127, %v509_v50 }
  0xc5   :  { %vm4373_vm4 = vcmp.lt.s32.totalorder %v523_v8, 64 }
  0xc7   :  { %v337_v61 = vpop.f32.mrf.mxu2 }
  0xc8   :  { %v386_v9 = vpop.f32.mrf.mxu3  ;;  %v241_v5 = vpop.f32.mrf.mxu0 }
  0xc9   :  { %v4287_v2 = vpop.f32.mrf.mxu1  ;;  %v4290_v1 = vadd.f32 %v241_v5, %v4191_v55  ;;  %v4304_v5 = vperm.slane %v4183_v52, 2  ;;  %v4359_v47 = vadd.f32 %v386_v9, %v4307_v57  ;;  %v4378_v52 = vadd.f32 %v236_v40, %v4191_v55 }
  0xcb   :  { %5711 = vst [vmem:[#allocation30_spill] sm:$0xff] %v4290_v1 }
  0xcc   :  { %5727 = vst [vmem:[#allocation42_spill] sm:$0xff] %v4359_v47 }
  0xcd   :  { %5733 = vst [vmem:[#allocation46_spill] sm:$0xff] %v4378_v52 }
  0xcf   :  { %v339_v37 = vpop.f32.mrf.mxu2 }
  0xd0   :  { %v388_v34 = vpop.f32.mrf.mxu3  ;;  %v244_v25 = vpop.f32.mrf.mxu0  ;;  %v4310_v62 = vadd.f32 %v339_v37, %v4304_v5 }
  0xd1   :  { %v288_v20 = vpop.f32.mrf.mxu1  ;;  %v4295_v7 = vadd.f32 %v244_v25, %v4191_v55  ;;  %v4313_v25 = vadd.f32 %v388_v34, %v4307_v57 }
  0xd2   :  { %5714 = vst [vmem:[#allocation33_spill] sm:$0xff] %v4310_v62 }
  0xd3   :  { %5712 = vst [vmem:[#allocation31_spill] sm:$0xff] %v4295_v7  ;;  %v4301_v63 = vsel %vm560_vm1, %v4295_v7, %v4290_v1  ;;  %v5717_v1 = vmov 0 }
  0xd4   :  { %5713 = vst [vmem:[#allocation32_spill] sm:$0xff] %v4301_v63  ;;  %v5718_v1 = vsel %vm4318_vm2, 4294967295, %v5717_v1  ;;  %v5720_v63 = vmov 0 }
  0xd5   :  { %5715 = vst [vmem:[#allocation34_spill] sm:$0xff] %v4313_v25  ;;  %v5721_v63 = vsel %vm4322_vm3, 4294967295, %v5720_v63 }
  0xd6   :  { %5719 = vst [vmem:[#allocation36_spill] sm:$0xff] %v5718_v1 }
  0xd7   :  { %v342_v26 = vpop.f32.mrf.mxu2  ;;  %5722 = vst [vmem:[#allocation37_spill] sm:$0xff] %v5721_v63 }
  0xd8   :  { %v391_v51 = vpop.f32.mrf.mxu3  ;;  %v4327_v7 = vadd.f32 %v342_v26, %v4304_v5  ;;  %v246_v34 = vpop.f32.mrf.mxu0 }
  0xd9   :  { %v4330_v37 = vadd.f32 %v391_v51, %v4307_v57  ;;  %v290_v46 = vpop.f32.mrf.mxu1  ;;  %v4334_v41 = vadd.f32 %v246_v34, %v4191_v55 }
  0xda   :  { %5723 = vst [vmem:[#allocation38_spill] sm:$0xff] %v4327_v7  ;;  %v4365_v7 = vadd.f32 %v337_v61, %v4304_v5  ;;  %v4381_v9 = vadd.f32 %v290_v46, %v4362_v42 }
  0xdb   :  { %5724 = vst [vmem:[#allocation39_spill] sm:$0xff] %v4330_v37  ;;  %v4356_v34 = vsel %vm560_vm1, %v4334_v41, %v4316_v12 }
  0xdc   :  { %5725 = vst [vmem:[#allocation40_spill] sm:$0xff] %v4334_v41 }
  0xdd   :  { %5726 = vst [vmem:[#allocation41_spill] sm:$0xff] %v4356_v34 }
  0xde   :  { %5728 = vst [vmem:[#allocation43_spill] sm:$0xff] %v4365_v7 }
  0xdf   :  { %v344_v35 = vpop.f32.mrf.mxu2  ;;  %5734 = vst [vmem:[#allocation47_spill] sm:$0xff] %v4381_v9 }
  0xe0   :  { %v393_v51 = vpop.f32.mrf.mxu3  ;;  %v4368_v26 = vadd.f32 %v344_v35, %v4304_v5  ;;  %v249_v25 = vpop.f32.mrf.mxu0 }
  0xe1   :  { %v4371_v37 = vadd.f32 %v393_v51, %v4307_v57  ;;  %v293_v34 = vpop.f32.mrf.mxu1  ;;  %v4384_v61 = vadd.f32 %v249_v25, %v4191_v55  ;;  %v4421_v25 = vadd.f32 %v4280_v45, %v4304_v5  ;;  %v4425_v51 = vadd.f32 %v4282_v49, %v4307_v57  ;;  %v5864_v53 = vld [vmem:[#allocation38_spill] sm:$0xff] }
  0xe2   :  { %5729 = vst [vmem:[#allocation44_spill] sm:$0xff] %v4368_v26  ;;  %v4387_v35 = vadd.f32 %v293_v34, %v4362_v42 }
  0xe3   :  { %5730 = vst [vmem:[#allocation45_spill] sm:$0xff] %v4371_v37  ;;  %v4417_v46 = vsel %vm560_vm1, %v4384_v61, %v4378_v52  ;;  %v4438_v37 = vadd.f32 %v288_v20, %v4362_v42 }
  0xe4   :  { %5735 = vst [vmem:[#allocation48_spill] sm:$0xff] %v4384_v61 }
  0xe5   :  { %5736 = vst [vmem:[#allocation49_spill] sm:$0xff] %v4387_v35 }
  0xe6   :  { %5737 = vst [vmem:[#allocation50_spill] sm:$0xff] %v4417_v46  ;;  %v4435_v46 = vadd.f32 %v4264_v30, %v4191_v55 }
  0xe7   :  { %v347_v40 = vpop.f32.mrf.mxu2  ;;  %5738 = vst [vmem:[#allocation51_spill] sm:$0xff] %v4421_v25  ;;  %v4612_v25 = vadd.f32 %v4276_v43, %v4362_v42  ;;  %v4643_v43 = vadd.f32 %v4232_v11, %v4304_v5 }
  0xe8   :  { %v396_v8 = vpop.f32.mrf.mxu3  ;;  %5739 = vst [vmem:[#allocation52_spill] sm:$0xff] %v4425_v51  ;;  %v4428_v62 = vadd.f32 %v347_v40, %v4304_v5  ;;  %v251_v35 = vpop.f32.mrf.mxu0 }
  0xe9   :  { %v4431_v34 = vadd.f32 %v396_v8, %v4307_v57  ;;  %v295_v9 = vpop.f32.mrf.mxu1  ;;  %5742 = vst [vmem:[#allocation55_spill] sm:$0xff] %v4435_v46  ;;  %v4441_v45 = vadd.f32 %v251_v35, %v4191_v55  ;;  %v4482_v35 = vadd.f32 %v4274_v38, %v4307_v57 }
  0xea   :  { %5740 = vst [vmem:[#allocation53_spill] sm:$0xff] %v4428_v62  ;;  %v4444_v49 = vadd.f32 %v295_v9, %v4362_v42  ;;  %v4478_v9 = vadd.f32 %v4272_v36, %v4304_v5  ;;  %v4496_v36 = vadd.f32 %v4287_v2, %v4362_v42 }
  0xeb   :  { %5741 = vst [vmem:[#allocation54_spill] sm:$0xff] %v4431_v34  ;;  %v4474_v20 = vsel %vm560_vm1, %v4441_v45, %v4435_v46 }
  0xec   :  { %5743 = vst [vmem:[#allocation56_spill] sm:$0xff] %v4438_v37 }
  0xed   :  { %5744 = vst [vmem:[#allocation57_spill] sm:$0xff] %v4441_v45 }
  0xee   :  { %5745 = vst [vmem:[#allocation58_spill] sm:$0xff] %v4444_v49 }
  0xef   :  { %5746 = vst [vmem:[#allocation59_spill] sm:$0xff] %v4474_v20  ;;  %v349_v30 = vpop.f32.mrf.mxu2  ;;  %v4492_v20 = vadd.f32 %v4250_v23, %v4191_v55 }
  0xf0   :  { %v398_v8 = vpop.f32.mrf.mxu3  ;;  %5747 = vst [vmem:[#allocation60_spill] sm:$0xff] %v4478_v9  ;;  %v4485_v47 = vadd.f32 %v349_v30, %v4304_v5  ;;  %v254_v26 = vpop.f32.mrf.mxu0 }
  0xf1   :  { %5748 = vst [vmem:[#allocation61_spill] sm:$0xff] %v4482_v35  ;;  %v4488_v40 = vadd.f32 %v398_v8, %v4307_v57  ;;  %v298_v7 = vpop.f32.mrf.mxu1  ;;  %v4499_v49 = vadd.f32 %v254_v26, %v4191_v55  ;;  %v4540_v26 = vadd.f32 %v4262_v29, %v4307_v57 }
  0xf2   :  { %5749 = vst [vmem:[#allocation62_spill] sm:$0xff] %v4485_v47  ;;  %v4502_v38 = vadd.f32 %v298_v7, %v4362_v42  ;;  %v4536_v7 = vadd.f32 %v4260_v28, %v4304_v5  ;;  %v4554_v28 = vadd.f32 %v4284_v60, %v4362_v42 }
  0xf3   :  { %5750 = vst [vmem:[#allocation63_spill] sm:$0xff] %v4488_v40  ;;  %v4532_v2 = vsel %vm560_vm1, %v4499_v49, %v4492_v20 }
  0xf4   :  { %5751 = vst [vmem:[#allocation64_spill] sm:$0xff] %v4492_v20 }
  0xf5   :  { %5752 = vst [vmem:[#allocation65_spill] sm:$0xff] %v4496_v36  ;;  %v4688_v36 = vadd.f32 %v4200_v59, %v4304_v5 }
  0xf6   :  { %5753 = vst [vmem:[#allocation66_spill] sm:$0xff] %v4499_v49 }
  0xf7   :  { %5754 = vst [vmem:[#allocation67_spill] sm:$0xff] %v4502_v38  ;;  %v352_v23 = vpop.f32.mrf.mxu2 }
  0xf8   :  { %5755 = vst [vmem:[#allocation68_spill] sm:$0xff] %v4532_v2  ;;  %v401_v8 = vpop.f32.mrf.mxu3  ;;  %v4543_v37 = vadd.f32 %v352_v23, %v4304_v5  ;;  %v256_v12 = vpop.f32.mrf.mxu0  ;;  %v4550_v2 = vadd.f32 %v4236_v15, %v4191_v55 }
  0xf9   :  { %5756 = vst [vmem:[#allocation69_spill] sm:$0xff] %v4536_v7  ;;  %v4546_v30 = vadd.f32 %v401_v8, %v4307_v57  ;;  %v300_v41 = vpop.f32.mrf.mxu1  ;;  %v4557_v34 = vadd.f32 %v256_v12, %v4191_v55  ;;  %v4598_v55 = vadd.f32 %v4246_v17, %v4304_v5  ;;  %v4602_v12 = vadd.f32 %v4248_v21, %v4307_v57 }
  0xfa   :  { %5757 = vst [vmem:[#allocation70_spill] sm:$0xff] %v4540_v26  ;;  %v4560_v29 = vadd.f32 %v300_v41, %v4362_v42  ;;  %v572_v41 = vsel %vm560_vm1, %v4198_v56, %v4212_v3 }
  0xfb   :  { %5758 = vst [vmem:[#allocation71_spill] sm:$0xff] %v4543_v37  ;;  %v4590_v23 = vsel %vm560_vm1, %v4557_v34, %v4550_v2 }
  0xfc   :  { %5759 = vst [vmem:[#allocation72_spill] sm:$0xff] %v4546_v30 }
  0xfd   :  { %5760 = vst [vmem:[#allocation73_spill] sm:$0xff] %v4554_v28 }
  0xfe   :  { %5761 = vst [vmem:[#allocation74_spill] sm:$0xff] %v4560_v29 }
  0xff   :  { %5762 = vst [vmem:[#allocation75_spill] sm:$0xff] %v4590_v23  ;;  %v354_v60 = vpop.f32.mrf.mxu2 }
 0x100   :  { %v403_v15 = vpop.f32.mrf.mxu3  ;;  %5763 = vst [vmem:[#allocation76_spill] sm:$0xff] %v4598_v55  ;;  %v4605_v8 = vadd.f32 %v354_v60, %v4304_v5  ;;  %v745_v62 = vpop.f32.mrf.mxu0 }
 0x101   :  { %5764 = vst [vmem:[#allocation77_spill] sm:$0xff] %v4602_v12  ;;  %v4608_v23 = vadd.f32 %v403_v15, %v4307_v57  ;;  %v303_v51 = vpop.f32.mrf.mxu1  ;;  %v746_v3 = vadd.f32 %v745_v62, %v572_v41 }
 0x102   :  { %5765 = vst [vmem:[#allocation78_spill] sm:$0xff] %v4605_v8  ;;  %v4615_v56 = vadd.f32 %v303_v51, %v4362_v42 }
 0x103   :  { %5766 = vst [vmem:[#allocation79_spill] sm:$0xff] %v4608_v23  ;;  %v3193_v51 = vmul.f32 -1.442695, %v746_v3  ;;  %v4647_v3 = vadd.f32 %v4234_v13, %v4307_v57 }
 0x104   :  { %5767 = vst [vmem:[#allocation80_spill] sm:$0xff] %v4612_v25 }
 0x105   :  { %5768 = vst [vmem:[#allocation81_spill] sm:$0xff] %v4615_v56  ;;  %3347 = vpow2.f32 %v3193_v51  ;;  %v4657_v51 = vadd.f32 %v4266_v33, %v4362_v42  ;;  %v4692_v33 = vadd.f32 %v4202_v39, %v4307_v57 }
 0x106   :  { %5769 = vst [vmem:[#allocation82_spill] sm:$0xff] %v4643_v43 }
 0x107   :  { %v357_v41 = vpop.f32.mrf.mxu2  ;;  %5770 = vst [vmem:[#allocation83_spill] sm:$0xff] %v4647_v3 }
 0x108   :  { %v406_v21 = vpop.f32.mrf.mxu3  ;;  %v4650_v62 = vadd.f32 %v357_v41, %v4304_v5  ;;  %v747_v38 = vpop.f32.mrf.mxu0  ;;  %5773 = vst [vmem:[#allocation86_spill] sm:$0xff] %v4657_v51 }
 0x109   :  { %v4653_v15 = vadd.f32 %v406_v21, %v4307_v57  ;;  %v305_v17 = vpop.f32.mrf.mxu1  ;;  %5775 = vst [vmem:[#allocation88_spill] sm:$0xff] %v4688_v36 }
 0x10a   :  { %5771 = vst [vmem:[#allocation84_spill] sm:$0xff] %v4650_v62  ;;  %v4660_v60 = vadd.f32 %v305_v17, %v4362_v42 }
 0x10b   :  { %5772 = vst [vmem:[#allocation85_spill] sm:$0xff] %v4653_v15  ;;  %v3348_v17 = vpop.eup %3347 }
 0x10c   :  { %5774 = vst [vmem:[#allocation87_spill] sm:$0xff] %v4660_v60  ;;  %v797_v13 = vadd.f32 1.0, %v3348_v17  ;;  %v4702_v17 = vadd.f32 %v4252_v24, %v4362_v42 }
 0x10d   :  { %5776 = vst [vmem:[#allocation89_spill] sm:$0xff] %v4692_v33 }
 0x10e   :  { %3349 = vrcp.f32 %v797_v13  ;;  %5779 = vst [vmem:[#allocation92_spill] sm:$0xff] %v4702_v17  ;;  %v809_v35 = vand.u32 2147483647, %v797_v13  ;;  %v811_v47 = vand.u32 2147483648, %v797_v13  ;;  %vm805_vm6 = vweird.f32 %v797_v13 }
 0x10f   :  { %v359_v11 = vpop.f32.mrf.mxu2 }
 0x110   :  { %v408_v38 = vpop.f32.mrf.mxu3  ;;  %v4695_v52 = vadd.f32 %v359_v11, %v4304_v5  ;;  %v4725_v11 = vadd.f32 %v4238_v16, %v4362_v42  ;;  %vm810_vm8 = vcmp.eq.f32.partialorder %v809_v35, 8.507059e+37 }
 0x111   :  { %v4698_v21 = vadd.f32 %v408_v38, %v4307_v57  ;;  %v308_v61 = vpop.f32.mrf.mxu1 }
 0x112   :  { %5777 = vst [vmem:[#allocation90_spill] sm:$0xff] %v4695_v52  ;;  %v4705_v41 = vadd.f32 %v308_v61, %v4362_v42  ;;  %v574_v57 = vsel %vm4318_vm2, %v4688_v36, %v4695_v52 }
 0x113   :  { %5778 = vst [vmem:[#allocation91_spill] sm:$0xff] %v4698_v21  ;;  %v575_v39 = vsel %vm4322_vm3, %v4692_v33, %v4698_v21  ;;  %v812_v21 = vor.u32 1.1754944e-38, %v811_v47 }
 0x114   :  { %5780 = vst [vmem:[#allocation93_spill] sm:$0xff] %v4705_v41  ;;  %v3350_v5 = vpop.eup %3349  ;;  %v5802_v26 = vsel %vm4373_vm4, %v4702_v17, %v4705_v41 }
 0x115   :  { %v801_v61 = vmul.f32 %v3350_v5, %v797_v13  ;;  %5781 = vst [vmem:[#allocation94_spill] sm:$0xff] %v4725_v11  ;;  %vm806_vm5 = vweird.f32 %v3350_v5 }
 0x116   :  { %vm807_vm7 = vmor %vm805_vm6, %vm806_vm5  ;;  %vm853_vm6 = vcmask 1048064  }
 0x117   :  { %v802_v38 = vsub.f32 1.0, %v801_v61  ;;  %v771_v59 = vpop.f32.mrf.mxu2 }
 0x118   :  { %v784_v40 = vpop.f32.mrf.mxu3  ;;  %v772_v29 = vadd.f32 %v771_v59, %v574_v57 }
 0x119   :  { %v785_v24 = vadd.f32 %v784_v40, %v575_v39  ;;  %v310_v9 = vpop.f32.mrf.mxu1  ;;  %v803_v16 = vmul.f32 %v3350_v5, %v802_v38 }
 0x11a   :  { %v4736_v61 = vadd.f32 %v310_v9, %v4362_v42  ;;  %v3195_v40 = vmul.f32 -1.442695, %v772_v29 }
 0x11b   :  { %3351 = vtanh.f32 %v785_v24  ;;  %v804_v28 = vadd.f32 %v3350_v5, %v803_v16 }
 0x11c   :  { %5782 = vst [vmem:[#allocation95_spill] sm:$0xff] %v4736_v61  ;;  %v573_v42 = vsel %vm4373_vm4, %v4725_v11, %v4736_v61  ;;  %3353 = vpow2.f32 %v3195_v40 }
 0x11d   :  { %v808_v39 = vsel %vm807_vm7, %v3350_v5, %v804_v28 }
 0x11e   :  { %v813_v36 = vsel %vm810_vm8, %v812_v21, %v808_v39 }
 0x11f   :  { %v773_v59 = vpop.f32.mrf.mxu2 }
 0x120   :  { %v786_v57 = vpop.f32.mrf.mxu3 }
 0x121   :  { %v3352_v38 = vpop.eup %3351  ;;  %v758_v9 = vpop.f32.mrf.mxu1 }
 0x122   :  { %v847_v13 = vmul.f32 %v3352_v38, %v813_v36  ;;  %v759_v24 = vadd.f32 %v758_v9, %v573_v42  ;;  %v3354_v33 = vpop.eup %3353 }
 0x123   :  { %v799_v29 = vadd.f32 1.0, %v3354_v33 }
 0x124   :  { %v3194_v16 = vmul.f32 -1.442695, %v759_v24 }
 0x125   :  { %v841_v61 = vand.u32 2147483648, %v799_v29  ;;  %vm835_vm14 = vweird.f32 %v799_v29 }
 0x126   :  { %3355 = vpow2.f32 %v3194_v16 }
 0x127   :  { %3357 = vrcp.f32 %v799_v29 }
 0x129   :  { %v760_v47 = vpop.f32.mrf.mxu1 }
 0x12c   :  { %v3356_v28 = vpop.eup %3355 }
 0x12d   :  { %v798_v35 = vadd.f32 1.0, %v3356_v28  ;;  %v3358_v21 = vpop.eup %3357 }
 0x12e   :  { %v831_v59 = vmul.f32 %v3358_v21, %v799_v29  ;;  %vm836_vm13 = vweird.f32 %v3358_v21 }
 0x12f   :  { %3359 = vrcp.f32 %v798_v35  ;;  %v826_v52 = vand.u32 2147483648, %v798_v35  ;;  %v824_v40 = vand.u32 2147483647, %v798_v35  ;;  %vm820_vm10 = vweird.f32 %v798_v35  ;;  %vm837_vm15 = vmor %vm835_vm14, %vm836_vm13 }
 0x130   :  { %v832_v36 = vsub.f32 1.0, %v831_v59 }
 0x131   :  { %v827_v42 = vor.u32 1.1754944e-38, %v826_v52  ;;  %vm825_vm12 = vcmp.eq.f32.partialorder %v824_v40, 8.507059e+37  ;;  %v5787_v40 = vld [vmem:[#allocation13_spill] sm:$0xff] }
 0x132   :  { %v833_v33 = vmul.f32 %v3358_v21, %v832_v36  ;;  %v5788_v36 = vld [vmem:[#allocation15_spill] sm:$0xff] }
 0x134   :  { %v834_v28 = vadd.f32 %v3358_v21, %v833_v33  ;;  %v5792_v33 = vld [vmem:[#allocation17_spill] sm:$0xff] }
 0x135   :  { %v3360_v5 = vpop.eup %3359 }
 0x136   :  { %v816_v39 = vmul.f32 %v3360_v5, %v798_v35  ;;  %vm821_vm9 = vweird.f32 %v3360_v5  ;;  %v838_v59 = vsel %vm837_vm15, %v3358_v21, %v834_v28  ;;  %v5786_v21 = vld [vmem:[#allocation11_spill] sm:$0xff]  ;;  %v5795_v28 = vld [vmem:[#allocation22_spill] sm:$0xff] }
 0x137   :  { %vm822_vm11 = vmor %vm820_vm10, %vm821_vm9 }
 0x138   :  { %v817_v57 = vsub.f32 1.0, %v816_v39  ;;  %v839_v39 = vand.u32 2147483647, %v799_v29  ;;  %v5785_v29 = vld [vmem:[#allocation10_spill] sm:$0xff] }
 0x13a   :  { %v818_v11 = vmul.f32 %v3360_v5, %v817_v57  ;;  %vm840_vm5 = vcmp.eq.f32.partialorder %v839_v39, 8.507059e+37  ;;  %v5796_v39 = vld [vmem:[#allocation19_spill] sm:$0xff] }
 0x13c   :  { %v819_v38 = vadd.f32 %v3360_v5, %v818_v11  ;;  %v842_v11 = vor.u32 1.1754944e-38, %v841_v61  ;;  %v5783_v61 = vld [vmem:[#allocation9_spill] sm:$0xff] }
 0x13e   :  { %v823_v9 = vsel %vm822_vm11, %v3360_v5, %v819_v38  ;;  %v843_v52 = vsel %vm840_vm5, %v842_v11, %v838_v59  ;;  %v5789_v38 = vld [vmem:[#allocation14_spill] sm:$0xff]  ;;  %v5797_v59 = vld [vmem:[#allocation25_spill] sm:$0xff]  ;;  %v5798_v11 = vld [vmem:[#allocation23_spill] sm:$0xff] }
 0x13f   :  { %v828_v24 = vsel %vm825_vm12, %v827_v42, %v823_v9  ;;  %v5790_v42 = vld [vmem:[#allocation16_spill] sm:$0xff]  ;;  %v5791_v9 = vld [vmem:[#allocation18_spill] sm:$0xff] }
 0x140   :  { %v846_v16 = vmul.f32 0.0, %v828_v24  ;;  %v5793_v24 = vld [vmem:[#allocation20_spill] sm:$0xff] }
 0x142   :  { %v4746_v47 = vadd.f32 %v847_v13, %v846_v16  ;;  %v5784_v13 = vld [vmem:[#allocation12_spill] sm:$0xff]  ;;  %v5794_v16 = vld [vmem:[#allocation21_spill] sm:$0xff] }
 0x144   :  { %3361 = vtanh.f32 %v4746_v47 }
 0x14a   :  { %v3362_v35 = vpop.eup %3361 }
 0x14b   :  { %v850_v5 = vmul.f32 %v3362_v35, %v843_v52  ;;  %v5799_v35 = vld [vmem:[#allocation24_spill] sm:$0xff]  ;;  %v5800_v52 = vld [vmem:[#allocation26_spill] sm:$0xff] }
 0x14d   :  { %851 = vst.msk [vmem:[#allocation3] sm:$0xff] %vm190_vm0, %v850_v5  ;;  %v855_v57 = vpack.c.bf16 %v850_v5, %v850_v5 }
 0x14e   :  { %854 = vst.msk [vmem:[#allocation3 + $0x78] sm:$0xff] %vm853_vm6, %v850_v5  ;;  %v5801_v5 = vld [vmem:[#allocation27_spill] sm:$0xff] }
 0x14f   :  { %876 = vmatmul.bf16.vlgmr.msra.gmra.mxu0 %v855_v57  ;;  %889 = vmatmul.bf16.vlgmr.msrb.gmra.mxu1 %v855_v57 }
 0x150   :  { %902 = vmatmul.bf16.vlgmr.msra.gmra.mxu2 %v855_v57  ;;  %915 = vmatmul.bf16.vlgmr.msra.gmra.mxu3 %v855_v57  ;;  %v864_v57 = vsel %vm560_vm1, %v5801_v5, %v5800_v52  ;;  %v5803_v52 = vsel %vm4318_vm2, %v4643_v43, %v4650_v62 }
 0x151   :  { %1132 = vmatpush.bf16.msra.mxu0 %v3829_v54  ;;  %1145 = vmatpush.bf16.msrb.mxu1 %v3870_v6 }
 0x152   :  { %1158 = vmatpush.bf16.msra.mxu2 %v3797_v44  ;;  %1171 = vmatpush.bf16.msra.mxu3 %v3808_v48 }
 0x155   :  { %1133 = vmatpush.bf16.msra.mxu0 %v3855_v0  ;;  %1146 = vmatpush.bf16.msrb.mxu1 %v3883_v10 }
 0x156   :  { %1159 = vmatpush.bf16.msra.mxu2 %v3837_v58  ;;  %1172 = vmatpush.bf16.msra.mxu3 %v3867_v4 }
 0x159   :  { %1134 = vmatpush.bf16.msra.mxu0 %v3912_v19  ;;  %1147 = vmatpush.bf16.msrb.mxu1 %v3899_v14 }
 0x15a   :  { %1160 = vmatpush.bf16.msra.mxu2 %v3910_v18  ;;  %1173 = vmatpush.bf16.msra.mxu3 %v3920_v22 }
 0x15d   :  { %1135 = vmatpush.bf16.msra.mxu0 %v3955_v32  ;;  %1148 = vmatpush.bf16.msrb.mxu1 %v3942_v27 }
 0x15e   :  { %1161 = vmatpush.bf16.msra.mxu2 %v3953_v31  ;;  %1174 = vmatpush.bf16.msra.mxu3 %v5783_v61 }
 0x161   :  { %1136 = vmatpush.bf16.msra.mxu0 %v5784_v13  ;;  %1149 = vmatpush.bf16.msrb.mxu1 %v5785_v29 }
 0x162   :  { %1162 = vmatpush.bf16.msra.mxu2 %v5786_v21  ;;  %1175 = vmatpush.bf16.msra.mxu3 %v5787_v40 }
 0x165   :  { %1137 = vmatpush.bf16.msra.mxu0 %v5788_v36  ;;  %1150 = vmatpush.bf16.msrb.mxu1 %v5789_v38 }
 0x166   :  { %1163 = vmatpush.bf16.msra.mxu2 %v5790_v42  ;;  %1176 = vmatpush.bf16.msra.mxu3 %v5791_v9 }
 0x169   :  { %1138 = vmatpush.bf16.msra.mxu0 %v5792_v33  ;;  %1151 = vmatpush.bf16.msrb.mxu1 %v5793_v24 }
 0x16a   :  { %1164 = vmatpush.bf16.msra.mxu2 %v5794_v16  ;;  %1177 = vmatpush.bf16.msra.mxu3 %v5795_v28 }
 0x16d   :  { %1139 = vmatpush.bf16.msra.mxu0 %v5796_v39  ;;  %1152 = vmatpush.bf16.msrb.mxu1 %v5797_v59 }
 0x16e   :  { %1165 = vmatpush.bf16.msra.mxu2 %v5798_v11  ;;  %1178 = vmatpush.bf16.msra.mxu3 %v5799_v35 }
 0x1cc   :  { %v877_v46 = vpop.f32.mrf.mxu0  ;;  %v890_v45 = vpop.f32.mrf.mxu1 }
 0x1cd   :  { %v878_v30 = vadd.f32 %v877_v46, %v864_v57  ;;  %v891_v37 = vadd.f32 %v890_v45, %v5802_v26 }
 0x1cf   :  { %v3196_v7 = vmul.f32 -1.442695, %v878_v30  ;;  %v3197_v56 = vmul.f32 -1.442695, %v891_v37 }
 0x1d1   :  { %3363 = vpow2.f32 %v3196_v7 }
 0x1d2   :  { %3365 = vpow2.f32 %v3197_v56 }
 0x1d3   :  { %v903_v25 = vpop.f32.mrf.mxu2  ;;  %v916_v20 = vpop.f32.mrf.mxu3 }
 0x1d4   :  { %v904_v5 = vadd.f32 %v903_v25, %v5803_v52  ;;  %v879_v49 = vpop.f32.mrf.mxu0  ;;  %v892_v46 = vpop.f32.mrf.mxu1  ;;  %v5804_v25 = vsel %vm4322_vm3, %v4647_v3, %v4653_v15 }
 0x1d5   :  { %v917_v49 = vadd.f32 %v916_v20, %v5804_v25 }
 0x1d6   :  { %v3198_v57 = vmul.f32 -1.442695, %v904_v5 }
 0x1d7   :  { %v3364_v23 = vpop.eup %3363 }
 0x1d8   :  { %v3366_v12 = vpop.eup %3365  ;;  %v929_v8 = vadd.f32 1.0, %v3364_v23  ;;  %3367 = vpow2.f32 %v3198_v57 }
 0x1d9   :  { %v930_v45 = vadd.f32 1.0, %v3366_v12 }
 0x1da   :  { %3369 = vrcp.f32 %v929_v8  ;;  %v943_v12 = vand.u32 2147483648, %v929_v8  ;;  %vm937_vm9 = vweird.f32 %v929_v8 }
 0x1db   :  { %3371 = vrcp.f32 %v930_v45  ;;  %v905_v37 = vpop.f32.mrf.mxu2  ;;  %v918_v7 = vpop.f32.mrf.mxu3  ;;  %v958_v43 = vand.u32 2147483648, %v930_v45  ;;  %v956_v62 = vand.u32 2147483647, %v930_v45  ;;  %vm952_vm10 = vweird.f32 %v930_v45 }
 0x1dc   :  { %v941_v7 = vand.u32 2147483647, %v929_v8  ;;  %v944_v25 = vor.u32 1.1754944e-38, %v943_v12 }
 0x1dd   :  { %vm957_vm14 = vcmp.eq.f32.partialorder %v956_v62, 8.507059e+37 }
 0x1de   :  { %v3368_v26 = vpop.eup %3367  ;;  %vm942_vm13 = vcmp.eq.f32.partialorder %v941_v7, 8.507059e+37 }
 0x1df   :  { %v931_v30 = vadd.f32 1.0, %v3368_v26 }
 0x1e0   :  { %v3370_v56 = vpop.eup %3369 }
 0x1e1   :  { %v3372_v52 = vpop.eup %3371  ;;  %v933_v5 = vmul.f32 %v3370_v56, %v929_v8  ;;  %3373 = vrcp.f32 %v931_v30  ;;  %vm938_vm7 = vweird.f32 %v3370_v56  ;;  %v973_v12 = vand.u32 2147483648, %v931_v30 }
 0x1e2   :  { %v948_v46 = vmul.f32 %v3372_v52, %v930_v45  ;;  %3375 = vtanh.f32 %v917_v49  ;;  %vm953_vm8 = vweird.f32 %v3372_v52  ;;  %vm939_vm11 = vmor %vm937_vm9, %vm938_vm7  ;;  %vm967_vm5 = vweird.f32 %v931_v30 }
 0x1e3   :  { %v934_v23 = vsub.f32 1.0, %v933_v5  ;;  %vm954_vm12 = vmor %vm952_vm10, %vm953_vm8  ;;  %v959_v5 = vor.u32 1.1754944e-38, %v958_v43  ;;  %v971_v43 = vand.u32 2147483647, %v931_v30 }
 0x1e4   :  { %v949_v57 = vsub.f32 1.0, %v948_v46 }
 0x1e5   :  { %v935_v37 = vmul.f32 %v3370_v56, %v934_v23  ;;  %vm972_vm8 = vcmp.eq.f32.partialorder %v971_v43, 8.507059e+37 }
 0x1e6   :  { %v950_v26 = vmul.f32 %v3372_v52, %v949_v57 }
 0x1e7   :  { %v3374_v17 = vpop.eup %3373  ;;  %v936_v41 = vadd.f32 %v3370_v56, %v935_v37 }
 0x1e8   :  { %v963_v20 = vmul.f32 %v3374_v17, %v931_v30  ;;  %v951_v3 = vadd.f32 %v3372_v52, %v950_v26  ;;  %v3376_v49 = vpop.eup %3375  ;;  %vm968_vm15 = vweird.f32 %v3374_v17  ;;  %v5805_v30 = vsel %vm4373_vm4, %v4657_v51, %v4660_v60 }
 0x1e9   :  { %v940_v46 = vsel %vm939_vm11, %v3370_v56, %v936_v41  ;;  %vm969_vm7 = vmor %vm967_vm5, %vm968_vm15  ;;  %v974_v56 = vor.u32 1.1754944e-38, %v973_v12 }
 0x1ea   :  { %v964_v15 = vsub.f32 1.0, %v963_v20  ;;  %v945_v23 = vsel %vm942_vm13, %v944_v25, %v940_v46  ;;  %v955_v63 = vsel %vm954_vm12, %v3372_v52, %v951_v3  ;;  %v5807_v46 = vld [vmem:[#allocation76_spill] sm:$0xff] }
 0x1eb   :  { %v960_v57 = vsel %vm957_vm14, %v959_v5, %v955_v63  ;;  %v979_v55 = vmul.f32 %v3376_v49, %v945_v23  ;;  %v5808_v49 = vld [vmem:[#allocation78_spill] sm:$0xff] }
 0x1ec   :  { %v965_v1 = vmul.f32 %v3374_v17, %v964_v15  ;;  %v978_v37 = vmul.f32 %v960_v57, %v4746_v47 }
 0x1ee   :  { %v4803_v8 = vadd.f32 %v979_v55, %v978_v37  ;;  %v966_v45 = vadd.f32 %v3374_v17, %v965_v1  ;;  %v996_v1 = vsel %vm560_vm1, %v4550_v2, %v4557_v34  ;;  %v5809_v34 = vsel %vm4318_vm2, %v5807_v46, %v5808_v49 }
 0x1f0   :  { %3377 = vtanh.f32 %v4803_v8  ;;  %v970_v41 = vsel %vm969_vm7, %v3374_v17, %v966_v45 }
 0x1f1   :  { %v975_v62 = vsel %vm972_vm8, %v974_v56, %v970_v41 }
 0x1f6   :  { %v3378_v3 = vpop.eup %3377 }
 0x1f7   :  { %v982_v63 = vmul.f32 %v3378_v3, %v975_v62 }
 0x1f9   :  { %984 = vst.msk [vmem:[#allocation3 + $0x8] sm:$0xff] %vm190_vm0, %v982_v63  ;;  %v987_v15 = vpack.c.bf16 %v982_v63, %v982_v63 }
 0x1fa   :  { %986 = vst.msk [vmem:[#allocation3 + $0x70] sm:$0xff] %vm853_vm6, %v982_v63 }
 0x1fb   :  { %1008 = vmatmul.bf16.vlgmr.msrb.gmra.mxu0 %v987_v15  ;;  %1021 = vmatmul.bf16.vlgmr.msra.gmra.mxu1 %v987_v15 }
 0x1fc   :  { %1034 = vmatmul.bf16.vlgmr.msrb.gmra.mxu2 %v987_v15  ;;  %1047 = vmatmul.bf16.vlgmr.msrb.gmra.mxu3 %v987_v15 }
 0x1fd   :  { %1264 = vmatpush.bf16.msrb.mxu0 %v3829_v54  ;;  %1277 = vmatpush.bf16.msra.mxu1 %v3870_v6 }
 0x1fe   :  { %1290 = vmatpush.bf16.msrb.mxu2 %v3797_v44  ;;  %1303 = vmatpush.bf16.msrb.mxu3 %v3808_v48 }
 0x201   :  { %1265 = vmatpush.bf16.msrb.mxu0 %v3855_v0  ;;  %1278 = vmatpush.bf16.msra.mxu1 %v3883_v10 }
 0x202   :  { %1291 = vmatpush.bf16.msrb.mxu2 %v3837_v58  ;;  %1304 = vmatpush.bf16.msrb.mxu3 %v3867_v4 }
 0x205   :  { %1266 = vmatpush.bf16.msrb.mxu0 %v3912_v19  ;;  %1279 = vmatpush.bf16.msra.mxu1 %v3899_v14 }
 0x206   :  { %1292 = vmatpush.bf16.msrb.mxu2 %v3910_v18  ;;  %1305 = vmatpush.bf16.msrb.mxu3 %v3920_v22 }
 0x209   :  { %1267 = vmatpush.bf16.msrb.mxu0 %v3955_v32  ;;  %1280 = vmatpush.bf16.msra.mxu1 %v3942_v27 }
 0x20a   :  { %1293 = vmatpush.bf16.msrb.mxu2 %v3953_v31  ;;  %1306 = vmatpush.bf16.msrb.mxu3 %v5783_v61 }
 0x20d   :  { %1268 = vmatpush.bf16.msrb.mxu0 %v5784_v13  ;;  %1281 = vmatpush.bf16.msra.mxu1 %v5785_v29 }
 0x20e   :  { %1294 = vmatpush.bf16.msrb.mxu2 %v5786_v21  ;;  %1307 = vmatpush.bf16.msrb.mxu3 %v5787_v40 }
 0x211   :  { %1269 = vmatpush.bf16.msrb.mxu0 %v5788_v36  ;;  %1282 = vmatpush.bf16.msra.mxu1 %v5789_v38 }
 0x212   :  { %1295 = vmatpush.bf16.msrb.mxu2 %v5790_v42  ;;  %1308 = vmatpush.bf16.msrb.mxu3 %v5791_v9 }
 0x215   :  { %1270 = vmatpush.bf16.msrb.mxu0 %v5792_v33  ;;  %1283 = vmatpush.bf16.msra.mxu1 %v5793_v24 }
 0x216   :  { %1296 = vmatpush.bf16.msrb.mxu2 %v5794_v16  ;;  %1309 = vmatpush.bf16.msrb.mxu3 %v5795_v28 }
 0x219   :  { %1271 = vmatpush.bf16.msrb.mxu0 %v5796_v39  ;;  %1284 = vmatpush.bf16.msra.mxu1 %v5797_v59 }
 0x21a   :  { %1297 = vmatpush.bf16.msrb.mxu2 %v5798_v11  ;;  %1310 = vmatpush.bf16.msrb.mxu3 %v5799_v35 }
 0x278   :  { %v1009_v55 = vpop.f32.mrf.mxu0  ;;  %v1022_v17 = vpop.f32.mrf.mxu1 }
 0x279   :  { %v1010_v47 = vadd.f32 %v1009_v55, %v996_v1  ;;  %v1023_v52 = vadd.f32 %v1022_v17, %v5805_v30  ;;  %v5811_v55 = vld [vmem:[#allocation77_spill] sm:$0xff]  ;;  %v5812_v17 = vld [vmem:[#allocation79_spill] sm:$0xff] }
 0x27b   :  { %v3199_v7 = vmul.f32 -1.442695, %v1010_v47  ;;  %v3200_v26 = vmul.f32 -1.442695, %v1023_v52  ;;  %v5813_v47 = vsel %vm4322_vm3, %v5811_v55, %v5812_v17 }
 0x27d   :  { %3379 = vpow2.f32 %v3199_v7 }
 0x27e   :  { %3381 = vpow2.f32 %v3200_v26 }
 0x27f   :  { %v1035_v20 = vpop.f32.mrf.mxu2  ;;  %v1048_v25 = vpop.f32.mrf.mxu3 }
 0x280   :  { %v1036_v2 = vadd.f32 %v1035_v20, %v5809_v34  ;;  %v1011_v23 = vpop.f32.mrf.mxu0  ;;  %v1024_v57 = vpop.f32.mrf.mxu1  ;;  %v1049_v30 = vadd.f32 %v1048_v25, %v5813_v47 }
 0x282   :  { %v3201_v37 = vmul.f32 -1.442695, %v1036_v2 }
 0x283   :  { %v3380_v45 = vpop.eup %3379 }
 0x284   :  { %v3382_v12 = vpop.eup %3381  ;;  %v1061_v43 = vadd.f32 1.0, %v3380_v45  ;;  %3383 = vpow2.f32 %v3201_v37 }
 0x285   :  { %v1062_v41 = vadd.f32 1.0, %v3382_v12 }
 0x286   :  { %3385 = vrcp.f32 %v1061_v43  ;;  %v1075_v2 = vand.u32 2147483648, %v1061_v43  ;;  %v1073_v37 = vand.u32 2147483647, %v1061_v43  ;;  %vm1069_vm11 = vweird.f32 %v1061_v43 }
 0x287   :  { %3387 = vrcp.f32 %v1062_v41  ;;  %v1037_v56 = vpop.f32.mrf.mxu2  ;;  %v1050_v3 = vpop.f32.mrf.mxu3  ;;  %v1090_v23 = vand.u32 2147483648, %v1062_v41  ;;  %v1088_v12 = vand.u32 2147483647, %v1062_v41  ;;  %vm1084_vm12 = vweird.f32 %v1062_v41 }
 0x288   :  { %vm1074_vm15 = vcmp.eq.f32.partialorder %v1073_v37, 8.507059e+37 }
 0x289   :  { %vm1089_vm5 = vcmp.eq.f32.partialorder %v1088_v12, 8.507059e+37 }
 0x28a   :  { %v3384_v62 = vpop.eup %3383 }
 0x28b   :  { %v1063_v63 = vadd.f32 1.0, %v3384_v62  ;;  %v1076_v62 = vor.u32 1.1754944e-38, %v1075_v2 }
 0x28c   :  { %v3386_v15 = vpop.eup %3385 }
 0x28d   :  { %v3388_v52 = vpop.eup %3387  ;;  %v1065_v7 = vmul.f32 %v3386_v15, %v1061_v43  ;;  %3389 = vrcp.f32 %v1063_v63  ;;  %vm1070_vm9 = vweird.f32 %v3386_v15  ;;  %v1105_v2 = vand.u32 2147483648, %v1063_v63 }
 0x28e   :  { %v1080_v26 = vmul.f32 %v3388_v52, %v1062_v41  ;;  %3391 = vtanh.f32 %v1049_v30  ;;  %vm1085_vm10 = vweird.f32 %v3388_v52  ;;  %vm1071_vm13 = vmor %vm1069_vm11, %vm1070_vm9  ;;  %vm1099_vm8 = vweird.f32 %v1063_v63 }
 0x28f   :  { %v1066_v20 = vsub.f32 1.0, %v1065_v7  ;;  %vm1086_vm14 = vmor %vm1084_vm12, %vm1085_vm10  ;;  %v1091_v7 = vor.u32 1.1754944e-38, %v1090_v23  ;;  %v1106_v37 = vor.u32 1.1754944e-38, %v1105_v2 }
 0x290   :  { %v1081_v34 = vsub.f32 1.0, %v1080_v26 }
 0x291   :  { %v1067_v57 = vmul.f32 %v3386_v15, %v1066_v20 }
 0x292   :  { %v1082_v45 = vmul.f32 %v3388_v52, %v1081_v34 }
 0x293   :  { %v3390_v56 = vpop.eup %3389  ;;  %v1068_v3 = vadd.f32 %v3386_v15, %v1067_v57 }
 0x294   :  { %v1095_v25 = vmul.f32 %v3390_v56, %v1063_v63  ;;  %v1083_v47 = vadd.f32 %v3388_v52, %v1082_v45  ;;  %v3392_v30 = vpop.eup %3391  ;;  %vm1100_vm7 = vweird.f32 %v3390_v56 }
 0x295   :  { %v1072_v26 = vsel %vm1071_vm13, %v3386_v15, %v1068_v3  ;;  %v1103_v15 = vand.u32 2147483647, %v1063_v63  ;;  %vm1101_vm9 = vmor %vm1099_vm8, %vm1100_vm7  ;;  %v5816_v3 = vld [vmem:[#allocation80_spill] sm:$0xff] }
 0x296   :  { %v1096_v55 = vsub.f32 1.0, %v1095_v25  ;;  %v1077_v20 = vsel %vm1074_vm15, %v1076_v62, %v1072_v26  ;;  %v1087_v17 = vsel %vm1086_vm14, %v3388_v52, %v1083_v47  ;;  %v5817_v25 = vld [vmem:[#allocation81_spill] sm:$0xff] }
 0x297   :  { %v1092_v34 = vsel %vm1089_vm5, %v1091_v7, %v1087_v17  ;;  %v1111_v46 = vmul.f32 %v3392_v30, %v1077_v20  ;;  %vm1104_vm10 = vcmp.eq.f32.partialorder %v1103_v15, 8.507059e+37  ;;  %v5818_v62 = vsel %vm4373_vm4, %v5816_v3, %v5817_v25 }
 0x298   :  { %v1097_v49 = vmul.f32 %v3390_v56, %v1096_v55  ;;  %v1110_v57 = vmul.f32 %v1092_v34, %v4803_v8  ;;  %v5814_v8 = vld [vmem:[#allocation66_spill] sm:$0xff]  ;;  %v5819_v34 = vld [vmem:[#allocation69_spill] sm:$0xff] }
 0x29a   :  { %v4860_v43 = vadd.f32 %v1111_v46, %v1110_v57  ;;  %v1098_v41 = vadd.f32 %v3390_v56, %v1097_v49  ;;  %v5815_v46 = vld [vmem:[#allocation64_spill] sm:$0xff]  ;;  %v5820_v57 = vld [vmem:[#allocation71_spill] sm:$0xff] }
 0x29b   :  { %v1128_v49 = vsel %vm560_vm1, %v5815_v46, %v5814_v8 }
 0x29c   :  { %3393 = vtanh.f32 %v4860_v43  ;;  %v1102_v23 = vsel %vm1101_vm9, %v3390_v56, %v1098_v41  ;;  %v5821_v41 = vsel %vm4318_vm2, %v5819_v34, %v5820_v57 }
 0x29d   :  { %v1107_v45 = vsel %vm1104_vm10, %v1106_v37, %v1102_v23 }
 0x2a2   :  { %v3394_v52 = vpop.eup %3393 }
 0x2a3   :  { %v1114_v17 = vmul.f32 %v3394_v52, %v1107_v45 }
 0x2a5   :  { %1116 = vst.msk [vmem:[#allocation3 + $0x10] sm:$0xff] %vm190_vm0, %v1114_v17  ;;  %v1119_v55 = vpack.c.bf16 %v1114_v17, %v1114_v17 }
 0x2a6   :  { %1118 = vst.msk [vmem:[#allocation3 + $0x68] sm:$0xff] %vm853_vm6, %v1114_v17 }
 0x2a7   :  { %1140 = vmatmul.bf16.vlgmr.msra.gmra.mxu0 %v1119_v55  ;;  %1153 = vmatmul.bf16.vlgmr.msrb.gmra.mxu1 %v1119_v55 }
 0x2a8   :  { %1166 = vmatmul.bf16.vlgmr.msra.gmra.mxu2 %v1119_v55  ;;  %1179 = vmatmul.bf16.vlgmr.msra.gmra.mxu3 %v1119_v55 }
 0x2a9   :  { %1396 = vmatpush.bf16.msra.mxu0 %v3829_v54  ;;  %1409 = vmatpush.bf16.msrb.mxu1 %v3870_v6 }
 0x2aa   :  { %1422 = vmatpush.bf16.msra.mxu2 %v3797_v44  ;;  %1435 = vmatpush.bf16.msra.mxu3 %v3808_v48 }
 0x2ad   :  { %1397 = vmatpush.bf16.msra.mxu0 %v3855_v0  ;;  %1410 = vmatpush.bf16.msrb.mxu1 %v3883_v10 }
 0x2ae   :  { %1423 = vmatpush.bf16.msra.mxu2 %v3837_v58  ;;  %1436 = vmatpush.bf16.msra.mxu3 %v3867_v4 }
 0x2b1   :  { %1398 = vmatpush.bf16.msra.mxu0 %v3912_v19  ;;  %1411 = vmatpush.bf16.msrb.mxu1 %v3899_v14 }
 0x2b2   :  { %1424 = vmatpush.bf16.msra.mxu2 %v3910_v18  ;;  %1437 = vmatpush.bf16.msra.mxu3 %v3920_v22 }
 0x2b5   :  { %1399 = vmatpush.bf16.msra.mxu0 %v3955_v32  ;;  %1412 = vmatpush.bf16.msrb.mxu1 %v3942_v27 }
 0x2b6   :  { %1425 = vmatpush.bf16.msra.mxu2 %v3953_v31  ;;  %1438 = vmatpush.bf16.msra.mxu3 %v5783_v61 }
 0x2b9   :  { %1400 = vmatpush.bf16.msra.mxu0 %v5784_v13  ;;  %1413 = vmatpush.bf16.msrb.mxu1 %v5785_v29 }
 0x2ba   :  { %1426 = vmatpush.bf16.msra.mxu2 %v5786_v21  ;;  %1439 = vmatpush.bf16.msra.mxu3 %v5787_v40 }
 0x2bd   :  { %1401 = vmatpush.bf16.msra.mxu0 %v5788_v36  ;;  %1414 = vmatpush.bf16.msrb.mxu1 %v5789_v38 }
 0x2be   :  { %1427 = vmatpush.bf16.msra.mxu2 %v5790_v42  ;;  %1440 = vmatpush.bf16.msra.mxu3 %v5791_v9 }
 0x2c1   :  { %1402 = vmatpush.bf16.msra.mxu0 %v5792_v33  ;;  %1415 = vmatpush.bf16.msrb.mxu1 %v5793_v24 }
 0x2c2   :  { %1428 = vmatpush.bf16.msra.mxu2 %v5794_v16  ;;  %1441 = vmatpush.bf16.msra.mxu3 %v5795_v28 }
 0x2c5   :  { %1403 = vmatpush.bf16.msra.mxu0 %v5796_v39  ;;  %1416 = vmatpush.bf16.msrb.mxu1 %v5797_v59 }
 0x2c6   :  { %1429 = vmatpush.bf16.msra.mxu2 %v5798_v11  ;;  %1442 = vmatpush.bf16.msra.mxu3 %v5799_v35 }
 0x324   :  { %v1141_v63 = vpop.f32.mrf.mxu0  ;;  %v1154_v12 = vpop.f32.mrf.mxu1 }
 0x325   :  { %v1142_v56 = vadd.f32 %v1141_v63, %v1128_v49  ;;  %v1155_v47 = vadd.f32 %v1154_v12, %v5818_v62  ;;  %v5823_v62 = vld [vmem:[#allocation72_spill] sm:$0xff] }
 0x327   :  { %v3202_v7 = vmul.f32 -1.442695, %v1142_v56  ;;  %v3203_v26 = vmul.f32 -1.442695, %v1155_v47  ;;  %v5822_v56 = vld [vmem:[#allocation70_spill] sm:$0xff] }
 0x328   :  { %v5824_v47 = vsel %vm4322_vm3, %v5822_v56, %v5823_v62 }
 0x329   :  { %3395 = vpow2.f32 %v3202_v7 }
 0x32a   :  { %3397 = vpow2.f32 %v3203_v26 }
 0x32b   :  { %v1167_v30 = vpop.f32.mrf.mxu2  ;;  %v1180_v20 = vpop.f32.mrf.mxu3 }
 0x32c   :  { %v1168_v2 = vadd.f32 %v1167_v30, %v5821_v41  ;;  %v1143_v15 = vpop.f32.mrf.mxu0  ;;  %v1156_v23 = vpop.f32.mrf.mxu1  ;;  %v1181_v7 = vadd.f32 %v1180_v20, %v5824_v47 }
 0x32e   :  { %v3204_v37 = vmul.f32 -1.442695, %v1168_v2 }
 0x32f   :  { %v3396_v52 = vpop.eup %3395 }
 0x330   :  { %v3398_v45 = vpop.eup %3397  ;;  %v1193_v17 = vadd.f32 1.0, %v3396_v52  ;;  %3399 = vpow2.f32 %v3204_v37 }
 0x331   :  { %v1194_v55 = vadd.f32 1.0, %v3398_v45 }
 0x332   :  { %3401 = vrcp.f32 %v1193_v17  ;;  %v1207_v23 = vand.u32 2147483648, %v1193_v17  ;;  %v1205_v45 = vand.u32 2147483647, %v1193_v17  ;;  %vm1201_vm13 = vweird.f32 %v1193_v17 }
 0x333   :  { %3403 = vrcp.f32 %v1194_v55  ;;  %v1169_v8 = vpop.f32.mrf.mxu2  ;;  %v1182_v46 = vpop.f32.mrf.mxu3  ;;  %v1222_v37 = vand.u32 2147483648, %v1194_v55  ;;  %vm1216_vm14 = vweird.f32 %v1194_v55 }
 0x334   :  { %v1220_v46 = vand.u32 2147483647, %v1194_v55  ;;  %v1208_v47 = vor.u32 1.1754944e-38, %v1207_v23  ;;  %vm1206_vm7 = vcmp.eq.f32.partialorder %v1205_v45, 8.507059e+37 }
 0x336   :  { %v3400_v49 = vpop.eup %3399  ;;  %vm1221_vm8 = vcmp.eq.f32.partialorder %v1220_v46, 8.507059e+37  ;;  %v5827_v46 = vld [vmem:[#allocation73_spill] sm:$0xff] }
 0x337   :  { %v1195_v63 = vadd.f32 1.0, %v3400_v49 }
 0x338   :  { %v3402_v12 = vpop.eup %3401 }
 0x339   :  { %v3404_v26 = vpop.eup %3403  ;;  %v1197_v30 = vmul.f32 %v3402_v12, %v1193_v17  ;;  %3405 = vrcp.f32 %v1195_v63  ;;  %vm1202_vm11 = vweird.f32 %v3402_v12  ;;  %v1237_v23 = vand.u32 2147483648, %v1195_v63 }
 0x33a   :  { %v1212_v41 = vmul.f32 %v3404_v26, %v1194_v55  ;;  %3407 = vtanh.f32 %v1181_v7  ;;  %vm1217_vm12 = vweird.f32 %v3404_v26  ;;  %vm1203_vm15 = vmor %vm1201_vm13, %vm1202_vm11  ;;  %vm1231_vm10 = vweird.f32 %v1195_v63 }
 0x33b   :  { %v1198_v2 = vsub.f32 1.0, %v1197_v30  ;;  %vm1218_vm5 = vmor %vm1216_vm14, %vm1217_vm12  ;;  %v1223_v30 = vor.u32 1.1754944e-38, %v1222_v37  ;;  %v1238_v37 = vor.u32 1.1754944e-38, %v1237_v23 }
 0x33c   :  { %v1213_v15 = vsub.f32 1.0, %v1212_v41 }
 0x33d   :  { %v1199_v52 = vmul.f32 %v3402_v12, %v1198_v2 }
 0x33e   :  { %v1214_v8 = vmul.f32 %v3404_v26, %v1213_v15 }
 0x33f   :  { %v3406_v49 = vpop.eup %3405  ;;  %v1200_v51 = vadd.f32 %v3402_v12, %v1199_v52 }
 0x340   :  { %v1227_v20 = vmul.f32 %v3406_v49, %v1195_v63  ;;  %v1215_v60 = vadd.f32 %v3404_v26, %v1214_v8  ;;  %v3408_v7 = vpop.eup %3407  ;;  %vm1232_vm9 = vweird.f32 %v3406_v49 }
 0x341   :  { %v1204_v41 = vsel %vm1203_vm15, %v3402_v12, %v1200_v51  ;;  %v1235_v51 = vand.u32 2147483647, %v1195_v63  ;;  %vm1233_vm11 = vmor %vm1231_vm10, %vm1232_vm9 }
 0x342   :  { %v1228_v56 = vsub.f32 1.0, %v1227_v20  ;;  %v1209_v2 = vsel %vm1206_vm7, %v1208_v47, %v1204_v41  ;;  %v1219_v62 = vsel %vm1218_vm5, %v3404_v26, %v1215_v60 }
 0x343   :  { %v1224_v15 = vsel %vm1221_vm8, %v1223_v30, %v1219_v62  ;;  %v1243_v34 = vmul.f32 %v3408_v7, %v1209_v2  ;;  %vm1236_vm12 = vcmp.eq.f32.partialorder %v1235_v51, 8.507059e+37 }
 0x344   :  { %v1229_v57 = vmul.f32 %v3406_v49, %v1228_v56  ;;  %v1242_v52 = vmul.f32 %v1224_v15, %v4860_v43  ;;  %v5825_v43 = vld [vmem:[#allocation57_spill] sm:$0xff]  ;;  %v5830_v15 = vld [vmem:[#allocation60_spill] sm:$0xff] }
 0x346   :  { %v4917_v17 = vadd.f32 %v1243_v34, %v1242_v52  ;;  %v1230_v55 = vadd.f32 %v3406_v49, %v1229_v57  ;;  %v5826_v34 = vld [vmem:[#allocation55_spill] sm:$0xff]  ;;  %v5831_v52 = vld [vmem:[#allocation62_spill] sm:$0xff] }
 0x347   :  { %v1260_v57 = vsel %vm560_vm1, %v5826_v34, %v5825_v43 }
 0x348   :  { %3409 = vtanh.f32 %v4917_v17  ;;  %v1234_v12 = vsel %vm1233_vm11, %v3406_v49, %v1230_v55  ;;  %v5828_v49 = vld [vmem:[#allocation74_spill] sm:$0xff]  ;;  %v5832_v55 = vsel %vm4318_vm2, %v5830_v15, %v5831_v52 }
 0x349   :  { %v1239_v26 = vsel %vm1236_vm12, %v1238_v37, %v1234_v12  ;;  %v5829_v20 = vsel %vm4373_vm4, %v5827_v46, %v5828_v49 }
 0x34e   :  { %v3410_v60 = vpop.eup %3409 }
 0x34f   :  { %v1246_v62 = vmul.f32 %v3410_v60, %v1239_v26 }
 0x351   :  { %1248 = vst.msk [vmem:[#allocation3 + $0x18] sm:$0xff] %vm190_vm0, %v1246_v62  ;;  %v1251_v56 = vpack.c.bf16 %v1246_v62, %v1246_v62 }
 0x352   :  { %1250 = vst.msk [vmem:[#allocation3 + $0x60] sm:$0xff] %vm853_vm6, %v1246_v62 }
 0x353   :  { %1272 = vmatmul.bf16.vlgmr.msrb.gmra.mxu0 %v1251_v56  ;;  %1285 = vmatmul.bf16.vlgmr.msra.gmra.mxu1 %v1251_v56 }
 0x354   :  { %1298 = vmatmul.bf16.vlgmr.msrb.gmra.mxu2 %v1251_v56  ;;  %1311 = vmatmul.bf16.vlgmr.msrb.gmra.mxu3 %v1251_v56 }
 0x355   :  { %1528 = vmatpush.bf16.msrb.mxu0 %v3829_v54  ;;  %1541 = vmatpush.bf16.msra.mxu1 %v3870_v6 }
 0x356   :  { %1554 = vmatpush.bf16.msrb.mxu2 %v3797_v44  ;;  %1567 = vmatpush.bf16.msrb.mxu3 %v3808_v48 }
 0x359   :  { %1529 = vmatpush.bf16.msrb.mxu0 %v3855_v0  ;;  %1542 = vmatpush.bf16.msra.mxu1 %v3883_v10 }
 0x35a   :  { %1555 = vmatpush.bf16.msrb.mxu2 %v3837_v58  ;;  %1568 = vmatpush.bf16.msrb.mxu3 %v3867_v4 }
 0x35d   :  { %1530 = vmatpush.bf16.msrb.mxu0 %v3912_v19  ;;  %1543 = vmatpush.bf16.msra.mxu1 %v3899_v14 }
 0x35e   :  { %1556 = vmatpush.bf16.msrb.mxu2 %v3910_v18  ;;  %1569 = vmatpush.bf16.msrb.mxu3 %v3920_v22 }
 0x361   :  { %1531 = vmatpush.bf16.msrb.mxu0 %v3955_v32  ;;  %1544 = vmatpush.bf16.msra.mxu1 %v3942_v27 }
 0x362   :  { %1557 = vmatpush.bf16.msrb.mxu2 %v3953_v31  ;;  %1570 = vmatpush.bf16.msrb.mxu3 %v5783_v61 }
 0x365   :  { %1532 = vmatpush.bf16.msrb.mxu0 %v5784_v13  ;;  %1545 = vmatpush.bf16.msra.mxu1 %v5785_v29 }
 0x366   :  { %1558 = vmatpush.bf16.msrb.mxu2 %v5786_v21  ;;  %1571 = vmatpush.bf16.msrb.mxu3 %v5787_v40 }
 0x369   :  { %1533 = vmatpush.bf16.msrb.mxu0 %v5788_v36  ;;  %1546 = vmatpush.bf16.msra.mxu1 %v5789_v38 }
 0x36a   :  { %1559 = vmatpush.bf16.msrb.mxu2 %v5790_v42  ;;  %1572 = vmatpush.bf16.msrb.mxu3 %v5791_v9 }
 0x36d   :  { %1534 = vmatpush.bf16.msrb.mxu0 %v5792_v33  ;;  %1547 = vmatpush.bf16.msra.mxu1 %v5793_v24 }
 0x36e   :  { %1560 = vmatpush.bf16.msrb.mxu2 %v5794_v16  ;;  %1573 = vmatpush.bf16.msrb.mxu3 %v5795_v28 }
 0x371   :  { %1535 = vmatpush.bf16.msrb.mxu0 %v5796_v39  ;;  %1548 = vmatpush.bf16.msra.mxu1 %v5797_v59 }
 0x372   :  { %1561 = vmatpush.bf16.msrb.mxu2 %v5798_v11  ;;  %1574 = vmatpush.bf16.msrb.mxu3 %v5799_v35 }
 0x3d0   :  { %v1273_v63 = vpop.f32.mrf.mxu0  ;;  %v1286_v45 = vpop.f32.mrf.mxu1 }
 0x3d1   :  { %v1274_v8 = vadd.f32 %v1273_v63, %v1260_v57  ;;  %v1287_v47 = vadd.f32 %v1286_v45, %v5829_v20  ;;  %v5834_v20 = vld [vmem:[#allocation63_spill] sm:$0xff] }
 0x3d3   :  { %v3205_v30 = vmul.f32 -1.442695, %v1274_v8  ;;  %v3206_v41 = vmul.f32 -1.442695, %v1287_v47  ;;  %v5833_v8 = vld [vmem:[#allocation61_spill] sm:$0xff] }
 0x3d4   :  { %v5835_v47 = vsel %vm4322_vm3, %v5833_v8, %v5834_v20 }
 0x3d5   :  { %3411 = vpow2.f32 %v3205_v30 }
 0x3d6   :  { %3413 = vpow2.f32 %v3206_v41 }
 0x3d7   :  { %v1299_v7 = vpop.f32.mrf.mxu2  ;;  %v1312_v2 = vpop.f32.mrf.mxu3 }
 0x3d8   :  { %v1300_v23 = vadd.f32 %v1299_v7, %v5832_v55  ;;  %v1275_v51 = vpop.f32.mrf.mxu0  ;;  %v1288_v12 = vpop.f32.mrf.mxu1  ;;  %v1313_v30 = vadd.f32 %v1312_v2, %v5835_v47 }
 0x3da   :  { %v3207_v37 = vmul.f32 -1.442695, %v1300_v23 }
 0x3db   :  { %v3412_v60 = vpop.eup %3411 }
 0x3dc   :  { %v3414_v26 = vpop.eup %3413  ;;  %v1325_v62 = vadd.f32 1.0, %v3412_v60  ;;  %3415 = vpow2.f32 %v3207_v37 }
 0x3dd   :  { %v1326_v56 = vadd.f32 1.0, %v3414_v26 }
 0x3de   :  { %3417 = vrcp.f32 %v1325_v62  ;;  %v1339_v12 = vand.u32 2147483648, %v1325_v62  ;;  %v1337_v26 = vand.u32 2147483647, %v1325_v62  ;;  %vm1333_vm15 = vweird.f32 %v1325_v62 }
 0x3df   :  { %3419 = vrcp.f32 %v1326_v56  ;;  %v1301_v43 = vpop.f32.mrf.mxu2  ;;  %v1314_v34 = vpop.f32.mrf.mxu3  ;;  %v1354_v37 = vand.u32 2147483648, %v1326_v56  ;;  %vm1348_vm5 = vweird.f32 %v1326_v56 }
 0x3e0   :  { %v1352_v34 = vand.u32 2147483647, %v1326_v56  ;;  %v1340_v47 = vor.u32 1.1754944e-38, %v1339_v12  ;;  %vm1338_vm9 = vcmp.eq.f32.partialorder %v1337_v26, 8.507059e+37 }
 0x3e2   :  { %v3416_v57 = vpop.eup %3415  ;;  %vm1353_vm10 = vcmp.eq.f32.partialorder %v1352_v34, 8.507059e+37  ;;  %v5838_v34 = vld [vmem:[#allocation65_spill] sm:$0xff] }
 0x3e3   :  { %v1327_v63 = vadd.f32 1.0, %v3416_v57 }
 0x3e4   :  { %v3418_v45 = vpop.eup %3417 }
 0x3e5   :  { %v3420_v41 = vpop.eup %3419  ;;  %v1329_v7 = vmul.f32 %v3418_v45, %v1325_v62  ;;  %3421 = vrcp.f32 %v1327_v63  ;;  %vm1334_vm13 = vweird.f32 %v3418_v45  ;;  %v1369_v12 = vand.u32 2147483648, %v1327_v63 }
 0x3e6   :  { %v1344_v55 = vmul.f32 %v3420_v41, %v1326_v56  ;;  %3423 = vtanh.f32 %v1313_v30  ;;  %vm1349_vm14 = vweird.f32 %v3420_v41  ;;  %vm1335_vm7 = vmor %vm1333_vm15, %vm1334_vm13  ;;  %vm1363_vm12 = vweird.f32 %v1327_v63 }
 0x3e7   :  { %v1330_v23 = vsub.f32 1.0, %v1329_v7  ;;  %vm1350_vm8 = vmor %vm1348_vm5, %vm1349_vm14  ;;  %v1355_v7 = vor.u32 1.1754944e-38, %v1354_v37  ;;  %v1370_v37 = vor.u32 1.1754944e-38, %v1369_v12 }
 0x3e8   :  { %v1345_v51 = vsub.f32 1.0, %v1344_v55 }
 0x3e9   :  { %v1331_v60 = vmul.f32 %v3418_v45, %v1330_v23 }
 0x3ea   :  { %v1346_v43 = vmul.f32 %v3420_v41, %v1345_v51 }
 0x3eb   :  { %v3422_v57 = vpop.eup %3421  ;;  %v1332_v3 = vadd.f32 %v3418_v45, %v1331_v60 }
 0x3ec   :  { %v1359_v2 = vmul.f32 %v3422_v57, %v1327_v63  ;;  %v1347_v25 = vadd.f32 %v3420_v41, %v1346_v43  ;;  %v3424_v30 = vpop.eup %3423  ;;  %vm1364_vm11 = vweird.f32 %v3422_v57 }
 0x3ed   :  { %v1336_v55 = vsel %vm1335_vm7, %v3418_v45, %v1332_v3  ;;  %v1367_v3 = vand.u32 2147483647, %v1327_v63  ;;  %vm1365_vm13 = vmor %vm1363_vm12, %vm1364_vm11 }
 0x3ee   :  { %v1360_v8 = vsub.f32 1.0, %v1359_v2  ;;  %v1341_v23 = vsel %vm1338_vm9, %v1340_v47, %v1336_v55  ;;  %v1351_v20 = vsel %vm1350_vm8, %v3420_v41, %v1347_v25 }
 0x3ef   :  { %v1356_v51 = vsel %vm1353_vm10, %v1355_v7, %v1351_v20  ;;  %v1375_v15 = vmul.f32 %v3424_v30, %v1341_v23  ;;  %vm1368_vm14 = vcmp.eq.f32.partialorder %v1367_v3, 8.507059e+37 }
 0x3f0   :  { %v1361_v52 = vmul.f32 %v3422_v57, %v1360_v8  ;;  %v1374_v60 = vmul.f32 %v1356_v51, %v4917_v17  ;;  %v5836_v17 = vld [vmem:[#allocation48_spill] sm:$0xff]  ;;  %v5841_v51 = vld [vmem:[#allocation51_spill] sm:$0xff] }
 0x3f2   :  { %v4974_v62 = vadd.f32 %v1375_v15, %v1374_v60  ;;  %v1362_v56 = vadd.f32 %v3422_v57, %v1361_v52  ;;  %v5837_v15 = vld [vmem:[#allocation46_spill] sm:$0xff]  ;;  %v5842_v60 = vld [vmem:[#allocation53_spill] sm:$0xff] }
 0x3f3   :  { %v1392_v52 = vsel %vm560_vm1, %v5837_v15, %v5836_v17 }
 0x3f4   :  { %3425 = vtanh.f32 %v4974_v62  ;;  %v1366_v45 = vsel %vm1365_vm13, %v3422_v57, %v1362_v56  ;;  %v5839_v57 = vld [vmem:[#allocation67_spill] sm:$0xff]  ;;  %v5843_v56 = vsel %vm4318_vm2, %v5841_v51, %v5842_v60 }
 0x3f5   :  { %v1371_v41 = vsel %vm1368_vm14, %v1370_v37, %v1366_v45  ;;  %v5840_v2 = vsel %vm4373_vm4, %v5838_v34, %v5839_v57 }
 0x3fa   :  { %v3426_v25 = vpop.eup %3425 }
 0x3fb   :  { %v1378_v20 = vmul.f32 %v3426_v25, %v1371_v41 }
 0x3fd   :  { %1380 = vst.msk [vmem:[#allocation3 + $0x20] sm:$0xff] %vm190_vm0, %v1378_v20  ;;  %v1383_v8 = vpack.c.bf16 %v1378_v20, %v1378_v20 }
 0x3fe   :  { %1382 = vst.msk [vmem:[#allocation3 + $0x58] sm:$0xff] %vm853_vm6, %v1378_v20 }
 0x3ff   :  { %1404 = vmatmul.bf16.vlgmr.msra.gmra.mxu0 %v1383_v8  ;;  %1417 = vmatmul.bf16.vlgmr.msrb.gmra.mxu1 %v1383_v8 }
 0x400   :  { %1430 = vmatmul.bf16.vlgmr.msra.gmra.mxu2 %v1383_v8  ;;  %1443 = vmatmul.bf16.vlgmr.msra.gmra.mxu3 %v1383_v8 }
 0x401   :  { %1660 = vmatpush.bf16.msra.mxu0 %v3829_v54  ;;  %1673 = vmatpush.bf16.msrb.mxu1 %v3870_v6 }
 0x402   :  { %1686 = vmatpush.bf16.msra.mxu2 %v3797_v44  ;;  %1699 = vmatpush.bf16.msra.mxu3 %v3808_v48 }
 0x405   :  { %1661 = vmatpush.bf16.msra.mxu0 %v3855_v0  ;;  %1674 = vmatpush.bf16.msrb.mxu1 %v3883_v10 }
 0x406   :  { %1687 = vmatpush.bf16.msra.mxu2 %v3837_v58  ;;  %1700 = vmatpush.bf16.msra.mxu3 %v3867_v4 }
 0x409   :  { %1662 = vmatpush.bf16.msra.mxu0 %v3912_v19  ;;  %1675 = vmatpush.bf16.msrb.mxu1 %v3899_v14 }
 0x40a   :  { %1688 = vmatpush.bf16.msra.mxu2 %v3910_v18  ;;  %1701 = vmatpush.bf16.msra.mxu3 %v3920_v22 }
 0x40d   :  { %1663 = vmatpush.bf16.msra.mxu0 %v3955_v32  ;;  %1676 = vmatpush.bf16.msrb.mxu1 %v3942_v27 }
 0x40e   :  { %1689 = vmatpush.bf16.msra.mxu2 %v3953_v31  ;;  %1702 = vmatpush.bf16.msra.mxu3 %v5783_v61 }
 0x411   :  { %1664 = vmatpush.bf16.msra.mxu0 %v5784_v13  ;;  %1677 = vmatpush.bf16.msrb.mxu1 %v5785_v29 }
 0x412   :  { %1690 = vmatpush.bf16.msra.mxu2 %v5786_v21  ;;  %1703 = vmatpush.bf16.msra.mxu3 %v5787_v40 }
 0x415   :  { %1665 = vmatpush.bf16.msra.mxu0 %v5788_v36  ;;  %1678 = vmatpush.bf16.msrb.mxu1 %v5789_v38 }
 0x416   :  { %1691 = vmatpush.bf16.msra.mxu2 %v5790_v42  ;;  %1704 = vmatpush.bf16.msra.mxu3 %v5791_v9 }
 0x419   :  { %1666 = vmatpush.bf16.msra.mxu0 %v5792_v33  ;;  %1679 = vmatpush.bf16.msrb.mxu1 %v5793_v24 }
 0x41a   :  { %1692 = vmatpush.bf16.msra.mxu2 %v5794_v16  ;;  %1705 = vmatpush.bf16.msra.mxu3 %v5795_v28 }
 0x41d   :  { %1667 = vmatpush.bf16.msra.mxu0 %v5796_v39  ;;  %1680 = vmatpush.bf16.msrb.mxu1 %v5797_v59 }
 0x41e   :  { %1693 = vmatpush.bf16.msra.mxu2 %v5798_v11  ;;  %1706 = vmatpush.bf16.msra.mxu3 %v5799_v35 }
 0x47c   :  { %v1405_v63 = vpop.f32.mrf.mxu0  ;;  %v1418_v26 = vpop.f32.mrf.mxu1 }
 0x47d   :  { %v1406_v43 = vadd.f32 %v1405_v63, %v1392_v52  ;;  %v1419_v47 = vadd.f32 %v1418_v26, %v5840_v2  ;;  %v5845_v2 = vld [vmem:[#allocation54_spill] sm:$0xff] }
 0x47f   :  { %v3208_v7 = vmul.f32 -1.442695, %v1406_v43  ;;  %v3209_v55 = vmul.f32 -1.442695, %v1419_v47  ;;  %v5844_v43 = vld [vmem:[#allocation52_spill] sm:$0xff] }
 0x480   :  { %v5846_v47 = vsel %vm4322_vm3, %v5844_v43, %v5845_v2 }
 0x481   :  { %3427 = vpow2.f32 %v3208_v7 }
 0x482   :  { %3429 = vpow2.f32 %v3209_v55 }
 0x483   :  { %v1431_v30 = vpop.f32.mrf.mxu2  ;;  %v1444_v23 = vpop.f32.mrf.mxu3 }
 0x484   :  { %v1432_v12 = vadd.f32 %v1431_v30, %v5843_v56  ;;  %v1407_v3 = vpop.f32.mrf.mxu0  ;;  %v1420_v45 = vpop.f32.mrf.mxu1  ;;  %v1445_v7 = vadd.f32 %v1444_v23, %v5846_v47 }
 0x486   :  { %v3210_v37 = vmul.f32 -1.442695, %v1432_v12 }
 0x487   :  { %v3428_v25 = vpop.eup %3427 }
 0x488   :  { %v3430_v41 = vpop.eup %3429  ;;  %v1457_v20 = vadd.f32 1.0, %v3428_v25  ;;  %3431 = vpow2.f32 %v3210_v37 }
 0x489   :  { %v1458_v8 = vadd.f32 1.0, %v3430_v41 }
 0x48a   :  { %3433 = vrcp.f32 %v1457_v20  ;;  %v1471_v45 = vand.u32 2147483648, %v1457_v20  ;;  %v1469_v41 = vand.u32 2147483647, %v1457_v20  ;;  %vm1465_vm7 = vweird.f32 %v1457_v20 }
 0x48b   :  { %3435 = vrcp.f32 %v1458_v8  ;;  %v1433_v17 = vpop.f32.mrf.mxu2  ;;  %v1446_v15 = vpop.f32.mrf.mxu3  ;;  %v1486_v37 = vand.u32 2147483648, %v1458_v8  ;;  %vm1480_vm8 = vweird.f32 %v1458_v8 }
 0x48c   :  { %v1484_v15 = vand.u32 2147483647, %v1458_v8  ;;  %v1472_v47 = vor.u32 1.1754944e-38, %v1471_v45  ;;  %vm1470_vm11 = vcmp.eq.f32.partialorder %v1469_v41, 8.507059e+37 }
 0x48e   :  { %v3432_v52 = vpop.eup %3431  ;;  %vm1485_vm12 = vcmp.eq.f32.partialorder %v1484_v15, 8.507059e+37  ;;  %v5849_v15 = vld [vmem:[#allocation56_spill] sm:$0xff] }
 0x48f   :  { %v1459_v63 = vadd.f32 1.0, %v3432_v52 }
 0x490   :  { %v3434_v26 = vpop.eup %3433 }
 0x491   :  { %v3436_v55 = vpop.eup %3435  ;;  %v1461_v30 = vmul.f32 %v3434_v26, %v1457_v20  ;;  %3437 = vrcp.f32 %v1459_v63  ;;  %vm1466_vm15 = vweird.f32 %v3434_v26  ;;  %v1501_v45 = vand.u32 2147483648, %v1459_v63 }
 0x492   :  { %v1476_v56 = vmul.f32 %v3436_v55, %v1458_v8  ;;  %3439 = vtanh.f32 %v1445_v7  ;;  %vm1481_vm5 = vweird.f32 %v3436_v55  ;;  %vm1467_vm9 = vmor %vm1465_vm7, %vm1466_vm15  ;;  %vm1495_vm14 = vweird.f32 %v1459_v63 }
 0x493   :  { %v1462_v12 = vsub.f32 1.0, %v1461_v30  ;;  %vm1482_vm10 = vmor %vm1480_vm8, %vm1481_vm5  ;;  %v1487_v30 = vor.u32 1.1754944e-38, %v1486_v37  ;;  %v1502_v37 = vor.u32 1.1754944e-38, %v1501_v45 }
 0x494   :  { %v1477_v3 = vsub.f32 1.0, %v1476_v56 }
 0x495   :  { %v1463_v25 = vmul.f32 %v3434_v26, %v1462_v12 }
 0x496   :  { %v1478_v17 = vmul.f32 %v3436_v55, %v1477_v3 }
 0x497   :  { %v3438_v52 = vpop.eup %3437  ;;  %v1464_v46 = vadd.f32 %v3434_v26, %v1463_v25 }
 0x498   :  { %v1491_v23 = vmul.f32 %v3438_v52, %v1459_v63  ;;  %v1479_v49 = vadd.f32 %v3436_v55, %v1478_v17  ;;  %v3440_v7 = vpop.eup %3439  ;;  %vm1496_vm13 = vweird.f32 %v3438_v52 }
 0x499   :  { %v1468_v56 = vsel %vm1467_vm9, %v3434_v26, %v1464_v46  ;;  %v1499_v46 = vand.u32 2147483647, %v1459_v63  ;;  %vm1497_vm15 = vmor %vm1495_vm14, %vm1496_vm13 }
 0x49a   :  { %v1492_v43 = vsub.f32 1.0, %v1491_v23  ;;  %v1473_v12 = vsel %vm1470_vm11, %v1472_v47, %v1468_v56  ;;  %v1483_v2 = vsel %vm1482_vm10, %v3436_v55, %v1479_v49 }
 0x49b   :  { %v1488_v3 = vsel %vm1485_vm12, %v1487_v30, %v1483_v2  ;;  %v1507_v51 = vmul.f32 %v3440_v7, %v1473_v12  ;;  %vm1500_vm5 = vcmp.eq.f32.partialorder %v1499_v46, 8.507059e+37 }
 0x49c   :  { %v1493_v60 = vmul.f32 %v3438_v52, %v1492_v43  ;;  %v1506_v25 = vmul.f32 %v1488_v3, %v4974_v62  ;;  %v5847_v62 = vld [vmem:[#allocation40_spill] sm:$0xff]  ;;  %v5852_v3 = vld [vmem:[#allocation43_spill] sm:$0xff] }
 0x49e   :  { %v5031_v20 = vadd.f32 %v1507_v51, %v1506_v25  ;;  %v1494_v8 = vadd.f32 %v3438_v52, %v1493_v60  ;;  %v5848_v51 = vld [vmem:[#allocation35_spill] sm:$0xff]  ;;  %v5853_v25 = vld [vmem:[#allocation44_spill] sm:$0xff] }
 0x49f   :  { %v1524_v60 = vsel %vm560_vm1, %v5848_v51, %v5847_v62 }
 0x4a0   :  { %3441 = vtanh.f32 %v5031_v20  ;;  %v1498_v26 = vsel %vm1497_vm15, %v3438_v52, %v1494_v8  ;;  %v5850_v52 = vld [vmem:[#allocation58_spill] sm:$0xff]  ;;  %v5854_v8 = vsel %vm4318_vm2, %v5852_v3, %v5853_v25 }
 0x4a1   :  { %v1503_v55 = vsel %vm1500_vm5, %v1502_v37, %v1498_v26  ;;  %v5851_v23 = vsel %vm4373_vm4, %v5849_v15, %v5850_v52 }
 0x4a6   :  { %v3442_v49 = vpop.eup %3441 }
 0x4a7   :  { %v1510_v2 = vmul.f32 %v3442_v49, %v1503_v55 }
 0x4a9   :  { %1512 = vst.msk [vmem:[#allocation3 + $0x28] sm:$0xff] %vm190_vm0, %v1510_v2  ;;  %v1515_v43 = vpack.c.bf16 %v1510_v2, %v1510_v2 }
 0x4aa   :  { %1514 = vst.msk [vmem:[#allocation3 + $0x50] sm:$0xff] %vm853_vm6, %v1510_v2 }
 0x4ab   :  { %1536 = vmatmul.bf16.vlgmr.msrb.gmra.mxu0 %v1515_v43  ;;  %1549 = vmatmul.bf16.vlgmr.msra.gmra.mxu1 %v1515_v43 }
 0x4ac   :  { %1562 = vmatmul.bf16.vlgmr.msrb.gmra.mxu2 %v1515_v43  ;;  %1575 = vmatmul.bf16.vlgmr.msrb.gmra.mxu3 %v1515_v43 }
 0x4ad   :  { %1792 = vmatpush.bf16.msrb.mxu0 %v3829_v54  ;;  %1805 = vmatpush.bf16.msra.mxu1 %v3870_v6 }
 0x4ae   :  { %1818 = vmatpush.bf16.msrb.mxu2 %v3797_v44  ;;  %1831 = vmatpush.bf16.msrb.mxu3 %v3808_v48 }
 0x4b1   :  { %1793 = vmatpush.bf16.msrb.mxu0 %v3855_v0  ;;  %1806 = vmatpush.bf16.msra.mxu1 %v3883_v10 }
 0x4b2   :  { %1819 = vmatpush.bf16.msrb.mxu2 %v3837_v58  ;;  %1832 = vmatpush.bf16.msrb.mxu3 %v3867_v4 }
 0x4b5   :  { %1794 = vmatpush.bf16.msrb.mxu0 %v3912_v19  ;;  %1807 = vmatpush.bf16.msra.mxu1 %v3899_v14 }
 0x4b6   :  { %1820 = vmatpush.bf16.msrb.mxu2 %v3910_v18  ;;  %1833 = vmatpush.bf16.msrb.mxu3 %v3920_v22 }
 0x4b9   :  { %1795 = vmatpush.bf16.msrb.mxu0 %v3955_v32  ;;  %1808 = vmatpush.bf16.msra.mxu1 %v3942_v27 }
 0x4ba   :  { %1821 = vmatpush.bf16.msrb.mxu2 %v3953_v31  ;;  %1834 = vmatpush.bf16.msrb.mxu3 %v5783_v61 }
 0x4bd   :  { %1796 = vmatpush.bf16.msrb.mxu0 %v5784_v13  ;;  %1809 = vmatpush.bf16.msra.mxu1 %v5785_v29 }
 0x4be   :  { %1822 = vmatpush.bf16.msrb.mxu2 %v5786_v21  ;;  %1835 = vmatpush.bf16.msrb.mxu3 %v5787_v40 }
 0x4c1   :  { %1797 = vmatpush.bf16.msrb.mxu0 %v5788_v36  ;;  %1810 = vmatpush.bf16.msra.mxu1 %v5789_v38 }
 0x4c2   :  { %1823 = vmatpush.bf16.msrb.mxu2 %v5790_v42  ;;  %1836 = vmatpush.bf16.msrb.mxu3 %v5791_v9 }
 0x4c5   :  { %1798 = vmatpush.bf16.msrb.mxu0 %v5792_v33  ;;  %1811 = vmatpush.bf16.msra.mxu1 %v5793_v24 }
 0x4c6   :  { %1824 = vmatpush.bf16.msrb.mxu2 %v5794_v16  ;;  %1837 = vmatpush.bf16.msrb.mxu3 %v5795_v28 }
 0x4c9   :  { %1799 = vmatpush.bf16.msrb.mxu0 %v5796_v39  ;;  %1812 = vmatpush.bf16.msra.mxu1 %v5797_v59 }
 0x4ca   :  { %1825 = vmatpush.bf16.msrb.mxu2 %v5798_v11  ;;  %1838 = vmatpush.bf16.msrb.mxu3 %v5799_v35 }
 0x528   :  { %v1537_v63 = vpop.f32.mrf.mxu0  ;;  %v1550_v41 = vpop.f32.mrf.mxu1 }
 0x529   :  { %v1538_v17 = vadd.f32 %v1537_v63, %v1524_v60  ;;  %v1551_v47 = vadd.f32 %v1550_v41, %v5851_v23  ;;  %v5856_v23 = vld [vmem:[#allocation45_spill] sm:$0xff] }
 0x52b   :  { %v3211_v30 = vmul.f32 -1.442695, %v1538_v17  ;;  %v3212_v56 = vmul.f32 -1.442695, %v1551_v47  ;;  %v5855_v17 = vld [vmem:[#allocation42_spill] sm:$0xff] }
 0x52c   :  { %v5857_v47 = vsel %vm4322_vm3, %v5855_v17, %v5856_v23 }
 0x52d   :  { %3443 = vpow2.f32 %v3211_v30 }
 0x52e   :  { %3445 = vpow2.f32 %v3212_v56 }
 0x52f   :  { %v1563_v7 = vpop.f32.mrf.mxu2  ;;  %v1576_v12 = vpop.f32.mrf.mxu3 }
 0x530   :  { %v1564_v45 = vadd.f32 %v1563_v7, %v5854_v8  ;;  %v1539_v46 = vpop.f32.mrf.mxu0  ;;  %v1552_v26 = vpop.f32.mrf.mxu1  ;;  %v1577_v30 = vadd.f32 %v1576_v12, %v5857_v47 }
 0x532   :  { %v3213_v37 = vmul.f32 -1.442695, %v1564_v45 }
 0x533   :  { %v3444_v49 = vpop.eup %3443 }
 0x534   :  { %v3446_v55 = vpop.eup %3445  ;;  %v1589_v2 = vadd.f32 1.0, %v3444_v49  ;;  %3447 = vpow2.f32 %v3213_v37 }
 0x535   :  { %v1590_v43 = vadd.f32 1.0, %v3446_v55 }
 0x536   :  { %3449 = vrcp.f32 %v1589_v2  ;;  %v1603_v26 = vand.u32 2147483648, %v1589_v2  ;;  %v1601_v55 = vand.u32 2147483647, %v1589_v2  ;;  %vm1597_vm9 = vweird.f32 %v1589_v2 }
 0x537   :  { %3451 = vrcp.f32 %v1590_v43  ;;  %v1565_v62 = vpop.f32.mrf.mxu2  ;;  %v1578_v51 = vpop.f32.mrf.mxu3  ;;  %v1618_v37 = vand.u32 2147483648, %v1590_v43  ;;  %vm1612_vm10 = vweird.f32 %v1590_v43 }
 0x538   :  { %v1616_v51 = vand.u32 2147483647, %v1590_v43  ;;  %v1604_v47 = vor.u32 1.1754944e-38, %v1603_v26  ;;  %vm1602_vm13 = vcmp.eq.f32.partialorder %v1601_v55, 8.507059e+37 }
 0x53a   :  { %v3448_v60 = vpop.eup %3447  ;;  %vm1617_vm14 = vcmp.eq.f32.partialorder %v1616_v51, 8.507059e+37  ;;  %v5860_v51 = vld [vmem:[#allocation47_spill] sm:$0xff] }
 0x53b   :  { %v1591_v63 = vadd.f32 1.0, %v3448_v60 }
 0x53c   :  { %v3450_v41 = vpop.eup %3449 }
 0x53d   :  { %v3452_v56 = vpop.eup %3451  ;;  %v1593_v7 = vmul.f32 %v3450_v41, %v1589_v2  ;;  %3453 = vrcp.f32 %v1591_v63  ;;  %vm1598_vm7 = vweird.f32 %v3450_v41  ;;  %v1633_v26 = vand.u32 2147483648, %v1591_v63 }
 0x53e   :  { %v1608_v8 = vmul.f32 %v3452_v56, %v1590_v43  ;;  %3455 = vtanh.f32 %v1577_v30  ;;  %vm1613_vm8 = vweird.f32 %v3452_v56  ;;  %vm1599_vm11 = vmor %vm1597_vm9, %vm1598_vm7  ;;  %vm1627_vm5 = vweird.f32 %v1591_v63 }
 0x53f   :  { %v1594_v45 = vsub.f32 1.0, %v1593_v7  ;;  %vm1614_vm12 = vmor %vm1612_vm10, %vm1613_vm8  ;;  %v1619_v7 = vor.u32 1.1754944e-38, %v1618_v37  ;;  %v1634_v37 = vor.u32 1.1754944e-38, %v1633_v26 }
 0x540   :  { %v1609_v46 = vsub.f32 1.0, %v1608_v8 }
 0x541   :  { %v1595_v49 = vmul.f32 %v3450_v41, %v1594_v45 }
 0x542   :  { %v1610_v62 = vmul.f32 %v3452_v56, %v1609_v46 }
 0x543   :  { %v3454_v60 = vpop.eup %3453  ;;  %v1596_v34 = vadd.f32 %v3450_v41, %v1595_v49 }
 0x544   :  { %v1623_v12 = vmul.f32 %v3454_v60, %v1591_v63  ;;  %v1611_v57 = vadd.f32 %v3452_v56, %v1610_v62  ;;  %v3456_v30 = vpop.eup %3455  ;;  %vm1628_vm15 = vweird.f32 %v3454_v60 }
 0x545   :  { %v1600_v8 = vsel %vm1599_vm11, %v3450_v41, %v1596_v34  ;;  %v1631_v34 = vand.u32 2147483647, %v1591_v63  ;;  %vm1629_vm7 = vmor %vm1627_vm5, %vm1628_vm15 }
 0x546   :  { %v1624_v17 = vsub.f32 1.0, %v1623_v12  ;;  %v1605_v45 = vsel %vm1602_vm13, %v1604_v47, %v1600_v8  ;;  %v1615_v23 = vsel %vm1614_vm12, %v3452_v56, %v1611_v57 }
 0x547   :  { %v1620_v46 = vsel %vm1617_vm14, %v1619_v7, %v1615_v23  ;;  %v1639_v3 = vmul.f32 %v3456_v30, %v1605_v45  ;;  %vm1632_vm8 = vcmp.eq.f32.partialorder %v1631_v34, 8.507059e+37 }
 0x548   :  { %v1625_v25 = vmul.f32 %v3454_v60, %v1624_v17  ;;  %v1638_v49 = vmul.f32 %v1620_v46, %v5031_v20  ;;  %v5858_v20 = vld [vmem:[#allocation31_spill] sm:$0xff]  ;;  %v5863_v46 = vld [vmem:[#allocation33_spill] sm:$0xff] }
 0x54a   :  { %v5088_v2 = vadd.f32 %v1639_v3, %v1638_v49  ;;  %v1626_v43 = vadd.f32 %v3454_v60, %v1625_v25  ;;  %v5859_v3 = vld [vmem:[#allocation30_spill] sm:$0xff]  ;;  %v5865_v49 = vsel %vm4318_vm2, %v5863_v46, %v5864_v53 }
 0x54b   :  { %v1656_v25 = vsel %vm560_vm1, %v5859_v3, %v5858_v20 }
 0x54c   :  { %3457 = vtanh.f32 %v5088_v2  ;;  %v1630_v41 = vsel %vm1629_vm7, %v3454_v60, %v1626_v43  ;;  %v5861_v60 = vld [vmem:[#allocation49_spill] sm:$0xff] }
 0x54d   :  { %v1635_v56 = vsel %vm1632_vm8, %v1634_v37, %v1630_v41  ;;  %v5862_v12 = vsel %vm4373_vm4, %v5860_v51, %v5861_v60 }
 0x552   :  { %v3458_v57 = vpop.eup %3457 }
 0x553   :  { %v1642_v23 = vmul.f32 %v3458_v57, %v1635_v56 }
 0x555   :  { %1644 = vst.msk [vmem:[#allocation3 + $0x30] sm:$0xff] %vm190_vm0, %v1642_v23  ;;  %v1647_v17 = vpack.c.bf16 %v1642_v23, %v1642_v23 }
 0x556   :  { %1646 = vst.msk [vmem:[#allocation3 + $0x48] sm:$0xff] %vm853_vm6, %v1642_v23 }
 0x557   :  { %1668 = vmatmul.bf16.vlgmr.msra.gmra.mxu0 %v1647_v17  ;;  %1681 = vmatmul.bf16.vlgmr.msrb.gmra.mxu1 %v1647_v17 }
 0x558   :  { %1694 = vmatmul.bf16.vlgmr.msra.gmra.mxu2 %v1647_v17  ;;  %1707 = vmatmul.bf16.vlgmr.msra.gmra.mxu3 %v1647_v17 }
 0x559   :  { %1922 = vmatpush.bf16.msra.mxu0 %v3829_v54  ;;  %1935 = vmatpush.bf16.msrb.mxu1 %v3870_v6 }
 0x55a   :  { %1948 = vmatpush.bf16.msra.mxu2 %v3797_v44  ;;  %1961 = vmatpush.bf16.msra.mxu3 %v3808_v48 }
 0x55d   :  { %1923 = vmatpush.bf16.msra.mxu0 %v3855_v0  ;;  %1936 = vmatpush.bf16.msrb.mxu1 %v3883_v10 }
 0x55e   :  { %1949 = vmatpush.bf16.msra.mxu2 %v3837_v58  ;;  %1962 = vmatpush.bf16.msra.mxu3 %v3867_v4 }
 0x561   :  { %1924 = vmatpush.bf16.msra.mxu0 %v3912_v19  ;;  %1937 = vmatpush.bf16.msrb.mxu1 %v3899_v14 }
 0x562   :  { %1950 = vmatpush.bf16.msra.mxu2 %v3910_v18  ;;  %1963 = vmatpush.bf16.msra.mxu3 %v3920_v22 }
 0x565   :  { %1925 = vmatpush.bf16.msra.mxu0 %v3955_v32  ;;  %1938 = vmatpush.bf16.msrb.mxu1 %v3942_v27 }
 0x566   :  { %1951 = vmatpush.bf16.msra.mxu2 %v3953_v31  ;;  %1964 = vmatpush.bf16.msra.mxu3 %v5783_v61 }
 0x569   :  { %1926 = vmatpush.bf16.msra.mxu0 %v5784_v13  ;;  %1939 = vmatpush.bf16.msrb.mxu1 %v5785_v29 }
 0x56a   :  { %1952 = vmatpush.bf16.msra.mxu2 %v5786_v21  ;;  %1965 = vmatpush.bf16.msra.mxu3 %v5787_v40 }
 0x56d   :  { %1927 = vmatpush.bf16.msra.mxu0 %v5788_v36  ;;  %1940 = vmatpush.bf16.msrb.mxu1 %v5789_v38 }
 0x56e   :  { %1953 = vmatpush.bf16.msra.mxu2 %v5790_v42  ;;  %1966 = vmatpush.bf16.msra.mxu3 %v5791_v9 }
 0x571   :  { %1928 = vmatpush.bf16.msra.mxu0 %v5792_v33  ;;  %1941 = vmatpush.bf16.msrb.mxu1 %v5793_v24 }
 0x572   :  { %1954 = vmatpush.bf16.msra.mxu2 %v5794_v16  ;;  %1967 = vmatpush.bf16.msra.mxu3 %v5795_v28 }
 0x575   :  { %1929 = vmatpush.bf16.msra.mxu0 %v5796_v39  ;;  %1942 = vmatpush.bf16.msrb.mxu1 %v5797_v59 }
 0x576   :  { %1955 = vmatpush.bf16.msra.mxu2 %v5798_v11  ;;  %1968 = vmatpush.bf16.msra.mxu3 %v5799_v35 }
 0x5d4   :  { %v1669_v63 = vpop.f32.mrf.mxu0  ;;  %v1682_v55 = vpop.f32.mrf.mxu1 }
 0x5d5   :  { %v1670_v62 = vadd.f32 %v1669_v63, %v1656_v25  ;;  %v1683_v47 = vadd.f32 %v1682_v55, %v5862_v12  ;;  %v5866_v55 = vld [vmem:[#allocation34_spill] sm:$0xff] }
 0x5d7   :  { %v3214_v7 = vmul.f32 -1.442695, %v1670_v62  ;;  %v3215_v8 = vmul.f32 -1.442695, %v1683_v47  ;;  %v5867_v62 = vld [vmem:[#allocation39_spill] sm:$0xff] }
 0x5d8   :  { %v5868_v12 = vsel %vm4322_vm3, %v5866_v55, %v5867_v62 }
 0x5d9   :  { %3459 = vpow2.f32 %v3214_v7 }
 0x5da   :  { %3461 = vpow2.f32 %v3215_v8 }
 0x5db   :  { %v1695_v30 = vpop.f32.mrf.mxu2  ;;  %v1708_v45 = vpop.f32.mrf.mxu3 }
 0x5dc   :  { %v1696_v43 = vadd.f32 %v1695_v30, %v5865_v49  ;;  %v1671_v26 = vpop.f32.mrf.mxu0  ;;  %v1684_v34 = vpop.f32.mrf.mxu1  ;;  %v1709_v47 = vadd.f32 %v1708_v45, %v5868_v12 }
 0x5de   :  { %v3216_v41 = vmul.f32 -1.442695, %v1696_v43 }
 0x5df   :  { %v3460_v37 = vpop.eup %3459 }
 0x5e0   :  { %v3462_v57 = vpop.eup %3461  ;;  %v1721_v56 = vadd.f32 1.0, %v3460_v37  ;;  %3463 = vpow2.f32 %v3216_v41 }
 0x5e1   :  { %v1722_v23 = vadd.f32 1.0, %v3462_v57 }
 0x5e2   :  { %3465 = vrcp.f32 %v1721_v56  ;;  %v1735_v26 = vand.u32 2147483648, %v1721_v56  ;;  %v1733_v37 = vand.u32 2147483647, %v1721_v56  ;;  %vm1729_vm10 = vweird.f32 %v1721_v56 }
 0x5e3   :  { %3467 = vrcp.f32 %v1722_v23  ;;  %v1697_v17 = vpop.f32.mrf.mxu2  ;;  %v1710_v20 = vpop.f32.mrf.mxu3  ;;  %v1750_v34 = vand.u32 2147483648, %v1722_v23  ;;  %vm1744_vm11 = vweird.f32 %v1722_v23 }
 0x5e4   :  { %v1748_v17 = vand.u32 2147483647, %v1722_v23  ;;  %v1736_v12 = vor.u32 1.1754944e-38, %v1735_v26  ;;  %vm1734_vm14 = vcmp.eq.f32.partialorder %v1733_v37, 8.507059e+37 }
 0x5e6   :  { %v3464_v3 = vpop.eup %3463  ;;  %vm1749_vm15 = vcmp.eq.f32.partialorder %v1748_v17, 8.507059e+37 }
 0x5e7   :  { %v1723_v25 = vadd.f32 1.0, %v3464_v3 }
 0x5e8   :  { %v3466_v63 = vpop.eup %3465 }
 0x5e9   :  { %v3468_v7 = vpop.eup %3467  ;;  %v1725_v8 = vmul.f32 %v3466_v63, %v1721_v56  ;;  %3469 = vrcp.f32 %v1723_v25  ;;  %vm1730_vm1 = vweird.f32 %v3466_v63  ;;  %v1765_v26 = vand.u32 2147483648, %v1723_v25 }
 0x5ea   :  { %v1740_v30 = vmul.f32 %v3468_v7, %v1722_v23  ;;  %3471 = vtanh.f32 %v1709_v47  ;;  %vm1745_vm9 = vweird.f32 %v3468_v7  ;;  %vm1731_vm12 = vmor %vm1729_vm10, %vm1730_vm1  ;;  %vm1759_vm7 = vweird.f32 %v1723_v25 }
 0x5eb   :  { %v1726_v49 = vsub.f32 1.0, %v1725_v8  ;;  %vm1746_vm13 = vmor %vm1744_vm11, %vm1745_vm9  ;;  %v1751_v8 = vor.u32 1.1754944e-38, %v1750_v34  ;;  %v1766_v37 = vor.u32 1.1754944e-38, %v1765_v26 }
 0x5ec   :  { %v1741_v43 = vsub.f32 1.0, %v1740_v30 }
 0x5ed   :  { %v1727_v41 = vmul.f32 %v3466_v63, %v1726_v49 }
 0x5ee   :  { %v1742_v57 = vmul.f32 %v3468_v7, %v1741_v43 }
 0x5ef   :  { %v3470_v20 = vpop.eup %3469  ;;  %v1728_v3 = vadd.f32 %v3466_v63, %v1727_v41 }
 0x5f0   :  { %v1755_v45 = vmul.f32 %v3470_v20, %v1723_v25  ;;  %v1743_v15 = vadd.f32 %v3468_v7, %v1742_v57  ;;  %v3472_v47 = vpop.eup %3471  ;;  %vm1760_vm5 = vweird.f32 %v3470_v20  ;;  %v5870_v57 = vsel %vm4373_vm4, %v5861_v60, %v5860_v51 }
 0x5f1   :  { %v1732_v30 = vsel %vm1731_vm12, %v3466_v63, %v1728_v3  ;;  %v1763_v63 = vand.u32 2147483647, %v1723_v25  ;;  %vm1761_vm8 = vmor %vm1759_vm7, %vm1760_vm5  ;;  %v5869_v25 = vld [vmem:[#allocation32_spill] sm:$0xff] }
 0x5f2   :  { %v1756_v52 = vsub.f32 1.0, %v1755_v45  ;;  %v1737_v49 = vsel %vm1734_vm14, %v1736_v12, %v1732_v30  ;;  %v1747_v55 = vsel %vm1746_vm13, %v3468_v7, %v1743_v15 }
 0x5f3   :  { %v1752_v43 = vsel %vm1749_vm15, %v1751_v8, %v1747_v55  ;;  %v1771_v62 = vmul.f32 %v3472_v47, %v1737_v49  ;;  %vm1764_vm1 = vcmp.eq.f32.partialorder %v1763_v63, 8.507059e+37  ;;  %v5871_v8 = vsel %vm4318_vm2, %v5864_v53, %v5863_v46  ;;  %v5874_v46 = vld [vmem:[#allocation34_spill] sm:$0xff] }
 0x5f4   :  { %v1757_v1 = vmul.f32 %v3470_v20, %v1756_v52  ;;  %v1770_v41 = vmul.f32 %v1752_v43, %v5088_v2 }
 0x5f6   :  { %v5145_v56 = vadd.f32 %v1771_v62, %v1770_v41  ;;  %v1758_v23 = vadd.f32 %v3470_v20, %v1757_v1 }
 0x5f8   :  { %3473 = vtanh.f32 %v5145_v56  ;;  %v1762_v34 = vsel %vm1761_vm8, %v3470_v20, %v1758_v23 }
 0x5f9   :  { %v1767_v7 = vsel %vm1764_vm1, %v1766_v37, %v1762_v34 }
 0x5fe   :  { %v3474_v15 = vpop.eup %3473 }
 0x5ff   :  { %v1774_v55 = vmul.f32 %v3474_v15, %v1767_v7 }
 0x601   :  { %1776 = vst.msk [vmem:[#allocation3 + $0x38] sm:$0xff] %vm190_vm0, %v1774_v55  ;;  %v1779_v52 = vpack.c.bf16 %v1774_v55, %v1774_v55 }
 0x602   :  { %1778 = vst.msk [vmem:[#allocation3 + $0x40] sm:$0xff] %vm853_vm6, %v1774_v55  ;;  %v5873_v55 = vld [vmem:[#allocation39_spill] sm:$0xff] }
 0x603   :  { %1800 = vmatmul.bf16.vlgmr.msrb.gmra.mxu0 %v1779_v52  ;;  %1813 = vmatmul.bf16.vlgmr.msra.gmra.mxu1 %v1779_v52  ;;  %v5875_v53 = vsel %vm4322_vm3, %v5873_v55, %v5874_v46 }
 0x604   :  { %1826 = vmatmul.bf16.vlgmr.msrb.gmra.mxu2 %v1779_v52  ;;  %1839 = vmatmul.bf16.vlgmr.msrb.gmra.mxu3 %v1779_v52 }
 0x605   :  { %2052 = vmatpush.bf16.msrb.mxu0 %v3829_v54  ;;  %2065 = vmatpush.bf16.msra.mxu1 %v3870_v6 }
 0x606   :  { %2078 = vmatpush.bf16.msrb.mxu2 %v3797_v44  ;;  %2091 = vmatpush.bf16.msrb.mxu3 %v3808_v48 }
 0x609   :  { %2053 = vmatpush.bf16.msrb.mxu0 %v3855_v0  ;;  %2066 = vmatpush.bf16.msra.mxu1 %v3883_v10 }
 0x60a   :  { %2079 = vmatpush.bf16.msrb.mxu2 %v3837_v58  ;;  %2092 = vmatpush.bf16.msrb.mxu3 %v3867_v4 }
 0x60d   :  { %2054 = vmatpush.bf16.msrb.mxu0 %v3912_v19  ;;  %2067 = vmatpush.bf16.msra.mxu1 %v3899_v14 }
 0x60e   :  { %2080 = vmatpush.bf16.msrb.mxu2 %v3910_v18  ;;  %2093 = vmatpush.bf16.msrb.mxu3 %v3920_v22 }
 0x611   :  { %2055 = vmatpush.bf16.msrb.mxu0 %v3955_v32  ;;  %2068 = vmatpush.bf16.msra.mxu1 %v3942_v27 }
 0x612   :  { %2081 = vmatpush.bf16.msrb.mxu2 %v3953_v31  ;;  %2094 = vmatpush.bf16.msrb.mxu3 %v5783_v61 }
 0x615   :  { %2056 = vmatpush.bf16.msrb.mxu0 %v5784_v13  ;;  %2069 = vmatpush.bf16.msra.mxu1 %v5785_v29 }
 0x616   :  { %2082 = vmatpush.bf16.msrb.mxu2 %v5786_v21  ;;  %2095 = vmatpush.bf16.msrb.mxu3 %v5787_v40 }
 0x619   :  { %2057 = vmatpush.bf16.msrb.mxu0 %v5788_v36  ;;  %2070 = vmatpush.bf16.msra.mxu1 %v5789_v38 }
 0x61a   :  { %2083 = vmatpush.bf16.msrb.mxu2 %v5790_v42  ;;  %2096 = vmatpush.bf16.msrb.mxu3 %v5791_v9 }
 0x61d   :  { %2058 = vmatpush.bf16.msrb.mxu0 %v5792_v33  ;;  %2071 = vmatpush.bf16.msra.mxu1 %v5793_v24 }
 0x61e   :  { %2084 = vmatpush.bf16.msrb.mxu2 %v5794_v16  ;;  %2097 = vmatpush.bf16.msrb.mxu3 %v5795_v28 }
 0x621   :  { %2059 = vmatpush.bf16.msrb.mxu0 %v5796_v39  ;;  %2072 = vmatpush.bf16.msra.mxu1 %v5797_v59 }
 0x622   :  { %2085 = vmatpush.bf16.msrb.mxu2 %v5798_v11  ;;  %2098 = vmatpush.bf16.msrb.mxu3 %v5799_v35 }
 0x680   :  { %v1801_v1 = vpop.f32.mrf.mxu0  ;;  %v1814_v2 = vpop.f32.mrf.mxu1 }
 0x681   :  { %v1802_v62 = vadd.f32 %v1801_v1, %v5869_v25  ;;  %v1815_v17 = vadd.f32 %v1814_v2, %v5870_v57 }
 0x683   :  { %v3217_v20 = vmul.f32 -1.442695, %v1802_v62  ;;  %v3218_v3 = vmul.f32 -1.442695, %v1815_v17 }
 0x685   :  { %3475 = vpow2.f32 %v3217_v20 }
 0x686   :  { %3477 = vpow2.f32 %v3218_v3 }
 0x687   :  { %v1827_v45 = vpop.f32.mrf.mxu2  ;;  %v1840_v12 = vpop.f32.mrf.mxu3 }
 0x688   :  { %v1828_v30 = vadd.f32 %v1827_v45, %v5871_v8  ;;  %v1803_v47 = vpop.f32.mrf.mxu0  ;;  %v1816_v49 = vpop.f32.mrf.mxu1  ;;  %v1841_v52 = vadd.f32 %v1840_v12, %v5875_v53 }
 0x68a   :  { %v3219_v43 = vmul.f32 -1.442695, %v1828_v30 }
 0x68b   :  { %v3476_v41 = vpop.eup %3475 }
 0x68c   :  { %v3478_v23 = vpop.eup %3477  ;;  %v1853_v26 = vadd.f32 1.0, %v3476_v41  ;;  %3479 = vpow2.f32 %v3219_v43 }
 0x68d   :  { %v1854_v51 = vadd.f32 1.0, %v3478_v23 }
 0x68e   :  { %3481 = vrcp.f32 %v1853_v26  ;;  %v1867_v17 = vand.u32 2147483648, %v1853_v26  ;;  %v1865_v45 = vand.u32 2147483647, %v1853_v26  ;;  %vm1861_vm11 = vweird.f32 %v1853_v26 }
 0x68f   :  { %3483 = vrcp.f32 %v1854_v51  ;;  %v1829_v60 = vpop.f32.mrf.mxu2  ;;  %v1842_v63 = vpop.f32.mrf.mxu3  ;;  %v1882_v20 = vand.u32 2147483648, %v1854_v51  ;;  %v1880_v30 = vand.u32 2147483647, %v1854_v51  ;;  %vm1876_vm12 = vweird.f32 %v1854_v51 }
 0x690   :  { %v1868_v43 = vor.u32 1.1754944e-38, %v1867_v17  ;;  %vm1866_vm15 = vcmp.eq.f32.partialorder %v1865_v45, 8.507059e+37 }
 0x691   :  { %v1883_v23 = vor.u32 1.1754944e-38, %v1882_v20  ;;  %vm1881_vm5 = vcmp.eq.f32.partialorder %v1880_v30, 8.507059e+37 }
 0x692   :  { %v3480_v34 = vpop.eup %3479 }
 0x693   :  { %v1855_v37 = vadd.f32 1.0, %v3480_v34 }
 0x694   :  { %v3482_v15 = vpop.eup %3481 }
 0x695   :  { %v3484_v1 = vpop.eup %3483  ;;  %v1857_v2 = vmul.f32 %v3482_v15, %v1853_v26  ;;  %3485 = vrcp.f32 %v1855_v37  ;;  %vm1862_vm9 = vweird.f32 %v3482_v15  ;;  %vm1891_vm8 = vweird.f32 %v1855_v37 }
 0x696   :  { %v1872_v25 = vmul.f32 %v3484_v1, %v1854_v51  ;;  %3487 = vtanh.f32 %v1841_v52  ;;  %vm1877_vm10 = vweird.f32 %v3484_v1  ;;  %vm1863_vm13 = vmor %vm1861_vm11, %vm1862_vm9 }
 0x697   :  { %v1858_v62 = vsub.f32 1.0, %v1857_v2  ;;  %vm1878_vm14 = vmor %vm1876_vm12, %vm1877_vm10 }
 0x698   :  { %v1873_v57 = vsub.f32 1.0, %v1872_v25 }
 0x699   :  { %v1859_v3 = vmul.f32 %v3482_v15, %v1858_v62  ;;  %v1897_v62 = vand.u32 2147483648, %v1855_v37 }
 0x69a   :  { %v1874_v8 = vmul.f32 %v3484_v1, %v1873_v57 }
 0x69b   :  { %v3486_v47 = vpop.eup %3485  ;;  %v1860_v49 = vadd.f32 %v3482_v15, %v1859_v3  ;;  %v1898_v17 = vor.u32 1.1754944e-38, %v1897_v62 }
 0x69c   :  { %v1887_v12 = vmul.f32 %v3486_v47, %v1855_v37  ;;  %v1875_v41 = vadd.f32 %v3484_v1, %v1874_v8  ;;  %v3488_v63 = vpop.eup %3487  ;;  %vm1892_vm7 = vweird.f32 %v3486_v47  ;;  %v5876_v8 = vld [vmem:[#allocation41_spill] sm:$0xff] }
 0x69d   :  { %v1864_v60 = vsel %vm1863_vm13, %v3482_v15, %v1860_v49  ;;  %v1895_v15 = vand.u32 2147483647, %v1855_v37  ;;  %vm1893_vm1 = vmor %vm1891_vm8, %vm1892_vm7  ;;  %v5878_v49 = vld [vmem:[#allocation56_spill] sm:$0xff] }
 0x69e   :  { %v1888_v34 = vsub.f32 1.0, %v1887_v12  ;;  %v1869_v55 = vsel %vm1866_vm15, %v1868_v43, %v1864_v60  ;;  %v1879_v46 = vsel %vm1878_vm14, %v3484_v1, %v1875_v41 }
 0x69f   :  { %v1884_v53 = vsel %vm1881_vm5, %v1883_v23, %v1879_v46  ;;  %v1903_v52 = vmul.f32 %v3488_v63, %v1869_v55  ;;  %vm1896_vm9 = vcmp.eq.f32.partialorder %v1895_v15, 8.507059e+37  ;;  %v5881_v55 = vld [vmem:[#allocation43_spill] sm:$0xff] }
 0x6a0   :  { %v1889_v2 = vmul.f32 %v3486_v47, %v1888_v34  ;;  %v1902_v25 = vmul.f32 %v1884_v53, %v5145_v56  ;;  %v5880_v34 = vld [vmem:[#allocation44_spill] sm:$0xff] }
 0x6a1   :  { %v5882_v46 = vsel %vm4318_vm2, %v5880_v34, %v5881_v55 }
 0x6a2   :  { %v5199_v26 = vadd.f32 %v1903_v52, %v1902_v25  ;;  %v1890_v51 = vadd.f32 %v3486_v47, %v1889_v2 }
 0x6a4   :  { %3489 = vtanh.f32 %v5199_v26  ;;  %v1894_v57 = vsel %vm1893_vm1, %v3486_v47, %v1890_v51  ;;  %v5877_v47 = vld [vmem:[#allocation58_spill] sm:$0xff] }
 0x6a5   :  { %v1899_v20 = vsel %vm1896_vm9, %v1898_v17, %v1894_v57  ;;  %v5879_v12 = vsel %vm4373_vm4, %v5877_v47, %v5878_v49 }
 0x6aa   :  { %v3490_v1 = vpop.eup %3489 }
 0x6ab   :  { %v1906_v3 = vmul.f32 %v3490_v1, %v1899_v20 }
 0x6ad   :  { %1907 = vst.msk [vmem:[#allocation3 + $0x40] sm:$0xff] %vm190_vm0, %v1906_v3  ;;  %v1909_v45 = vpack.c.bf16 %v1906_v3, %v1906_v3 }
 0x6ae   :  { %1908 = vst.msk [vmem:[#allocation3 + $0x38] sm:$0xff] %vm853_vm6, %v1906_v3 }
 0x6af   :  { %1930 = vmatmul.bf16.vlgmr.msra.gmra.mxu0 %v1909_v45  ;;  %1943 = vmatmul.bf16.vlgmr.msrb.gmra.mxu1 %v1909_v45 }
 0x6b0   :  { %1956 = vmatmul.bf16.vlgmr.msra.gmra.mxu2 %v1909_v45  ;;  %1969 = vmatmul.bf16.vlgmr.msra.gmra.mxu3 %v1909_v45 }
 0x6b1   :  { %2182 = vmatpush.bf16.msra.mxu0 %v3829_v54  ;;  %2195 = vmatpush.bf16.msrb.mxu1 %v3870_v6 }
 0x6b2   :  { %2208 = vmatpush.bf16.msra.mxu2 %v3797_v44  ;;  %2221 = vmatpush.bf16.msra.mxu3 %v3808_v48 }
 0x6b5   :  { %2183 = vmatpush.bf16.msra.mxu0 %v3855_v0  ;;  %2196 = vmatpush.bf16.msrb.mxu1 %v3883_v10 }
 0x6b6   :  { %2209 = vmatpush.bf16.msra.mxu2 %v3837_v58  ;;  %2222 = vmatpush.bf16.msra.mxu3 %v3867_v4 }
 0x6b9   :  { %2184 = vmatpush.bf16.msra.mxu0 %v3912_v19  ;;  %2197 = vmatpush.bf16.msrb.mxu1 %v3899_v14 }
 0x6ba   :  { %2210 = vmatpush.bf16.msra.mxu2 %v3910_v18  ;;  %2223 = vmatpush.bf16.msra.mxu3 %v3920_v22 }
 0x6bd   :  { %2185 = vmatpush.bf16.msra.mxu0 %v3955_v32  ;;  %2198 = vmatpush.bf16.msrb.mxu1 %v3942_v27 }
 0x6be   :  { %2211 = vmatpush.bf16.msra.mxu2 %v3953_v31  ;;  %2224 = vmatpush.bf16.msra.mxu3 %v5783_v61 }
 0x6c1   :  { %2186 = vmatpush.bf16.msra.mxu0 %v5784_v13  ;;  %2199 = vmatpush.bf16.msrb.mxu1 %v5785_v29 }
 0x6c2   :  { %2212 = vmatpush.bf16.msra.mxu2 %v5786_v21  ;;  %2225 = vmatpush.bf16.msra.mxu3 %v5787_v40 }
 0x6c5   :  { %2187 = vmatpush.bf16.msra.mxu0 %v5788_v36  ;;  %2200 = vmatpush.bf16.msrb.mxu1 %v5789_v38 }
 0x6c6   :  { %2213 = vmatpush.bf16.msra.mxu2 %v5790_v42  ;;  %2226 = vmatpush.bf16.msra.mxu3 %v5791_v9 }
 0x6c9   :  { %2188 = vmatpush.bf16.msra.mxu0 %v5792_v33  ;;  %2201 = vmatpush.bf16.msrb.mxu1 %v5793_v24 }
 0x6ca   :  { %2214 = vmatpush.bf16.msra.mxu2 %v5794_v16  ;;  %2227 = vmatpush.bf16.msra.mxu3 %v5795_v28 }
 0x6cd   :  { %2189 = vmatpush.bf16.msra.mxu0 %v5796_v39  ;;  %2202 = vmatpush.bf16.msrb.mxu1 %v5797_v59 }
 0x6ce   :  { %2215 = vmatpush.bf16.msra.mxu2 %v5798_v11  ;;  %2228 = vmatpush.bf16.msra.mxu3 %v5799_v35 }
 0x72c   :  { %v1931_v56 = vpop.f32.mrf.mxu0  ;;  %v1944_v37 = vpop.f32.mrf.mxu1 }
 0x72d   :  { %v1932_v30 = vadd.f32 %v1931_v56, %v5876_v8  ;;  %v1945_v43 = vadd.f32 %v1944_v37, %v5879_v12  ;;  %v5883_v56 = vld [vmem:[#allocation45_spill] sm:$0xff]  ;;  %v5884_v37 = vld [vmem:[#allocation42_spill] sm:$0xff] }
 0x72e   :  { %v5885_v8 = vsel %vm4322_vm3, %v5883_v56, %v5884_v37 }
 0x72f   :  { %v3220_v41 = vmul.f32 -1.442695, %v1932_v30  ;;  %v3221_v23 = vmul.f32 -1.442695, %v1945_v43 }
 0x731   :  { %3491 = vpow2.f32 %v3220_v41 }
 0x732   :  { %3493 = vpow2.f32 %v3221_v23 }
 0x733   :  { %v1957_v60 = vpop.f32.mrf.mxu2  ;;  %v1970_v63 = vpop.f32.mrf.mxu3 }
 0x734   :  { %v1958_v53 = vadd.f32 %v1957_v60, %v5882_v46  ;;  %v1933_v52 = vpop.f32.mrf.mxu0  ;;  %v1946_v2 = vpop.f32.mrf.mxu1  ;;  %v1971_v30 = vadd.f32 %v1970_v63, %v5885_v8 }
 0x736   :  { %v3222_v25 = vmul.f32 -1.442695, %v1958_v53 }
 0x737   :  { %v3492_v51 = vpop.eup %3491 }
 0x738   :  { %v3494_v62 = vpop.eup %3493  ;;  %v1983_v15 = vadd.f32 1.0, %v3492_v51  ;;  %3495 = vpow2.f32 %v3222_v25 }
 0x739   :  { %v1984_v57 = vadd.f32 1.0, %v3494_v62 }
 0x73a   :  { %3497 = vrcp.f32 %v1983_v15  ;;  %v1997_v23 = vand.u32 2147483648, %v1983_v15  ;;  %v1995_v55 = vand.u32 2147483647, %v1983_v15  ;;  %vm1991_vm12 = vweird.f32 %v1983_v15 }
 0x73b   :  { %3499 = vrcp.f32 %v1984_v57  ;;  %v1959_v17 = vpop.f32.mrf.mxu2  ;;  %v1972_v1 = vpop.f32.mrf.mxu3  ;;  %v2012_v60 = vand.u32 2147483648, %v1984_v57  ;;  %v2010_v53 = vand.u32 2147483647, %v1984_v57  ;;  %vm2006_vm13 = vweird.f32 %v1984_v57 }
 0x73c   :  { %v1998_v25 = vor.u32 1.1754944e-38, %v1997_v23  ;;  %vm1996_vm5 = vcmp.eq.f32.partialorder %v1995_v55, 8.507059e+37 }
 0x73d   :  { %v2013_v62 = vor.u32 1.1754944e-38, %v2012_v60  ;;  %vm2011_vm7 = vcmp.eq.f32.partialorder %v2010_v53, 8.507059e+37 }
 0x73e   :  { %v3496_v20 = vpop.eup %3495 }
 0x73f   :  { %v1985_v3 = vadd.f32 1.0, %v3496_v20 }
 0x740   :  { %v3498_v45 = vpop.eup %3497 }
 0x741   :  { %v3500_v47 = vpop.eup %3499  ;;  %v1987_v49 = vmul.f32 %v3498_v45, %v1983_v15  ;;  %3501 = vrcp.f32 %v1985_v3  ;;  %vm1992_vm10 = vweird.f32 %v3498_v45  ;;  %vm2021_vm1 = vweird.f32 %v1985_v3 }
 0x742   :  { %v2002_v12 = vmul.f32 %v3500_v47, %v1984_v57  ;;  %3503 = vtanh.f32 %v1971_v30  ;;  %vm2007_vm11 = vweird.f32 %v3500_v47  ;;  %vm1993_vm14 = vmor %vm1991_vm12, %vm1992_vm10 }
 0x743   :  { %v1988_v43 = vsub.f32 1.0, %v1987_v49  ;;  %vm2008_vm15 = vmor %vm2006_vm13, %vm2007_vm11 }
 0x744   :  { %v2003_v41 = vsub.f32 1.0, %v2002_v12 }
 0x745   :  { %v1989_v34 = vmul.f32 %v3498_v45, %v1988_v43  ;;  %v2027_v43 = vand.u32 2147483648, %v1985_v3 }
 0x746   :  { %v2004_v46 = vmul.f32 %v3500_v47, %v2003_v41 }
 0x747   :  { %v3502_v52 = vpop.eup %3501  ;;  %v1990_v2 = vadd.f32 %v3498_v45, %v1989_v34  ;;  %v2028_v23 = vor.u32 1.1754944e-38, %v2027_v43 }
 0x748   :  { %v2017_v63 = vmul.f32 %v3502_v52, %v1985_v3  ;;  %v2005_v51 = vadd.f32 %v3500_v47, %v2004_v46  ;;  %v3504_v1 = vpop.eup %3503  ;;  %vm2022_vm8 = vweird.f32 %v3502_v52  ;;  %v5886_v46 = vld [vmem:[#allocation50_spill] sm:$0xff] }
 0x749   :  { %v1994_v17 = vsel %vm1993_vm14, %v3498_v45, %v1990_v2  ;;  %v2025_v45 = vand.u32 2147483647, %v1985_v3  ;;  %vm2023_vm9 = vmor %vm2021_vm1, %vm2022_vm8  ;;  %v5888_v2 = vld [vmem:[#allocation65_spill] sm:$0xff] }
 0x74a   :  { %v2018_v20 = vsub.f32 1.0, %v2017_v63  ;;  %v1999_v56 = vsel %vm1996_vm5, %v1998_v25, %v1994_v17  ;;  %v2009_v37 = vsel %vm2008_vm15, %v3500_v47, %v2005_v51 }
 0x74b   :  { %v2014_v8 = vsel %vm2011_vm7, %v2013_v62, %v2009_v37  ;;  %v2033_v30 = vmul.f32 %v3504_v1, %v1999_v56  ;;  %vm2026_vm10 = vcmp.eq.f32.partialorder %v2025_v45, 8.507059e+37  ;;  %v5891_v56 = vld [vmem:[#allocation51_spill] sm:$0xff] }
 0x74c   :  { %v2019_v49 = vmul.f32 %v3502_v52, %v2018_v20  ;;  %v2032_v12 = vmul.f32 %v2014_v8, %v5199_v26  ;;  %v5890_v20 = vld [vmem:[#allocation53_spill] sm:$0xff] }
 0x74d   :  { %v5892_v37 = vsel %vm4318_vm2, %v5890_v20, %v5891_v56 }
 0x74e   :  { %v5253_v15 = vadd.f32 %v2033_v30, %v2032_v12  ;;  %v2020_v57 = vadd.f32 %v3502_v52, %v2019_v49 }
 0x750   :  { %3505 = vtanh.f32 %v5253_v15  ;;  %v2024_v41 = vsel %vm2023_vm9, %v3502_v52, %v2020_v57  ;;  %v5887_v52 = vld [vmem:[#allocation67_spill] sm:$0xff] }
 0x751   :  { %v2029_v60 = vsel %vm2026_vm10, %v2028_v23, %v2024_v41  ;;  %v5889_v63 = vsel %vm4373_vm4, %v5887_v52, %v5888_v2 }
 0x756   :  { %v3506_v47 = vpop.eup %3505 }
 0x757   :  { %v2036_v34 = vmul.f32 %v3506_v47, %v2029_v60 }
 0x759   :  { %2037 = vst.msk [vmem:[#allocation3 + $0x48] sm:$0xff] %vm190_vm0, %v2036_v34  ;;  %v2039_v55 = vpack.c.bf16 %v2036_v34, %v2036_v34 }
 0x75a   :  { %2038 = vst.msk [vmem:[#allocation3 + $0x30] sm:$0xff] %vm853_vm6, %v2036_v34 }
 0x75b   :  { %2060 = vmatmul.bf16.vlgmr.msrb.gmra.mxu0 %v2039_v55  ;;  %2073 = vmatmul.bf16.vlgmr.msra.gmra.mxu1 %v2039_v55 }
 0x75c   :  { %2086 = vmatmul.bf16.vlgmr.msrb.gmra.mxu2 %v2039_v55  ;;  %2099 = vmatmul.bf16.vlgmr.msrb.gmra.mxu3 %v2039_v55 }
 0x75d   :  { %2312 = vmatpush.bf16.msrb.mxu0 %v3829_v54  ;;  %2325 = vmatpush.bf16.msra.mxu1 %v3870_v6 }
 0x75e   :  { %2338 = vmatpush.bf16.msrb.mxu2 %v3797_v44  ;;  %2351 = vmatpush.bf16.msrb.mxu3 %v3808_v48 }
 0x761   :  { %2313 = vmatpush.bf16.msrb.mxu0 %v3855_v0  ;;  %2326 = vmatpush.bf16.msra.mxu1 %v3883_v10 }
 0x762   :  { %2339 = vmatpush.bf16.msrb.mxu2 %v3837_v58  ;;  %2352 = vmatpush.bf16.msrb.mxu3 %v3867_v4 }
 0x765   :  { %2314 = vmatpush.bf16.msrb.mxu0 %v3912_v19  ;;  %2327 = vmatpush.bf16.msra.mxu1 %v3899_v14 }
 0x766   :  { %2340 = vmatpush.bf16.msrb.mxu2 %v3910_v18  ;;  %2353 = vmatpush.bf16.msrb.mxu3 %v3920_v22 }
 0x769   :  { %2315 = vmatpush.bf16.msrb.mxu0 %v3955_v32  ;;  %2328 = vmatpush.bf16.msra.mxu1 %v3942_v27 }
 0x76a   :  { %2341 = vmatpush.bf16.msrb.mxu2 %v3953_v31  ;;  %2354 = vmatpush.bf16.msrb.mxu3 %v5783_v61 }
 0x76d   :  { %2316 = vmatpush.bf16.msrb.mxu0 %v5784_v13  ;;  %2329 = vmatpush.bf16.msra.mxu1 %v5785_v29 }
 0x76e   :  { %2342 = vmatpush.bf16.msrb.mxu2 %v5786_v21  ;;  %2355 = vmatpush.bf16.msrb.mxu3 %v5787_v40 }
 0x771   :  { %2317 = vmatpush.bf16.msrb.mxu0 %v5788_v36  ;;  %2330 = vmatpush.bf16.msra.mxu1 %v5789_v38 }
 0x772   :  { %2343 = vmatpush.bf16.msrb.mxu2 %v5790_v42  ;;  %2356 = vmatpush.bf16.msrb.mxu3 %v5791_v9 }
 0x775   :  { %2318 = vmatpush.bf16.msrb.mxu0 %v5792_v33  ;;  %2331 = vmatpush.bf16.msra.mxu1 %v5793_v24 }
 0x776   :  { %2344 = vmatpush.bf16.msrb.mxu2 %v5794_v16  ;;  %2357 = vmatpush.bf16.msrb.mxu3 %v5795_v28 }
 0x779   :  { %2319 = vmatpush.bf16.msrb.mxu0 %v5796_v39  ;;  %2332 = vmatpush.bf16.msra.mxu1 %v5797_v59 }
 0x77a   :  { %2345 = vmatpush.bf16.msrb.mxu2 %v5798_v11  ;;  %2358 = vmatpush.bf16.msrb.mxu3 %v5799_v35 }
 0x7d8   :  { %v2061_v26 = vpop.f32.mrf.mxu0  ;;  %v2074_v3 = vpop.f32.mrf.mxu1 }
 0x7d9   :  { %v2062_v53 = vadd.f32 %v2061_v26, %v5886_v46  ;;  %v2075_v25 = vadd.f32 %v2074_v3, %v5889_v63  ;;  %v5893_v26 = vld [vmem:[#allocation54_spill] sm:$0xff]  ;;  %v5894_v3 = vld [vmem:[#allocation52_spill] sm:$0xff] }
 0x7da   :  { %v5895_v46 = vsel %vm4322_vm3, %v5893_v26, %v5894_v3 }
 0x7db   :  { %v3223_v51 = vmul.f32 -1.442695, %v2062_v53  ;;  %v3224_v62 = vmul.f32 -1.442695, %v2075_v25 }
 0x7dd   :  { %3507 = vpow2.f32 %v3223_v51 }
 0x7de   :  { %3509 = vpow2.f32 %v3224_v62 }
 0x7df   :  { %v2087_v17 = vpop.f32.mrf.mxu2  ;;  %v2100_v1 = vpop.f32.mrf.mxu3 }
 0x7e0   :  { %v2088_v8 = vadd.f32 %v2087_v17, %v5892_v37  ;;  %v2063_v30 = vpop.f32.mrf.mxu0  ;;  %v2076_v49 = vpop.f32.mrf.mxu1  ;;  %v2101_v53 = vadd.f32 %v2100_v1, %v5895_v46 }
 0x7e2   :  { %v3225_v12 = vmul.f32 -1.442695, %v2088_v8 }
 0x7e3   :  { %v3508_v57 = vpop.eup %3507 }
 0x7e4   :  { %v3510_v43 = vpop.eup %3509  ;;  %v2113_v45 = vadd.f32 1.0, %v3508_v57  ;;  %3511 = vpow2.f32 %v3225_v12 }
 0x7e5   :  { %v2114_v41 = vadd.f32 1.0, %v3510_v43 }
 0x7e6   :  { %3513 = vrcp.f32 %v2113_v45  ;;  %v2127_v62 = vand.u32 2147483648, %v2113_v45  ;;  %v2125_v56 = vand.u32 2147483647, %v2113_v45  ;;  %vm2121_vm13 = vweird.f32 %v2113_v45 }
 0x7e7   :  { %3515 = vrcp.f32 %v2114_v41  ;;  %v2089_v23 = vpop.f32.mrf.mxu2  ;;  %v2102_v47 = vpop.f32.mrf.mxu3  ;;  %v2142_v17 = vand.u32 2147483648, %v2114_v41  ;;  %v2140_v8 = vand.u32 2147483647, %v2114_v41  ;;  %vm2136_vm14 = vweird.f32 %v2114_v41 }
 0x7e8   :  { %v2128_v12 = vor.u32 1.1754944e-38, %v2127_v62  ;;  %vm2126_vm7 = vcmp.eq.f32.partialorder %v2125_v56, 8.507059e+37 }
 0x7e9   :  { %v2143_v43 = vor.u32 1.1754944e-38, %v2142_v17  ;;  %vm2141_vm8 = vcmp.eq.f32.partialorder %v2140_v8, 8.507059e+37 }
 0x7ea   :  { %v3512_v60 = vpop.eup %3511 }
 0x7eb   :  { %v2115_v34 = vadd.f32 1.0, %v3512_v60 }
 0x7ec   :  { %v3514_v55 = vpop.eup %3513 }
 0x7ed   :  { %v3516_v52 = vpop.eup %3515  ;;  %v2117_v2 = vmul.f32 %v3514_v55, %v2113_v45  ;;  %3517 = vrcp.f32 %v2115_v34  ;;  %vm2122_vm11 = vweird.f32 %v3514_v55  ;;  %vm2151_vm9 = vweird.f32 %v2115_v34 }
 0x7ee   :  { %v2132_v63 = vmul.f32 %v3516_v52, %v2114_v41  ;;  %3519 = vtanh.f32 %v2101_v53  ;;  %vm2137_vm12 = vweird.f32 %v3516_v52  ;;  %vm2123_vm15 = vmor %vm2121_vm13, %vm2122_vm11 }
 0x7ef   :  { %v2118_v25 = vsub.f32 1.0, %v2117_v2  ;;  %vm2138_vm5 = vmor %vm2136_vm14, %vm2137_vm12 }
 0x7f0   :  { %v2133_v51 = vsub.f32 1.0, %v2132_v63 }
 0x7f1   :  { %v2119_v20 = vmul.f32 %v3514_v55, %v2118_v25  ;;  %v2157_v25 = vand.u32 2147483648, %v2115_v34 }
 0x7f2   :  { %v2134_v37 = vmul.f32 %v3516_v52, %v2133_v51 }
 0x7f3   :  { %v3518_v30 = vpop.eup %3517  ;;  %v2120_v49 = vadd.f32 %v3514_v55, %v2119_v20  ;;  %v2158_v62 = vor.u32 1.1754944e-38, %v2157_v25 }
 0x7f4   :  { %v2147_v1 = vmul.f32 %v3518_v30, %v2115_v34  ;;  %v2135_v57 = vadd.f32 %v3516_v52, %v2134_v37  ;;  %v3520_v47 = vpop.eup %3519  ;;  %vm2152_vm1 = vweird.f32 %v3518_v30  ;;  %v5896_v37 = vld [vmem:[#allocation59_spill] sm:$0xff] }
 0x7f5   :  { %v2124_v23 = vsel %vm2123_vm15, %v3514_v55, %v2120_v49  ;;  %v2155_v55 = vand.u32 2147483647, %v2115_v34  ;;  %vm2153_vm10 = vmor %vm2151_vm9, %vm2152_vm1  ;;  %v5898_v49 = vld [vmem:[#allocation73_spill] sm:$0xff] }
 0x7f6   :  { %v2148_v60 = vsub.f32 1.0, %v2147_v1  ;;  %v2129_v26 = vsel %vm2126_vm7, %v2128_v12, %v2124_v23  ;;  %v2139_v3 = vsel %vm2138_vm5, %v3516_v52, %v2135_v57 }
 0x7f7   :  { %v2144_v46 = vsel %vm2141_vm8, %v2143_v43, %v2139_v3  ;;  %v2163_v53 = vmul.f32 %v3520_v47, %v2129_v26  ;;  %vm2156_vm11 = vcmp.eq.f32.partialorder %v2155_v55, 8.507059e+37  ;;  %v5901_v26 = vld [vmem:[#allocation60_spill] sm:$0xff] }
 0x7f8   :  { %v2149_v2 = vmul.f32 %v3518_v30, %v2148_v60  ;;  %v2162_v63 = vmul.f32 %v2144_v46, %v5253_v15  ;;  %v5900_v60 = vld [vmem:[#allocation62_spill] sm:$0xff] }
 0x7f9   :  { %v5902_v3 = vsel %vm4318_vm2, %v5900_v60, %v5901_v26 }
 0x7fa   :  { %v5307_v45 = vadd.f32 %v2163_v53, %v2162_v63  ;;  %v2150_v41 = vadd.f32 %v3518_v30, %v2149_v2 }
 0x7fc   :  { %3521 = vtanh.f32 %v5307_v45  ;;  %v2154_v51 = vsel %vm2153_vm10, %v3518_v30, %v2150_v41  ;;  %v5897_v30 = vld [vmem:[#allocation74_spill] sm:$0xff] }
 0x7fd   :  { %v2159_v17 = vsel %vm2156_vm11, %v2158_v62, %v2154_v51  ;;  %v5899_v1 = vsel %vm4373_vm4, %v5897_v30, %v5898_v49 }
 0x802   :  { %v3522_v52 = vpop.eup %3521 }
 0x803   :  { %v2166_v20 = vmul.f32 %v3522_v52, %v2159_v17 }
 0x805   :  { %2167 = vst.msk [vmem:[#allocation3 + $0x50] sm:$0xff] %vm190_vm0, %v2166_v20  ;;  %v2169_v56 = vpack.c.bf16 %v2166_v20, %v2166_v20 }
 0x806   :  { %2168 = vst.msk [vmem:[#allocation3 + $0x28] sm:$0xff] %vm853_vm6, %v2166_v20 }
 0x807   :  { %2190 = vmatmul.bf16.vlgmr.msra.gmra.mxu0 %v2169_v56  ;;  %2203 = vmatmul.bf16.vlgmr.msrb.gmra.mxu1 %v2169_v56 }
 0x808   :  { %2216 = vmatmul.bf16.vlgmr.msra.gmra.mxu2 %v2169_v56  ;;  %2229 = vmatmul.bf16.vlgmr.msra.gmra.mxu3 %v2169_v56 }
 0x809   :  { %2442 = vmatpush.bf16.msra.mxu0 %v3829_v54  ;;  %2455 = vmatpush.bf16.msrb.mxu1 %v3870_v6 }
 0x80a   :  { %2468 = vmatpush.bf16.msra.mxu2 %v3797_v44  ;;  %2481 = vmatpush.bf16.msra.mxu3 %v3808_v48 }
 0x80d   :  { %2443 = vmatpush.bf16.msra.mxu0 %v3855_v0  ;;  %2456 = vmatpush.bf16.msrb.mxu1 %v3883_v10 }
 0x80e   :  { %2469 = vmatpush.bf16.msra.mxu2 %v3837_v58  ;;  %2482 = vmatpush.bf16.msra.mxu3 %v3867_v4 }
 0x811   :  { %2444 = vmatpush.bf16.msra.mxu0 %v3912_v19  ;;  %2457 = vmatpush.bf16.msrb.mxu1 %v3899_v14 }
 0x812   :  { %2470 = vmatpush.bf16.msra.mxu2 %v3910_v18  ;;  %2483 = vmatpush.bf16.msra.mxu3 %v3920_v22 }
 0x815   :  { %2445 = vmatpush.bf16.msra.mxu0 %v3955_v32  ;;  %2458 = vmatpush.bf16.msrb.mxu1 %v3942_v27 }
 0x816   :  { %2471 = vmatpush.bf16.msra.mxu2 %v3953_v31  ;;  %2484 = vmatpush.bf16.msra.mxu3 %v5783_v61 }
 0x819   :  { %2446 = vmatpush.bf16.msra.mxu0 %v5784_v13  ;;  %2459 = vmatpush.bf16.msrb.mxu1 %v5785_v29 }
 0x81a   :  { %2472 = vmatpush.bf16.msra.mxu2 %v5786_v21  ;;  %2485 = vmatpush.bf16.msra.mxu3 %v5787_v40 }
 0x81d   :  { %2447 = vmatpush.bf16.msra.mxu0 %v5788_v36  ;;  %2460 = vmatpush.bf16.msrb.mxu1 %v5789_v38 }
 0x81e   :  { %2473 = vmatpush.bf16.msra.mxu2 %v5790_v42  ;;  %2486 = vmatpush.bf16.msra.mxu3 %v5791_v9 }
 0x821   :  { %2448 = vmatpush.bf16.msra.mxu0 %v5792_v33  ;;  %2461 = vmatpush.bf16.msrb.mxu1 %v5793_v24 }
 0x822   :  { %2474 = vmatpush.bf16.msra.mxu2 %v5794_v16  ;;  %2487 = vmatpush.bf16.msra.mxu3 %v5795_v28 }
 0x825   :  { %2449 = vmatpush.bf16.msra.mxu0 %v5796_v39  ;;  %2462 = vmatpush.bf16.msrb.mxu1 %v5797_v59 }
 0x826   :  { %2475 = vmatpush.bf16.msra.mxu2 %v5798_v11  ;;  %2488 = vmatpush.bf16.msra.mxu3 %v5799_v35 }
 0x884   :  { %v2191_v15 = vpop.f32.mrf.mxu0  ;;  %v2204_v34 = vpop.f32.mrf.mxu1 }
 0x885   :  { %v2192_v8 = vadd.f32 %v2191_v15, %v5896_v37  ;;  %v2205_v12 = vadd.f32 %v2204_v34, %v5899_v1  ;;  %v5903_v15 = vld [vmem:[#allocation63_spill] sm:$0xff]  ;;  %v5904_v34 = vld [vmem:[#allocation61_spill] sm:$0xff] }
 0x886   :  { %v5905_v37 = vsel %vm4322_vm3, %v5903_v15, %v5904_v34 }
 0x887   :  { %v3226_v57 = vmul.f32 -1.442695, %v2192_v8  ;;  %v3227_v43 = vmul.f32 -1.442695, %v2205_v12 }
 0x889   :  { %3523 = vpow2.f32 %v3226_v57 }
 0x88a   :  { %3525 = vpow2.f32 %v3227_v43 }
 0x88b   :  { %v2217_v23 = vpop.f32.mrf.mxu2  ;;  %v2230_v47 = vpop.f32.mrf.mxu3 }
 0x88c   :  { %v2218_v46 = vadd.f32 %v2217_v23, %v5902_v3  ;;  %v2193_v53 = vpop.f32.mrf.mxu0  ;;  %v2206_v2 = vpop.f32.mrf.mxu1  ;;  %v2231_v8 = vadd.f32 %v2230_v47, %v5905_v37 }
 0x88e   :  { %v3228_v63 = vmul.f32 -1.442695, %v2218_v46 }
 0x88f   :  { %v3524_v41 = vpop.eup %3523 }
 0x890   :  { %v3526_v25 = vpop.eup %3525  ;;  %v2243_v55 = vadd.f32 1.0, %v3524_v41  ;;  %3527 = vpow2.f32 %v3228_v63 }
 0x891   :  { %v2244_v51 = vadd.f32 1.0, %v3526_v25 }
 0x892   :  { %3529 = vrcp.f32 %v2243_v55  ;;  %v2257_v43 = vand.u32 2147483648, %v2243_v55  ;;  %v2255_v26 = vand.u32 2147483647, %v2243_v55  ;;  %vm2251_vm14 = vweird.f32 %v2243_v55 }
 0x893   :  { %3531 = vrcp.f32 %v2244_v51  ;;  %v2219_v62 = vpop.f32.mrf.mxu2  ;;  %v2232_v52 = vpop.f32.mrf.mxu3  ;;  %v2272_v23 = vand.u32 2147483648, %v2244_v51  ;;  %v2270_v46 = vand.u32 2147483647, %v2244_v51  ;;  %vm2266_vm15 = vweird.f32 %v2244_v51 }
 0x894   :  { %v2258_v63 = vor.u32 1.1754944e-38, %v2257_v43  ;;  %vm2256_vm8 = vcmp.eq.f32.partialorder %v2255_v26, 8.507059e+37 }
 0x895   :  { %v2273_v25 = vor.u32 1.1754944e-38, %v2272_v23  ;;  %vm2271_vm1 = vcmp.eq.f32.partialorder %v2270_v46, 8.507059e+37 }
 0x896   :  { %v3528_v17 = vpop.eup %3527 }
 0x897   :  { %v2245_v20 = vadd.f32 1.0, %v3528_v17 }
 0x898   :  { %v3530_v56 = vpop.eup %3529 }
 0x899   :  { %v3532_v30 = vpop.eup %3531  ;;  %v2247_v49 = vmul.f32 %v3530_v56, %v2243_v55  ;;  %3533 = vrcp.f32 %v2245_v20  ;;  %vm2252_vm12 = vweird.f32 %v3530_v56  ;;  %vm2281_vm10 = vweird.f32 %v2245_v20 }
 0x89a   :  { %v2262_v1 = vmul.f32 %v3532_v30, %v2244_v51  ;;  %3535 = vtanh.f32 %v2231_v8  ;;  %vm2267_vm13 = vweird.f32 %v3532_v30  ;;  %vm2253_vm5 = vmor %vm2251_vm14, %vm2252_vm12 }
 0x89b   :  { %v2248_v12 = vsub.f32 1.0, %v2247_v49  ;;  %vm2268_vm7 = vmor %vm2266_vm15, %vm2267_vm13 }
 0x89c   :  { %v2263_v57 = vsub.f32 1.0, %v2262_v1 }
 0x89d   :  { %v2249_v60 = vmul.f32 %v3530_v56, %v2248_v12  ;;  %v2287_v12 = vand.u32 2147483648, %v2245_v20 }
 0x89e   :  { %v2264_v3 = vmul.f32 %v3532_v30, %v2263_v57 }
 0x89f   :  { %v3534_v53 = vpop.eup %3533  ;;  %v2250_v2 = vadd.f32 %v3530_v56, %v2249_v60  ;;  %v2288_v43 = vor.u32 1.1754944e-38, %v2287_v12 }
 0x8a0   :  { %v2277_v47 = vmul.f32 %v3534_v53, %v2245_v20  ;;  %v2265_v41 = vadd.f32 %v3532_v30, %v2264_v3  ;;  %v3536_v52 = vpop.eup %3535  ;;  %vm2282_vm9 = vweird.f32 %v3534_v53  ;;  %v5906_v3 = vld [vmem:[#allocation68_spill] sm:$0xff] }
 0x8a1   :  { %v2254_v62 = vsel %vm2253_vm5, %v3530_v56, %v2250_v2  ;;  %v2285_v56 = vand.u32 2147483647, %v2245_v20  ;;  %vm2283_vm11 = vmor %vm2281_vm10, %vm2282_vm9  ;;  %v5908_v2 = vld [vmem:[#allocation80_spill] sm:$0xff] }
 0x8a2   :  { %v2278_v17 = vsub.f32 1.0, %v2277_v47  ;;  %v2259_v15 = vsel %vm2256_vm8, %v2258_v63, %v2254_v62  ;;  %v2269_v34 = vsel %vm2268_vm7, %v3532_v30, %v2265_v41 }
 0x8a3   :  { %v2274_v37 = vsel %vm2271_vm1, %v2273_v25, %v2269_v34  ;;  %v2293_v8 = vmul.f32 %v3536_v52, %v2259_v15  ;;  %vm2286_vm12 = vcmp.eq.f32.partialorder %v2285_v56, 8.507059e+37  ;;  %v5911_v15 = vld [vmem:[#allocation69_spill] sm:$0xff] }
 0x8a4   :  { %v2279_v49 = vmul.f32 %v3534_v53, %v2278_v17  ;;  %v2292_v1 = vmul.f32 %v2274_v37, %v5307_v45  ;;  %v5910_v17 = vld [vmem:[#allocation71_spill] sm:$0xff] }
 0x8a5   :  { %v5912_v34 = vsel %vm4318_vm2, %v5910_v17, %v5911_v15 }
 0x8a6   :  { %v5361_v55 = vadd.f32 %v2293_v8, %v2292_v1  ;;  %v2280_v51 = vadd.f32 %v3534_v53, %v2279_v49 }
 0x8a8   :  { %3537 = vtanh.f32 %v5361_v55  ;;  %v2284_v57 = vsel %vm2283_vm11, %v3534_v53, %v2280_v51  ;;  %v5907_v53 = vld [vmem:[#allocation81_spill] sm:$0xff] }
 0x8a9   :  { %v2289_v23 = vsel %vm2286_vm12, %v2288_v43, %v2284_v57  ;;  %v5909_v47 = vsel %vm4373_vm4, %v5907_v53, %v5908_v2 }
 0x8ae   :  { %v3538_v30 = vpop.eup %3537 }
 0x8af   :  { %v2296_v60 = vmul.f32 %v3538_v30, %v2289_v23 }
 0x8b1   :  { %2297 = vst.msk [vmem:[#allocation3 + $0x58] sm:$0xff] %vm190_vm0, %v2296_v60  ;;  %v2299_v26 = vpack.c.bf16 %v2296_v60, %v2296_v60 }
 0x8b2   :  { %2298 = vst.msk [vmem:[#allocation3 + $0x20] sm:$0xff] %vm853_vm6, %v2296_v60 }
 0x8b3   :  { %2320 = vmatmul.bf16.vlgmr.msrb.gmra.mxu0 %v2299_v26  ;;  %2333 = vmatmul.bf16.vlgmr.msra.gmra.mxu1 %v2299_v26 }
 0x8b4   :  { %2346 = vmatmul.bf16.vlgmr.msrb.gmra.mxu2 %v2299_v26  ;;  %2359 = vmatmul.bf16.vlgmr.msrb.gmra.mxu3 %v2299_v26 }
 0x8b5   :  { %2572 = vmatpush.bf16.msrb.mxu0 %v3829_v54  ;;  %2585 = vmatpush.bf16.msra.mxu1 %v3870_v6 }
 0x8b6   :  { %2598 = vmatpush.bf16.msrb.mxu2 %v3797_v44  ;;  %2611 = vmatpush.bf16.msrb.mxu3 %v3808_v48 }
 0x8b9   :  { %2573 = vmatpush.bf16.msrb.mxu0 %v3855_v0  ;;  %2586 = vmatpush.bf16.msra.mxu1 %v3883_v10 }
 0x8ba   :  { %2599 = vmatpush.bf16.msrb.mxu2 %v3837_v58  ;;  %2612 = vmatpush.bf16.msrb.mxu3 %v3867_v4 }
 0x8bd   :  { %2574 = vmatpush.bf16.msrb.mxu0 %v3912_v19  ;;  %2587 = vmatpush.bf16.msra.mxu1 %v3899_v14 }
 0x8be   :  { %2600 = vmatpush.bf16.msrb.mxu2 %v3910_v18  ;;  %2613 = vmatpush.bf16.msrb.mxu3 %v3920_v22 }
 0x8c1   :  { %2575 = vmatpush.bf16.msrb.mxu0 %v3955_v32  ;;  %2588 = vmatpush.bf16.msra.mxu1 %v3942_v27 }
 0x8c2   :  { %2601 = vmatpush.bf16.msrb.mxu2 %v3953_v31  ;;  %2614 = vmatpush.bf16.msrb.mxu3 %v5783_v61 }
 0x8c5   :  { %2576 = vmatpush.bf16.msrb.mxu0 %v5784_v13  ;;  %2589 = vmatpush.bf16.msra.mxu1 %v5785_v29 }
 0x8c6   :  { %2602 = vmatpush.bf16.msrb.mxu2 %v5786_v21  ;;  %2615 = vmatpush.bf16.msrb.mxu3 %v5787_v40 }
 0x8c9   :  { %2577 = vmatpush.bf16.msrb.mxu0 %v5788_v36  ;;  %2590 = vmatpush.bf16.msra.mxu1 %v5789_v38 }
 0x8ca   :  { %2603 = vmatpush.bf16.msrb.mxu2 %v5790_v42  ;;  %2616 = vmatpush.bf16.msrb.mxu3 %v5791_v9 }
 0x8cd   :  { %2578 = vmatpush.bf16.msrb.mxu0 %v5792_v33  ;;  %2591 = vmatpush.bf16.msra.mxu1 %v5793_v24 }
 0x8ce   :  { %2604 = vmatpush.bf16.msrb.mxu2 %v5794_v16  ;;  %2617 = vmatpush.bf16.msrb.mxu3 %v5795_v28 }
 0x8d1   :  { %2579 = vmatpush.bf16.msrb.mxu0 %v5796_v39  ;;  %2592 = vmatpush.bf16.msra.mxu1 %v5797_v59 }
 0x8d2   :  { %2605 = vmatpush.bf16.msrb.mxu2 %v5798_v11  ;;  %2618 = vmatpush.bf16.msrb.mxu3 %v5799_v35 }
 0x930   :  { %v2321_v45 = vpop.f32.mrf.mxu0  ;;  %v2334_v20 = vpop.f32.mrf.mxu1 }
 0x931   :  { %v2322_v46 = vadd.f32 %v2321_v45, %v5906_v3  ;;  %v2335_v63 = vadd.f32 %v2334_v20, %v5909_v47  ;;  %v5913_v45 = vld [vmem:[#allocation72_spill] sm:$0xff]  ;;  %v5914_v20 = vld [vmem:[#allocation70_spill] sm:$0xff] }
 0x932   :  { %v5915_v3 = vsel %vm4322_vm3, %v5913_v45, %v5914_v20 }
 0x933   :  { %v3229_v41 = vmul.f32 -1.442695, %v2322_v46  ;;  %v3230_v25 = vmul.f32 -1.442695, %v2335_v63 }
 0x935   :  { %3539 = vpow2.f32 %v3229_v41 }
 0x936   :  { %3541 = vpow2.f32 %v3230_v25 }
 0x937   :  { %v2347_v62 = vpop.f32.mrf.mxu2  ;;  %v2360_v52 = vpop.f32.mrf.mxu3 }
 0x938   :  { %v2348_v37 = vadd.f32 %v2347_v62, %v5912_v34  ;;  %v2323_v8 = vpop.f32.mrf.mxu0  ;;  %v2336_v49 = vpop.f32.mrf.mxu1  ;;  %v2361_v46 = vadd.f32 %v2360_v52, %v5915_v3 }
 0x93a   :  { %v3231_v1 = vmul.f32 -1.442695, %v2348_v37 }
 0x93b   :  { %v3540_v51 = vpop.eup %3539 }
 0x93c   :  { %v3542_v12 = vpop.eup %3541  ;;  %v2373_v56 = vadd.f32 1.0, %v3540_v51  ;;  %3543 = vpow2.f32 %v3231_v1 }
 0x93d   :  { %v2374_v57 = vadd.f32 1.0, %v3542_v12 }
 0x93e   :  { %3545 = vrcp.f32 %v2373_v56  ;;  %v2387_v25 = vand.u32 2147483648, %v2373_v56  ;;  %v2385_v15 = vand.u32 2147483647, %v2373_v56  ;;  %vm2381_vm15 = vweird.f32 %v2373_v56 }
 0x93f   :  { %3547 = vrcp.f32 %v2374_v57  ;;  %v2349_v43 = vpop.f32.mrf.mxu2  ;;  %v2362_v30 = vpop.f32.mrf.mxu3  ;;  %v2402_v62 = vand.u32 2147483648, %v2374_v57  ;;  %v2400_v37 = vand.u32 2147483647, %v2374_v57  ;;  %vm2396_vm5 = vweird.f32 %v2374_v57 }
 0x940   :  { %v2388_v1 = vor.u32 1.1754944e-38, %v2387_v25  ;;  %vm2386_vm1 = vcmp.eq.f32.partialorder %v2385_v15, 8.507059e+37 }
 0x941   :  { %v2403_v12 = vor.u32 1.1754944e-38, %v2402_v62  ;;  %vm2401_vm9 = vcmp.eq.f32.partialorder %v2400_v37, 8.507059e+37 }
 0x942   :  { %v3544_v23 = vpop.eup %3543 }
 0x943   :  { %v2375_v60 = vadd.f32 1.0, %v3544_v23 }
 0x944   :  { %v3546_v26 = vpop.eup %3545 }
 0x945   :  { %v3548_v53 = vpop.eup %3547  ;;  %v2377_v2 = vmul.f32 %v3546_v26, %v2373_v56  ;;  %3549 = vrcp.f32 %v2375_v60  ;;  %vm2382_vm13 = vweird.f32 %v3546_v26  ;;  %vm2411_vm11 = vweird.f32 %v2375_v60 }
 0x946   :  { %v2392_v47 = vmul.f32 %v3548_v53, %v2374_v57  ;;  %3551 = vtanh.f32 %v2361_v46  ;;  %vm2397_vm14 = vweird.f32 %v3548_v53  ;;  %vm2383_vm7 = vmor %vm2381_vm15, %vm2382_vm13 }
 0x947   :  { %v2378_v63 = vsub.f32 1.0, %v2377_v2  ;;  %vm2398_vm8 = vmor %vm2396_vm5, %vm2397_vm14 }
 0x948   :  { %v2393_v41 = vsub.f32 1.0, %v2392_v47 }
 0x949   :  { %v2379_v17 = vmul.f32 %v3546_v26, %v2378_v63  ;;  %v2417_v63 = vand.u32 2147483648, %v2375_v60 }
 0x94a   :  { %v2394_v34 = vmul.f32 %v3548_v53, %v2393_v41 }
 0x94b   :  { %v3550_v8 = vpop.eup %3549  ;;  %v2380_v49 = vadd.f32 %v3546_v26, %v2379_v17  ;;  %v2418_v25 = vor.u32 1.1754944e-38, %v2417_v63 }
 0x94c   :  { %v2407_v52 = vmul.f32 %v3550_v8, %v2375_v60  ;;  %v2395_v51 = vadd.f32 %v3548_v53, %v2394_v34  ;;  %v3552_v30 = vpop.eup %3551  ;;  %vm2412_vm10 = vweird.f32 %v3550_v8 }
 0x94d   :  { %v2384_v43 = vsel %vm2383_vm7, %v3546_v26, %v2380_v49  ;;  %v2415_v26 = vand.u32 2147483647, %v2375_v60  ;;  %vm2413_vm12 = vmor %vm2411_vm11, %vm2412_vm10 }
 0x94e   :  { %v2408_v23 = vsub.f32 1.0, %v2407_v52  ;;  %v2389_v45 = vsel %vm2386_vm1, %v2388_v1, %v2384_v43  ;;  %v2399_v20 = vsel %vm2398_vm8, %v3548_v53, %v2395_v51 }
 0x94f   :  { %v2404_v3 = vsel %vm2401_vm9, %v2403_v12, %v2399_v20  ;;  %v2423_v46 = vmul.f32 %v3552_v30, %v2389_v45  ;;  %vm2416_vm13 = vcmp.eq.f32.partialorder %v2415_v26, 8.507059e+37 }
 0x950   :  { %v2409_v2 = vmul.f32 %v3550_v8, %v2408_v23  ;;  %v2422_v47 = vmul.f32 %v2404_v3, %v5361_v55 }
 0x952   :  { %v5415_v56 = vadd.f32 %v2423_v46, %v2422_v47  ;;  %v2410_v57 = vadd.f32 %v3550_v8, %v2409_v2 }
 0x954   :  { %3553 = vtanh.f32 %v5415_v56  ;;  %v2414_v41 = vsel %vm2413_vm12, %v3550_v8, %v2410_v57 }
 0x955   :  { %v2419_v62 = vsel %vm2416_vm13, %v2418_v25, %v2414_v41 }
 0x95a   :  { %v3554_v53 = vpop.eup %3553 }
 0x95b   :  { %v2426_v17 = vmul.f32 %v3554_v53, %v2419_v62 }
 0x95d   :  { %2427 = vst.msk [vmem:[#allocation3 + $0x60] sm:$0xff] %vm190_vm0, %v2426_v17  ;;  %v2429_v15 = vpack.c.bf16 %v2426_v17, %v2426_v17 }
 0x95e   :  { %2428 = vst.msk [vmem:[#allocation3 + $0x18] sm:$0xff] %vm853_vm6, %v2426_v17 }
 0x95f   :  { %2450 = vmatmul.bf16.vlgmr.msra.gmra.mxu0 %v2429_v15  ;;  %2463 = vmatmul.bf16.vlgmr.msrb.gmra.mxu1 %v2429_v15 }
 0x960   :  { %2476 = vmatmul.bf16.vlgmr.msra.gmra.mxu2 %v2429_v15  ;;  %2489 = vmatmul.bf16.vlgmr.msra.gmra.mxu3 %v2429_v15 }
 0x961   :  { %2702 = vmatpush.bf16.msra.mxu0 %v3829_v54  ;;  %2715 = vmatpush.bf16.msrb.mxu1 %v3870_v6  ;;  %v5916_v54 = vld [vmem:[#allocation75_spill] sm:$0xff] }
 0x962   :  { %2728 = vmatpush.bf16.msra.mxu2 %v3797_v44  ;;  %2741 = vmatpush.bf16.msra.mxu3 %v3808_v48 }
 0x965   :  { %2703 = vmatpush.bf16.msra.mxu0 %v3855_v0  ;;  %2716 = vmatpush.bf16.msrb.mxu1 %v3883_v10  ;;  %v5917_v0 = vld [vmem:[#allocation87_spill] sm:$0xff] }
 0x966   :  { %2729 = vmatpush.bf16.msra.mxu2 %v3837_v58  ;;  %2742 = vmatpush.bf16.msra.mxu3 %v3867_v4  ;;  %v5918_v4 = vld [vmem:[#allocation86_spill] sm:$0xff] }
 0x967   :  { %v5919_v6 = vsel %vm4373_vm4, %v5917_v0, %v5918_v4 }
 0x969   :  { %2704 = vmatpush.bf16.msra.mxu0 %v3912_v19  ;;  %2717 = vmatpush.bf16.msrb.mxu1 %v3899_v14 }
 0x96a   :  { %2730 = vmatpush.bf16.msra.mxu2 %v3910_v18  ;;  %2743 = vmatpush.bf16.msra.mxu3 %v3920_v22 }
 0x96d   :  { %2705 = vmatpush.bf16.msra.mxu0 %v3955_v32  ;;  %2718 = vmatpush.bf16.msrb.mxu1 %v3942_v27  ;;  %v5920_v27 = vld [vmem:[#allocation78_spill] sm:$0xff] }
 0x96e   :  { %2731 = vmatpush.bf16.msra.mxu2 %v3953_v31  ;;  %2744 = vmatpush.bf16.msra.mxu3 %v5783_v61  ;;  %v5921_v31 = vld [vmem:[#allocation76_spill] sm:$0xff] }
 0x96f   :  { %v5922_v32 = vsel %vm4318_vm2, %v5920_v27, %v5921_v31  ;;  %v5928_v27 = vld [vmem:[#allocation92_spill] sm:$0xff] }
 0x971   :  { %2706 = vmatpush.bf16.msra.mxu0 %v5784_v13  ;;  %2719 = vmatpush.bf16.msrb.mxu1 %v5785_v29 }
 0x972   :  { %2732 = vmatpush.bf16.msra.mxu2 %v5786_v21  ;;  %2745 = vmatpush.bf16.msra.mxu3 %v5787_v40 }
 0x975   :  { %2707 = vmatpush.bf16.msra.mxu0 %v5788_v36  ;;  %2720 = vmatpush.bf16.msrb.mxu1 %v5789_v38 }
 0x976   :  { %2733 = vmatpush.bf16.msra.mxu2 %v5790_v42  ;;  %2746 = vmatpush.bf16.msra.mxu3 %v5791_v9 }
 0x979   :  { %2708 = vmatpush.bf16.msra.mxu0 %v5792_v33  ;;  %2721 = vmatpush.bf16.msrb.mxu1 %v5793_v24 }
 0x97a   :  { %2734 = vmatpush.bf16.msra.mxu2 %v5794_v16  ;;  %2747 = vmatpush.bf16.msra.mxu3 %v5795_v28 }
 0x97d   :  { %2709 = vmatpush.bf16.msra.mxu0 %v5796_v39  ;;  %2722 = vmatpush.bf16.msrb.mxu1 %v5797_v59  ;;  %v5923_v39 = vld [vmem:[#allocation79_spill] sm:$0xff]  ;;  %v5924_v59 = vld [vmem:[#allocation77_spill] sm:$0xff] }
 0x97e   :  { %2735 = vmatpush.bf16.msra.mxu2 %v5798_v11  ;;  %2748 = vmatpush.bf16.msra.mxu3 %v5799_v35  ;;  %v5925_v11 = vsel %vm4322_vm3, %v5923_v39, %v5924_v59 }
 0x9dc   :  { %v2451_v44 = vpop.f32.mrf.mxu0  ;;  %v2464_v48 = vpop.f32.mrf.mxu1 }
 0x9dd   :  { %v2452_v58 = vadd.f32 %v2451_v44, %v5916_v54  ;;  %v2465_v10 = vadd.f32 %v2464_v48, %v5919_v6 }
 0x9df   :  { %v3232_v14 = vmul.f32 -1.442695, %v2452_v58  ;;  %v3233_v18 = vmul.f32 -1.442695, %v2465_v10 }
 0x9e1   :  { %3555 = vpow2.f32 %v3232_v14 }
 0x9e2   :  { %3557 = vpow2.f32 %v3233_v18  ;;  %v5926_v18 = vld [vmem:[#allocation28_spill] sm:$0xff] }
 0x9e3   :  { %v2477_v19 = vpop.f32.mrf.mxu2  ;;  %v2490_v22 = vpop.f32.mrf.mxu3 }
 0x9e4   :  { %v2478_v61 = vadd.f32 %v2477_v19, %v5922_v32  ;;  %v2453_v13 = vpop.f32.mrf.mxu0  ;;  %v2466_v29 = vpop.f32.mrf.mxu1  ;;  %v2491_v35 = vadd.f32 %v2490_v22, %v5925_v11  ;;  %v5927_v22 = vld [vmem:[#allocation93_spill] sm:$0xff] }
 0x9e5   :  { %v5929_v31 = vsel %vm4373_vm4, %v5927_v22, %v5928_v27 }
 0x9e6   :  { %v3234_v21 = vmul.f32 -1.442695, %v2478_v61 }
 0x9e7   :  { %v3556_v40 = vpop.eup %3555 }
 0x9e8   :  { %v3558_v36 = vpop.eup %3557  ;;  %v2503_v38 = vadd.f32 1.0, %v3556_v40  ;;  %3559 = vpow2.f32 %v3234_v21  ;;  %v5930_v40 = vld [vmem:[#allocation84_spill] sm:$0xff] }
 0x9e9   :  { %v2504_v42 = vadd.f32 1.0, %v3558_v36  ;;  %v5931_v36 = vld [vmem:[#allocation82_spill] sm:$0xff] }
 0x9ea   :  { %3561 = vrcp.f32 %v2503_v38  ;;  %v2517_v49 = vand.u32 2147483648, %v2503_v38  ;;  %v2515_v51 = vand.u32 2147483647, %v2503_v38  ;;  %vm2511_vm5 = vweird.f32 %v2503_v38 }
 0x9eb   :  { %3563 = vrcp.f32 %v2504_v42  ;;  %v2479_v9 = vpop.f32.mrf.mxu2  ;;  %v2492_v33 = vpop.f32.mrf.mxu3  ;;  %v2532_v52 = vand.u32 2147483648, %v2504_v42  ;;  %v2530_v43 = vand.u32 2147483647, %v2504_v42  ;;  %vm2526_vm7 = vweird.f32 %v2504_v42 }
 0x9ec   :  { %v2518_v20 = vor.u32 1.1754944e-38, %v2517_v49  ;;  %vm2516_vm9 = vcmp.eq.f32.partialorder %v2515_v51, 8.507059e+37 }
 0x9ed   :  { %v2533_v46 = vor.u32 1.1754944e-38, %v2532_v52  ;;  %vm2531_vm10 = vcmp.eq.f32.partialorder %v2530_v43, 8.507059e+37 }
 0x9ee   :  { %v3560_v24 = vpop.eup %3559 }
 0x9ef   :  { %v2505_v16 = vadd.f32 1.0, %v3560_v24 }
 0x9f0   :  { %v3562_v28 = vpop.eup %3561 }
 0x9f1   :  { %v3564_v55 = vpop.eup %3563  ;;  %v2507_v60 = vmul.f32 %v3562_v28, %v2503_v38  ;;  %3565 = vrcp.f32 %v2505_v16  ;;  %vm2512_vm14 = vweird.f32 %v3562_v28  ;;  %v2547_v44 = vand.u32 2147483648, %v2505_v16 }
 0x9f2   :  { %v2522_v34 = vmul.f32 %v3564_v55, %v2504_v42  ;;  %3567 = vtanh.f32 %v2491_v35  ;;  %vm2527_vm15 = vweird.f32 %v3564_v55  ;;  %vm2513_vm8 = vmor %vm2511_vm5, %vm2512_vm14  ;;  %vm2541_vm12 = vweird.f32 %v2505_v16 }
 0x9f3   :  { %v2508_v37 = vsub.f32 1.0, %v2507_v60  ;;  %vm2528_vm1 = vmor %vm2526_vm7, %vm2527_vm15  ;;  %v2545_v48 = vand.u32 2147483647, %v2505_v16  ;;  %v2548_v58 = vor.u32 1.1754944e-38, %v2547_v44  ;;  %v5932_v38 = vsel %vm4318_vm2, %v5930_v40, %v5931_v36 }
 0x9f4   :  { %v2523_v8 = vsub.f32 1.0, %v2522_v34 }
 0x9f5   :  { %v2509_v1 = vmul.f32 %v3562_v28, %v2508_v37  ;;  %vm2546_vm14 = vcmp.eq.f32.partialorder %v2545_v48, 8.507059e+37  ;;  %v5933_v37 = vld [vmem:[#allocation85_spill] sm:$0xff] }
 0x9f6   :  { %v2524_v12 = vmul.f32 %v3564_v55, %v2523_v8  ;;  %v5934_v8 = vld [vmem:[#allocation83_spill] sm:$0xff] }
 0x9f7   :  { %v3566_v30 = vpop.eup %3565  ;;  %v2510_v23 = vadd.f32 %v3562_v28, %v2509_v1  ;;  %v5935_v49 = vsel %vm4322_vm3, %v5933_v37, %v5934_v8 }
 0x9f8   :  { %v2537_v45 = vmul.f32 %v3566_v30, %v2505_v16  ;;  %v2525_v3 = vadd.f32 %v3564_v55, %v2524_v12  ;;  %v3568_v47 = vpop.eup %3567  ;;  %vm2542_vm11 = vweird.f32 %v3566_v30 }
 0x9f9   :  { %v2514_v2 = vsel %vm2513_vm8, %v3562_v28, %v2510_v23  ;;  %vm2543_vm13 = vmor %vm2541_vm12, %vm2542_vm11 }
 0x9fa   :  { %v2538_v57 = vsub.f32 1.0, %v2537_v45  ;;  %v2519_v63 = vsel %vm2516_vm9, %v2518_v20, %v2514_v2  ;;  %v2529_v26 = vsel %vm2528_vm1, %v3564_v55, %v2525_v3 }
 0x9fb   :  { %v2534_v41 = vsel %vm2531_vm10, %v2533_v46, %v2529_v26  ;;  %v2553_v25 = vmul.f32 %v3568_v47, %v2519_v63 }
 0x9fc   :  { %v2539_v53 = vmul.f32 %v3566_v30, %v2538_v57  ;;  %v2552_v62 = vmul.f32 %v2534_v41, %v5415_v56 }
 0x9fe   :  { %v5469_v17 = vadd.f32 %v2553_v25, %v2552_v62  ;;  %v2540_v15 = vadd.f32 %v3566_v30, %v2539_v53 }
 0xa00   :  { %3569 = vtanh.f32 %v5469_v17  ;;  %v2544_v54 = vsel %vm2543_vm13, %v3566_v30, %v2540_v15 }
 0xa01   :  { %v2549_v4 = vsel %vm2546_vm14, %v2548_v58, %v2544_v54 }
 0xa06   :  { %v3570_v0 = vpop.eup %3569 }
 0xa07   :  { %v2556_v6 = vmul.f32 %v3570_v0, %v2549_v4 }
 0xa09   :  { %2557 = vst.msk [vmem:[#allocation3 + $0x68] sm:$0xff] %vm190_vm0, %v2556_v6  ;;  %v2559_v10 = vpack.c.bf16 %v2556_v6, %v2556_v6 }
 0xa0a   :  { %2558 = vst.msk [vmem:[#allocation3 + $0x10] sm:$0xff] %vm853_vm6, %v2556_v6 }
 0xa0b   :  { %2580 = vmatmul.bf16.vlgmr.msrb.gmra.mxu0 %v2559_v10  ;;  %2593 = vmatmul.bf16.vlgmr.msra.gmra.mxu1 %v2559_v10 }
 0xa0c   :  { %2606 = vmatmul.bf16.vlgmr.msrb.gmra.mxu2 %v2559_v10  ;;  %2619 = vmatmul.bf16.vlgmr.msrb.gmra.mxu3 %v2559_v10 }
 0xa88   :  { %v2581_v56 = vpop.f32.mrf.mxu0  ;;  %v2594_v14 = vpop.f32.mrf.mxu1 }
 0xa89   :  { %v2582_v19 = vadd.f32 %v2581_v56, %v5926_v18  ;;  %v2595_v32 = vadd.f32 %v2594_v14, %v5929_v31 }
 0xa8b   :  { %v3235_v61 = vmul.f32 -1.442695, %v2582_v19  ;;  %v3236_v13 = vmul.f32 -1.442695, %v2595_v32 }
 0xa8d   :  { %3571 = vpow2.f32 %v3235_v61  ;;  %v3335_v61 = vld [vmem:[%s5553_s4 + $0x30] sm:$0xff] }
 0xa8e   :  { %3573 = vpow2.f32 %v3236_v13  ;;  %v3334_v13 = vld [vmem:[%s5553_s4 + $0x28] sm:$0xff] }
 0xa8f   :  { %v2607_v29 = vpop.f32.mrf.mxu2  ;;  %v2620_v21 = vpop.f32.mrf.mxu3 }
 0xa90   :  { %v2608_v42 = vadd.f32 %v2607_v29, %v5932_v38  ;;  %v2583_v9 = vpop.f32.mrf.mxu0  ;;  %v2596_v33 = vpop.f32.mrf.mxu1  ;;  %v2621_v52 = vadd.f32 %v2620_v21, %v5935_v49  ;;  %v3333_v29 = vld [vmem:[%s5553_s4 + $0x20] sm:$0xff]  ;;  %v3332_v21 = vld [vmem:[%s5553_s4 + $0x18] sm:$0xff]  ;;  %v5936_v38 = vld [vmem:[#allocation29_spill] sm:$0xff] }
 0xa91   :  { %v5937_v9 = vld [vmem:[#allocation95_spill] sm:$0xff]  ;;  %v5938_v33 = vld [vmem:[#allocation94_spill] sm:$0xff] }
 0xa92   :  { %v3237_v24 = vmul.f32 -1.442695, %v2608_v42 }
 0xa93   :  { %v3572_v16 = vpop.eup %3571 }
 0xa94   :  { %v3574_v28 = vpop.eup %3573  ;;  %v2633_v39 = vadd.f32 1.0, %v3572_v16  ;;  %3575 = vpow2.f32 %v3237_v24  ;;  %v5939_v24 = vsel %vm4373_vm4, %v5937_v9, %v5938_v33 }
 0xa95   :  { %v2634_v59 = vadd.f32 1.0, %v3574_v28 }
 0xa96   :  { %3577 = vrcp.f32 %v2633_v39  ;;  %v2647_v23 = vand.u32 2147483648, %v2633_v39  ;;  %v2645_v3 = vand.u32 2147483647, %v2633_v39  ;;  %vm2641_vm7 = vweird.f32 %v2633_v39 }
 0xa97   :  { %3579 = vrcp.f32 %v2634_v59  ;;  %v2609_v11 = vpop.f32.mrf.mxu2  ;;  %v2622_v35 = vpop.f32.mrf.mxu3  ;;  %v2662_v45 = vand.u32 2147483648, %v2634_v59  ;;  %v2660_v2 = vand.u32 2147483647, %v2634_v59  ;;  %vm2656_vm8 = vweird.f32 %v2634_v59 }
 0xa98   :  { %v2648_v26 = vor.u32 1.1754944e-38, %v2647_v23  ;;  %vm2646_vm10 = vcmp.eq.f32.partialorder %v2645_v3, 8.507059e+37  ;;  %v3330_v11 = vld [vmem:[%s5553_s4 + $0x8] sm:$0xff] }
 0xa99   :  { %v2663_v25 = vor.u32 1.1754944e-38, %v2662_v45  ;;  %vm2661_vm11 = vcmp.eq.f32.partialorder %v2660_v2, 8.507059e+37  ;;  %v5944_v2 = vld [vmem:[#allocation89_spill] sm:$0xff] }
 0xa9a   :  { %v3576_v55 = vpop.eup %3575 }
 0xa9b   :  { %v2635_v60 = vadd.f32 1.0, %v3576_v55  ;;  %v5940_v55 = vld [vmem:[#allocation90_spill] sm:$0xff] }
 0xa9c   :  { %v3578_v34 = vpop.eup %3577 }
 0xa9d   :  { %v3580_v1 = vpop.eup %3579  ;;  %v2637_v51 = vmul.f32 %v3578_v34, %v2633_v39  ;;  %3581 = vrcp.f32 %v2635_v60  ;;  %vm2642_vm15 = vweird.f32 %v3578_v34  ;;  %v2677_v56 = vand.u32 2147483648, %v2635_v60 }
 0xa9e   :  { %v2652_v12 = vmul.f32 %v3580_v1, %v2634_v59  ;;  %3583 = vtanh.f32 %v2621_v52  ;;  %vm2657_vm5 = vweird.f32 %v3580_v1  ;;  %vm2643_vm1 = vmor %vm2641_vm7, %vm2642_vm15  ;;  %vm2671_vm13 = vweird.f32 %v2635_v60  ;;  %v3331_v59 = vld [vmem:[%s5553_s4 + $0x10] sm:$0xff]  ;;  %v3329_v52 = vld [vmem:[%s5553_s4] sm:$0xff] }
 0xa9f   :  { %v2638_v43 = vsub.f32 1.0, %v2637_v51  ;;  %vm2658_vm9 = vmor %vm2656_vm8, %vm2657_vm5  ;;  %v2675_v14 = vand.u32 2147483647, %v2635_v60  ;;  %v2678_v19 = vor.u32 1.1754944e-38, %v2677_v56 }
 0xaa0   :  { %v2653_v30 = vsub.f32 1.0, %v2652_v12 }
 0xaa1   :  { %v2639_v20 = vmul.f32 %v3578_v34, %v2638_v43  ;;  %vm2676_vm15 = vcmp.eq.f32.partialorder %v2675_v14, 8.507059e+37 }
 0xaa2   :  { %v2654_v46 = vmul.f32 %v3580_v1, %v2653_v30 }
 0xaa3   :  { %v3582_v47 = vpop.eup %3581  ;;  %v2640_v57 = vadd.f32 %v3578_v34, %v2639_v20 }
 0xaa4   :  { %v2667_v63 = vmul.f32 %v3582_v47, %v2635_v60  ;;  %v2655_v41 = vadd.f32 %v3580_v1, %v2654_v46  ;;  %v3584_v62 = vpop.eup %3583  ;;  %vm2672_vm12 = vweird.f32 %v3582_v47  ;;  %v5941_v60 = vld [vmem:[#allocation88_spill] sm:$0xff]  ;;  %v5943_v46 = vld [vmem:[#allocation91_spill] sm:$0xff] }
 0xaa5   :  { %v2644_v53 = vsel %vm2643_vm1, %v3578_v34, %v2640_v57  ;;  %vm2673_vm14 = vmor %vm2671_vm13, %vm2672_vm12  ;;  %v5942_v34 = vsel %vm4318_vm2, %v5940_v55, %v5941_v60 }
 0xaa6   :  { %v2668_v15 = vsub.f32 1.0, %v2667_v63  ;;  %v2649_v44 = vsel %vm2646_vm10, %v2648_v26, %v2644_v53  ;;  %v2659_v48 = vsel %vm2658_vm9, %v3580_v1, %v2655_v41 }
 0xaa7   :  { %v2664_v54 = vsel %vm2661_vm11, %v2663_v25, %v2659_v48  ;;  %v2683_v58 = vmul.f32 %v3584_v62, %v2649_v44 }
 0xaa8   :  { %v2669_v0 = vmul.f32 %v3582_v47, %v2668_v15  ;;  %v2682_v4 = vmul.f32 %v2664_v54, %v5469_v17  ;;  %v3336_v17 = vld [vmem:[%s5553_s4 + $0x38] sm:$0xff]  ;;  %s3658_s4 = smov [#allocation3]  }
 0xaa9   :  { %2888 = vmatpush.bf16.msrb.mxu0 %v3336_v17  ;;  %s2907_s11 = sshll.u32 %s3658_s4, 4  ;;  %s2908_s11 = int_to_ptr.vmem [resolvable:$true] %s2907_s11 }
 0xaaa   :  { %v5491_v6 = vadd.f32 %v2683_v58, %v2682_v4  ;;  %v2670_v10 = vadd.f32 %v3582_v47, %v2669_v0 }
 0xaac   :  { %3585 = vtanh.f32 %v5491_v6  ;;  %v2674_v18 = vsel %vm2673_vm14, %v3582_v47, %v2670_v10  ;;  %v5945_v47 = vsel %vm4322_vm3, %v5943_v46, %v5944_v2 }
 0xaad   :  { %v2679_v27 = vsel %vm2676_vm15, %v2678_v19, %v2674_v18  ;;  %2889 = vmatpush.bf16.msrb.mxu0 %v3335_v61 }
 0xab1   :  { %2890 = vmatpush.bf16.msrb.mxu0 %v3334_v13 }
 0xab2   :  { %v3586_v22 = vpop.eup %3585 }
 0xab3   :  { %v2686_v31 = vmul.f32 %v3586_v22, %v2679_v27 }
 0xab5   :  { %2687 = vst.msk [vmem:[#allocation3 + $0x70] sm:$0xff] %vm190_vm0, %v2686_v31  ;;  %v2689_v32 = vpack.c.bf16 %v2686_v31, %v2686_v31  ;;  %2891 = vmatpush.bf16.msrb.mxu0 %v3333_v29 }
 0xab6   :  { %2688 = vst.msk [vmem:[#allocation3 + $0x8] sm:$0xff] %vm853_vm6, %v2686_v31 }
 0xab7   :  { %2710 = vmatmul.bf16.vlgmr.msra.gmra.mxu0 %v2689_v32  ;;  %2723 = vmatmul.bf16.vlgmr.msrb.gmra.mxu1 %v2689_v32 }
 0xab8   :  { %2736 = vmatmul.bf16.vlgmr.msra.gmra.mxu2 %v2689_v32  ;;  %2749 = vmatmul.bf16.vlgmr.msra.gmra.mxu3 %v2689_v32 }
 0xab9   :  { %2892 = vmatpush.bf16.msrb.mxu0 %v3332_v21 }
 0xabd   :  { %2893 = vmatpush.bf16.msrb.mxu0 %v3331_v59 }
 0xac1   :  { %2894 = vmatpush.bf16.msrb.mxu0 %v3330_v11 }
 0xac5   :  { %2895 = vmatpush.bf16.msrb.mxu0 %v3329_v52 }
 0xb34   :  { %v2711_v40 = vpop.f32.mrf.mxu0  ;;  %v2724_v36 = vpop.f32.mrf.mxu1 }
 0xb35   :  { %v2712_v42 = vadd.f32 %v2711_v40, %v5936_v38  ;;  %v2725_v16 = vadd.f32 %v2724_v36, %v5939_v24 }
 0xb37   :  { %v3238_v28 = vmul.f32 -1.442695, %v2712_v42  ;;  %v3239_v39 = vmul.f32 -1.442695, %v2725_v16 }
 0xb39   :  { %3587 = vpow2.f32 %v3238_v28 }
 0xb3a   :  { %3589 = vpow2.f32 %v3239_v39 }
 0xb3b   :  { %v2737_v35 = vpop.f32.mrf.mxu2  ;;  %v2750_v50 = vpop.f32.mrf.mxu3 }
 0xb3c   :  { %v2738_v37 = vadd.f32 %v2737_v35, %v5942_v34  ;;  %v2713_v8 = vpop.f32.mrf.mxu0  ;;  %v2726_v49 = vpop.f32.mrf.mxu1  ;;  %v2751_v57 = vadd.f32 %v2750_v50, %v5945_v47 }
 0xb3e   :  { %v3240_v1 = vmul.f32 -1.442695, %v2738_v37 }
 0xb3f   :  { %v3588_v51 = vpop.eup %3587 }
 0xb40   :  { %v3590_v12 = vpop.eup %3589  ;;  %v2763_v43 = vadd.f32 1.0, %v3588_v51  ;;  %3591 = vpow2.f32 %v3240_v1 }
 0xb41   :  { %v2764_v30 = vadd.f32 1.0, %v3590_v12 }
 0xb42   :  { %3593 = vrcp.f32 %v2763_v43  ;;  %v2777_v62 = vand.u32 2147483648, %v2763_v43  ;;  %v2775_v48 = vand.u32 2147483647, %v2763_v43  ;;  %vm2771_vm5 = vweird.f32 %v2763_v43 }
 0xb43   :  { %3595 = vrcp.f32 %v2764_v30  ;;  %v2739_v5 = vpop.f32.mrf.mxu2  ;;  %v2752_v23 = vpop.f32.mrf.mxu3  ;;  %v2792_v15 = vand.u32 2147483648, %v2764_v30  ;;  %v2790_v58 = vand.u32 2147483647, %v2764_v30  ;;  %vm2786_vm3 = vweird.f32 %v2764_v30 }
 0xb44   :  { %v2778_v10 = vor.u32 1.1754944e-38, %v2777_v62  ;;  %vm2776_vm1 = vcmp.eq.f32.partialorder %v2775_v48, 8.507059e+37 }
 0xb45   :  { %v2793_v14 = vor.u32 1.1754944e-38, %v2792_v15  ;;  %vm2791_vm9 = vcmp.eq.f32.partialorder %v2790_v58, 8.507059e+37 }
 0xb46   :  { %v3592_v45 = vpop.eup %3591 }
 0xb47   :  { %v2765_v20 = vadd.f32 1.0, %v3592_v45 }
 0xb48   :  { %v3594_v3 = vpop.eup %3593 }
 0xb49   :  { %v3596_v63 = vpop.eup %3595  ;;  %v2767_v26 = vmul.f32 %v3594_v3, %v2763_v43  ;;  %3597 = vrcp.f32 %v2765_v20  ;;  %vm2772_vm2 = vweird.f32 %v3594_v3  ;;  %v2807_v40 = vand.u32 2147483648, %v2765_v20 }
 0xb4a   :  { %v2782_v41 = vmul.f32 %v3596_v63, %v2764_v30  ;;  %3599 = vtanh.f32 %v2751_v57  ;;  %vm2787_vm4 = vweird.f32 %v3596_v63  ;;  %vm2773_vm7 = vmor %vm2771_vm5, %vm2772_vm2  ;;  %vm2801_vm11 = vweird.f32 %v2765_v20 }
 0xb4b   :  { %v2768_v25 = vsub.f32 1.0, %v2767_v26  ;;  %vm2788_vm8 = vmor %vm2786_vm3, %vm2787_vm4  ;;  %v2805_v36 = vand.u32 2147483647, %v2765_v20  ;;  %v2808_v42 = vor.u32 1.1754944e-38, %v2807_v40 }
 0xb4c   :  { %v2783_v53 = vsub.f32 1.0, %v2782_v41 }
 0xb4d   :  { %v2769_v44 = vmul.f32 %v3594_v3, %v2768_v25  ;;  %vm2806_vm13 = vcmp.eq.f32.partialorder %v2805_v36, 8.507059e+37 }
 0xb4e   :  { %v2784_v54 = vmul.f32 %v3596_v63, %v2783_v53 }
 0xb4f   :  { %v3598_v7 = vpop.eup %3597  ;;  %v2770_v0 = vadd.f32 %v3594_v3, %v2769_v44 }
 0xb50   :  { %v2797_v4 = vmul.f32 %v3598_v7, %v2765_v20  ;;  %v2785_v56 = vadd.f32 %v3596_v63, %v2784_v54  ;;  %v3600_v19 = vpop.eup %3599  ;;  %vm2802_vm10 = vweird.f32 %v3598_v7 }
 0xb51   :  { %v2774_v18 = vsel %vm2773_vm7, %v3594_v3, %v2770_v0  ;;  %vm2803_vm12 = vmor %vm2801_vm11, %vm2802_vm10 }
 0xb52   :  { %v2798_v22 = vsub.f32 1.0, %v2797_v4  ;;  %v2779_v27 = vsel %vm2776_vm1, %v2778_v10, %v2774_v18  ;;  %v2789_v31 = vsel %vm2788_vm8, %v3596_v63, %v2785_v56 }
 0xb53   :  { %v2794_v32 = vsel %vm2791_vm9, %v2793_v14, %v2789_v31  ;;  %v2813_v17 = vmul.f32 %v3600_v19, %v2779_v27 }
 0xb54   :  { %v2799_v61 = vmul.f32 %v3598_v7, %v2798_v22  ;;  %v2812_v13 = vmul.f32 %v2794_v32, %v5491_v6  ;;  %v3346_v6 = vld [vmem:[%s5554_s5] ss:$0 sm:$0xff] }
 0xb56   :  { %v2814_v29 = vadd.f32 %v2813_v17, %v2812_v13  ;;  %v2800_v21 = vadd.f32 %v3598_v7, %v2799_v61 }
 0xb58   :  { %3601 = vtanh.f32 %v2814_v29  ;;  %v2804_v38 = vsel %vm2803_vm12, %v3598_v7, %v2800_v21 }
 0xb59   :  { %v2809_v33 = vsel %vm2806_vm13, %v2808_v42, %v2804_v38 }
 0xb5e   :  { %v3602_v9 = vpop.eup %3601 }
 0xb5f   :  { %v2816_v24 = vmul.f32 %v3602_v9, %v2809_v33 }
 0xb61   :  { %2817 = vst.msk [vmem:[#allocation3 + $0x78] sm:$0xff] %vm190_vm0, %v2816_v24  ;;  %v2819_v16 = vpack.c.bf16 %v2816_v24, %v2816_v24 }
 0xb62   :  { %2818 = vst.msk [vmem:[#allocation3] sm:$0xff] %vm853_vm6, %v2816_v24 }
 0xb63   :  { %2896 = vmatmul.bf16.vlgmr.msrb.gmra.mxu0 %v2819_v16  ;;  %2915 = dma.vmem_to_hbm [thread:$0]  %s2908_s11, 2048, %s2910_s14, [#allocation4], %s3659_s15, %s3659_s15, %s3660_s0  }
 0xbe0   :  { %v2897_v28 = vpop.f32.mrf.mxu0 }
 0xbe1   :  { %v2898_v39 = vadd.f32 %v3346_v6, %v2897_v28 }
 0xbe3   :  { %3603 = vtanh.f32 %v2898_v39 }
 0xbe8   :  { %v2899_v59 = vpop.f32.mrf.mxu0 }
 0xbe9   :  { %v3604_v11 = vpop.eup %3603 }
 0xbea   :  { %2902 = vst.msk [vmem:[#allocation5] sm:$0xff] %vm190_vm0, %v3604_v11 }
 0xbeb   :  { %2926 = dma.vmem_to_hbm [thread:$0]  %s2922_s2, 128, %s2924_s20, [#allocation6]  }
 0xbec   :  { %3653 = dma.done.wait [#allocation4], 2048  }
 0xbed   :  { %3654 = vsyncadd [#allocation4], 4294965248 }
 0xbee   :  { %3655 = dma.done.wait [#allocation6], 128  }
 0xbef   :  { %3656 = vsyncadd [#allocation6], 4294967168 }
 0xbf0   :  { %2935 = vsyncpa [#allocation4], 1 }
 0xbf1   :  { %2936 = vsyncpa [#allocation6], 1 }

</bundles_post_ra>
